<compile_context>
chip_gen: v5e
topology: v5e:2x2
jax: 0.10.0
libtpu: 0.0.40
codegen_flags: <defaults>
</compile_context>

<pallas_src>
import numpy as np

import jax
import jax.numpy as jnp
from jax import lax
from jax.experimental import pallas as pl
from jax.experimental.pallas import tpu as pltpu


def _round_up(x, m):
    return ((x + m - 1) // m) * m


def rpe_gather_kernel(idx_ref, table_ref, out_ref):
    """out (H_pad, tn) = table (H_pad, T_pad) @ one_hot(idx) (T_pad, tn).

    idx_ref   : (1, tn)        int32  flattened relative_position_index tile.
    table_ref : (H_pad, T_pad) f32    bias table (transposed), grid-resident.
    out_ref   : (H_pad, tn)    f32    lane-dense output tile.

    The one-hot selection matrix is built in-kernel on the VPU (iota/compare/
    cast); zero terms are exact, so the f32 MXU accumulation reproduces the
    gather bit-exactly.
    """
    t_pad = table_ref.shape[1]
    tn = out_ref.shape[1]
    idx = idx_ref[...]                                        # (1, tn) int32
    rows = lax.broadcasted_iota(jnp.int32, (t_pad, tn), 0)    # (T_pad, tn)
    onehot = (rows == idx).astype(jnp.float32)                # exact 0/1
    out_ref[...] = jnp.dot(table_ref[...], onehot,
                           preferred_element_type=jnp.float32)


def _grid_steps(nn_pad):
    """1 step on single-TC chips (v5e/v6e); 2 parallel steps on 2-TC chips (v7x)."""
    try:
        kind = jax.devices()[0].device_kind.lower()
    except Exception:
        kind = ""
    if "v7" in kind and nn_pad % 256 == 0:
        return 2
    return 1


def rpe_forward(x, bias_table, rel_pos_index, region_size, num_heads):
    """Pallas implementation of RPE.forward's bias computation.

    Args:
      x: unused tensor argument (kept for signature parity with the module).
      bias_table: (T, num_heads) float32, T = (2*Rh-1)*(2*Rw-1).
      rel_pos_index: (N, N) integer array (static buffer), N = Rh*Rw.
    Returns:
      relative_position_bias of shape (num_heads, N, N).
    """
    del x  # TODO(synk): reference forward returns x + self.absolute_pos_embed
           # .unsqueeze(1).unsqueeze(1).repeat(1, H, W, 1) with undefined
           # attributes (absolute_pos_embed, H, W) -- not implementable.
    rh, rw = region_size
    n = rh * rw
    nn2 = n * n
    t = bias_table.shape[0]

    h_pad = _round_up(num_heads, 8)       # sublane-aligned rows
    t_pad = _round_up(t, 128)             # lane-aligned contraction dim
    nn_pad = _round_up(nn2, 256)          # lane-dense, unmasked output stores

    # (T, H) -> (H_pad, T_pad) f32; padded rows/cols are never selected.
    table_t = jnp.pad(jnp.transpose(bias_table),
                      ((0, h_pad - num_heads), (0, t_pad - t)))

    # Flattened static index buffer; padding columns use index 0 (a valid row,
    # the corresponding output columns are sliced off below).
    idx_np = np.zeros((1, nn_pad), np.int32)
    idx_np[0, :nn2] = np.asarray(rel_pos_index).reshape(-1).astype(np.int32)
    idx = jnp.asarray(idx_np)

    steps = _grid_steps(nn_pad)
    tn = nn_pad // steps

    cost = pl.CostEstimate(
        flops=2 * h_pad * t_pad * nn_pad,
        transcendentals=0,
        bytes_accessed=(idx.size * 4            # int32 indices
                        + table_t.size * 4      # f32 table
                        + h_pad * nn_pad * 4),  # f32 output
    )

    out = pl.pallas_call(
        rpe_gather_kernel,
        out_shape=jax.ShapeDtypeStruct((h_pad, nn_pad), jnp.float32),
        grid_spec=pltpu.PrefetchScalarGridSpec(
            num_scalar_prefetch=0,
            grid=(steps,),
            in_specs=[
                pl.BlockSpec((1, tn), lambda i: (0, i)),         # index tile
                pl.BlockSpec((h_pad, t_pad), lambda i: (0, 0)),  # resident table
            ],
            out_specs=pl.BlockSpec((h_pad, tn), lambda i: (0, i)),
        ),
        compiler_params=pltpu.CompilerParams(
            dimension_semantics=("parallel",),
            vmem_limit_bytes=32 << 20,
        ),
        cost_estimate=cost,
    )(idx, table_t)

    # Drop head/column padding, then (H, N*N) -> (H, N, N): pure reshape.
    return out[:num_heads, :nn2].reshape(num_heads, n, n)


def build_relative_position_index(region_size):
    """Exactly mirrors the index construction in RPE.__init__ (numpy)."""
    rh, rw = region_size
    coords_h = np.arange(rh)
    coords_w = np.arange(rw)
    coords = np.stack(np.meshgrid(coords_h, coords_w, indexing="ij"))     # (2, Rh, Rw)
    coords_flatten = coords.reshape(2, -1)                                # (2, N)
    relative_coords = coords_flatten[:, :, None] - coords_flatten[:, None, :]
    relative_coords = relative_coords.transpose(1, 2, 0).copy()           # (N, N, 2)
    relative_coords[:, :, 0] += rh - 1
    relative_coords[:, :, 1] += rw - 1
    relative_coords[:, :, 0] *= 2 * rw - 1
    return relative_coords.sum(-1).astype(np.int32)                       # (N, N)


if __name__ == "__main__":
    num_heads = 8
    region_size = (8, 8)
    rh, rw = region_size
    n = rh * rw
    t = (2 * rh - 1) * (2 * rw - 1)

    key = jax.random.PRNGKey(0)
    k_table, k_x = jax.random.split(key)

    # trunc_normal_(std=0.02) equivalent, deterministic.
    bias_table = (jax.random.truncated_normal(k_table, -2.0, 2.0,
                                              (t, num_heads), jnp.float32) * 0.02)
    rel_pos_index = build_relative_position_index(region_size)  # static numpy buffer

    # x is accepted for signature parity (shape chosen as attention logits
    # (batch, heads, N, N)); it does not affect the implementable output.
    x = jax.random.normal(k_x, (2, num_heads, n, n), jnp.float32)

    out = rpe_forward(x, bias_table, rel_pos_index, region_size, num_heads)
    out = jax.block_until_ready(out)

    # Pure-JAX reference of the same gather/permute.
    ref = jnp.transpose(
        bias_table[jnp.asarray(rel_pos_index).reshape(-1)].reshape(n, n, num_heads),
        (2, 0, 1))
    assert out.shape == (num_heads, n, n), out.shape
    np.testing.assert_allclose(np.asarray(out), np.asarray(ref), rtol=1e-6, atol=1e-6)

    print("KERNEL_OK")
</pallas_src>

<mosaic_0001>
module attributes {stable_mosaic.version = 11 : i64} {
  func.func @rpe_gather_kernel(%arg0: i32, %arg1: memref<1x4096xi32, #tpu.memory_space<vmem>>, %arg2: memref<8x256xf32, #tpu.memory_space<vmem>>, %arg3: memref<8x4096xf32, #tpu.memory_space<vmem>>) attributes {dimension_semantics = [#tpu.dimension_semantics<parallel>], iteration_bounds = array<i64: 1>, scalar_prefetch = 0 : i64, scratch_operands = 0 : i64, tpu.core_type = #tpu.core_type<tc>, window_params = [{transform_indices = @transform_0, window_bounds = array<i64: 1, 4096>}, {pipeline_mode = #tpu.pipeline_mode<synchronous>, transform_indices = @transform_1, window_bounds = array<i64: 8, 256>}, {transform_indices = @transform_2, window_bounds = array<i64: 8, 4096>}]} {
    %c0 = arith.constant 0 : index
    %c0_0 = arith.constant 0 : index
    %0 = vector.load %arg1[%c0, %c0_0] : memref<1x4096xi32, #tpu.memory_space<vmem>>, vector<1x4096xi32>
    %1 = tpu.iota {dimensions = array<i32: 0>} : vector<256x4096xi32>
    %2 = vector.broadcast %0 : vector<1x4096xi32> to vector<256x4096xi32>
    %3 = arith.cmpi eq, %1, %2 : vector<256x4096xi32>
    %4 = arith.extui %3 : vector<256x4096xi1> to vector<256x4096xi32>
    %5 = arith.sitofp %4 : vector<256x4096xi32> to vector<256x4096xf32>
    %c0_1 = arith.constant 0 : index
    %c0_2 = arith.constant 0 : index
    %6 = vector.load %arg2[%c0_1, %c0_2] : memref<8x256xf32, #tpu.memory_space<vmem>>, vector<8x256xf32>
    %cst = arith.constant dense<0.000000e+00> : vector<8x4096xf32>
    %7 = tpu.matmul %6, %5, %cst {dimension_numbers = #tpu.dot_dimension_numbers<[1], [0], [0], [1], [0, 0, 1, 1], [], []>} : vector<8x256xf32>, vector<256x4096xf32>, vector<8x4096xf32> -> vector<8x4096xf32>
    %c0_3 = arith.constant 0 : index
    %c0_4 = arith.constant 0 : index
    %8 = vector.load %arg3[%c0_3, %c0_4] : memref<8x4096xf32, #tpu.memory_space<vmem>>, vector<8x4096xf32>
    tpu.vector_store %arg3[%c0_3, %c0_4], %7 {strides = array<i32>} : memref<8x4096xf32, #tpu.memory_space<vmem>>, vector<8x4096xf32>,
    return
  }
  func.func @transform_0(%arg0: i32) -> (i32, i32) {
    %c0_i32 = arith.constant 0 : i32
    %c0_i32_0 = arith.constant 0 : i32
    return %c0_i32, %arg0 : i32, i32
  }
  func.func @transform_1(%arg0: i32) -> (i32, i32) {
    %c0_i32 = arith.constant 0 : i32
    %c0_i32_0 = arith.constant 0 : i32
    %c0_i32_1 = arith.constant 0 : i32
    return %c0_i32, %c0_i32_0 : i32, i32
  }
  func.func @transform_2(%arg0: i32) -> (i32, i32) {
    %c0_i32 = arith.constant 0 : i32
    %c0_i32_0 = arith.constant 0 : i32
    return %c0_i32, %arg0 : i32, i32
  }
}

</mosaic_0001>

<bundles_post_ra>
// kernel: tpu_custom_call.1
= control target key start
LH: loop header
LB: loop body
LE: loop exit
PB: predicated region body
PF: predicated region fallthrough
CT: control target
= control target key end

     0   :  { %7 = vsyncpa [#allocation3], 0  ;;  %s10028_s0 = inlined_call_operand.hbm [shape: s32[1,4096], index: 0, kind: input, shape index: {}]   ;;  %s10029_s1 = inlined_call_operand.hbm [shape: f32[8,256], index: 1, kind: input, shape index: {}]   ;;  %s10030_s2 = inlined_call_operand.hbm [shape: f32[8,4096], index: 2, kind: output, shape index: {}]  }
   0x1   :  { %8 = vsyncpa [#allocation6], 0 }
   0x2   :  { %9 = vsyncpa [#allocation4], 0  ;;  %s15_s11 = sshll.u32 %s10028_s0, 4  ;;  %s6649_s12 = smov [#allocation2]   ;;  %s16_s11 = int_to_ptr.hbm [resolvable:$true] %s15_s11 }
   0x3   :  { %s17_s13 = sshll.u32 %s6649_s12, 4  ;;  %s26_s16 = sshll.u32 %s10029_s1, 4  ;;  %s18_s13 = int_to_ptr.vmem [resolvable:$true] %s17_s13  ;;  %s27_s16 = int_to_ptr.hbm [resolvable:$true] %s26_s16 }
   0x4   :  { %20 = dma.hbm_to_vmem [thread:$0]  %s16_s11, 512, %s18_s13, [#allocation3]  }
   0x5   :  { %s6650_s17 = smov [#allocation5]  }
   0x6   :  { %s28_s18 = sshll.u32 %s6650_s17, 4  ;;  %s29_s18 = int_to_ptr.vmem [resolvable:$true] %s28_s18 }
   0x7   :  { %31 = dma.hbm_to_vmem [thread:$0]  %s27_s16, 256, %s29_s18, [#allocation6]  }
   0x8   :  { %6643 = dma.done.wait [#allocation3], 512  }
   0x9   :  { %6644 = vsyncadd [#allocation3], 4294966784 }
   0xa   :  { %6645 = dma.done.wait [#allocation6], 256  }
   0xb   :  { %6646 = vsyncadd [#allocation6], 4294967040  ;;  %v44_v0 = vlaneseq  ;;  %v6688_v6 = vld [vmem:[#allocation2] sm:$0xff]  ;;  %v6651_v13 = vmov 1.0   ;;  %v7151_v41 = vld [vmem:[#allocation5 + $0x8] sm:$0xff]  ;;  %s6652_s0 = smov [#allocation7]  }
   0xc   :  { %v6691_v7 = vperm.slane %v6688_v6, 1  ;;  %v6700_v10 = vperm.slane %v6688_v6, 0  ;;  %v6935_v37 = vperm.slane %v6688_v6, 3  ;;  %v6958_v38 = vperm.slane %v6688_v6, 2  ;;  %v7141_v40 = vld [vmem:[#allocation5] sm:$0xff]  ;;  %v7518_v45 = vld [vmem:[#allocation2 + $0x8] sm:$0xff] }
   0xd   :  { %v6674_v1 = vshrl.u32 %v44_v0, 7  ;;  %v7129_v39 = vperm.slane %v6688_v6, 5  ;;  %v7174_v42 = vperm.slane %v6688_v6, 4  ;;  %v7335_v43 = vperm.slane %v6688_v6, 7  ;;  %v7972_v57 = vld [vmem:[#allocation5] sm:$0xff]  ;;  %v7979_v58 = vld [vmem:[#allocation5 + $0x8] sm:$0xff] }
   0xe   :  { %v7376_v44 = vperm.slane %v6688_v6, 6  ;;  %v7539_v46 = vperm.slane %v7518_v45, 1  ;;  %v7580_v47 = vperm.slane %v7518_v45, 0  ;;  %v7741_v48 = vperm.slane %v7518_v45, 3  ;;  %s4500_s1 = sshll.u32 %s6652_s0, 4  ;;  %s4502_s21 = sshll.u32 %s10030_s2, 4  ;;  %s4501_s1 = int_to_ptr.vmem [resolvable:$true] %s4500_s1  ;;  %s4503_s21 = int_to_ptr.hbm [resolvable:$true] %s4502_s21 }
   0xf   :  { %v6677_v2 = vadd.s32 120, %v6674_v1  ;;  %v6680_v3 = vadd.s32 248, %v6674_v1  ;;  %v6683_v4 = vadd.s32 112, %v6674_v1  ;;  %v6686_v5 = vadd.s32 240, %v6674_v1 }
  0x10   :  { %v6694_v8 = vadd.s32 104, %v6674_v1  ;;  %v6697_v9 = vadd.s32 232, %v6674_v1  ;;  %v6703_v11 = vadd.s32 96, %v6674_v1  ;;  %v6706_v12 = vadd.s32 224, %v6674_v1 }
  0x11   :  { %vm590_vm0 = vcmp.eq.s32.totalorder %v6677_v2, %v6691_v7  ;;  %vm1102_vm1 = vcmp.eq.s32.totalorder %v6680_v3, %v6691_v7  ;;  %vm558_vm2 = vcmp.eq.s32.totalorder %v6683_v4, %v6691_v7  ;;  %vm1070_vm3 = vcmp.eq.s32.totalorder %v6686_v5, %v6691_v7 }
  0x12   :  { %5569 = vmatpush.msk.msra.mxu2 %vm590_vm0, %v6651_v13  ;;  %5585 = vmatpush.msk.msra.mxu3 %vm1102_vm1, %v6651_v13  ;;  %vm589_vm4 = vcmp.eq.s32.totalorder %v6677_v2, %v6700_v10  ;;  %v6721_v14 = vadd.s32 88, %v6674_v1  ;;  %v6724_v15 = vadd.s32 216, %v6674_v1  ;;  %vm526_vm5 = vcmp.eq.s32.totalorder %v6694_v8, %v6691_v7 }
  0x13   :  { %vm1038_vm6 = vcmp.eq.s32.totalorder %v6697_v9, %v6691_v7  ;;  %5537 = vmatpush.msk.msra.mxu0 %vm589_vm4, %v6651_v13  ;;  %vm1101_vm7 = vcmp.eq.s32.totalorder %v6680_v3, %v6700_v10  ;;  %vm557_vm8 = vcmp.eq.s32.totalorder %v6683_v4, %v6700_v10  ;;  %vm1069_vm9 = vcmp.eq.s32.totalorder %v6686_v5, %v6700_v10 }
  0x14   :  { %5570 = vmatpush.msk.msra.mxu2 %vm558_vm2, %v6651_v13  ;;  %5586 = vmatpush.msk.msra.mxu3 %vm1070_vm3, %v6651_v13  ;;  %v6740_v16 = vadd.s32 80, %v6674_v1  ;;  %vm494_vm10 = vcmp.eq.s32.totalorder %v6703_v11, %v6691_v7  ;;  %vm1006_vm11 = vcmp.eq.s32.totalorder %v6706_v12, %v6691_v7  ;;  %vm525_vm12 = vcmp.eq.s32.totalorder %v6694_v8, %v6700_v10 }
  0x15   :  { %5553 = vmatpush.msk.msra.mxu1 %vm1101_vm7, %v6651_v13  ;;  %5538 = vmatpush.msk.msra.mxu0 %vm557_vm8, %v6651_v13  ;;  %v6751_v17 = vadd.s32 208, %v6674_v1  ;;  %vm1037_vm13 = vcmp.eq.s32.totalorder %v6697_v9, %v6700_v10  ;;  %vm493_vm14 = vcmp.eq.s32.totalorder %v6703_v11, %v6700_v10  ;;  %vm462_vm15 = vcmp.eq.s32.totalorder %v6721_v14, %v6691_v7 }
  0x16   :  { %5571 = vmatpush.msk.msra.mxu2 %vm526_vm5, %v6651_v13  ;;  %5587 = vmatpush.msk.msra.mxu3 %vm1038_vm6, %v6651_v13  ;;  %vm974_vm0 = vcmp.eq.s32.totalorder %v6724_v15, %v6691_v7  ;;  %v6766_v18 = vadd.s32 72, %v6674_v1  ;;  %v6769_v19 = vadd.s32 200, %v6674_v1  ;;  %vm1005_vm1 = vcmp.eq.s32.totalorder %v6706_v12, %v6700_v10 }
  0x17   :  { %5554 = vmatpush.msk.msra.mxu1 %vm1069_vm9, %v6651_v13  ;;  %5539 = vmatpush.msk.msra.mxu0 %vm525_vm12, %v6651_v13  ;;  %vm461_vm2 = vcmp.eq.s32.totalorder %v6721_v14, %v6700_v10  ;;  %vm430_vm3 = vcmp.eq.s32.totalorder %v6740_v16, %v6691_v7  ;;  %vm942_vm4 = vcmp.eq.s32.totalorder %v6751_v17, %v6691_v7  ;;  %v6784_v20 = vadd.s32 64, %v6674_v1 }
  0x18   :  { %5572 = vmatpush.msk.msra.mxu2 %vm494_vm10, %v6651_v13  ;;  %5588 = vmatpush.msk.msra.mxu3 %vm1006_vm11, %v6651_v13  ;;  %v6787_v21 = vadd.s32 192, %v6674_v1  ;;  %vm973_vm5 = vcmp.eq.s32.totalorder %v6724_v15, %v6700_v10  ;;  %vm429_vm6 = vcmp.eq.s32.totalorder %v6740_v16, %v6700_v10  ;;  %vm398_vm7 = vcmp.eq.s32.totalorder %v6766_v18, %v6691_v7 }
  0x19   :  { %5555 = vmatpush.msk.msra.mxu1 %vm1037_vm13, %v6651_v13  ;;  %5540 = vmatpush.msk.msra.mxu0 %vm493_vm14, %v6651_v13  ;;  %vm910_vm8 = vcmp.eq.s32.totalorder %v6769_v19, %v6691_v7  ;;  %v6802_v22 = vadd.s32 56, %v6674_v1  ;;  %v6805_v23 = vadd.s32 184, %v6674_v1  ;;  %vm941_vm9 = vcmp.eq.s32.totalorder %v6751_v17, %v6700_v10 }
  0x1a   :  { %5573 = vmatpush.msk.msra.mxu2 %vm462_vm15, %v6651_v13  ;;  %5589 = vmatpush.msk.msra.mxu3 %vm974_vm0, %v6651_v13  ;;  %vm397_vm10 = vcmp.eq.s32.totalorder %v6766_v18, %v6700_v10  ;;  %vm366_vm11 = vcmp.eq.s32.totalorder %v6784_v20, %v6691_v7  ;;  %vm878_vm12 = vcmp.eq.s32.totalorder %v6787_v21, %v6691_v7  ;;  %v6820_v24 = vadd.s32 48, %v6674_v1 }
  0x1b   :  { %5556 = vmatpush.msk.msra.mxu1 %vm1005_vm1, %v6651_v13  ;;  %5541 = vmatpush.msk.msra.mxu0 %vm461_vm2, %v6651_v13  ;;  %v6823_v25 = vadd.s32 176, %v6674_v1  ;;  %vm909_vm13 = vcmp.eq.s32.totalorder %v6769_v19, %v6700_v10  ;;  %vm365_vm14 = vcmp.eq.s32.totalorder %v6784_v20, %v6700_v10  ;;  %vm334_vm15 = vcmp.eq.s32.totalorder %v6802_v22, %v6691_v7 }
  0x1c   :  { %5574 = vmatpush.msk.msra.mxu2 %vm430_vm3, %v6651_v13  ;;  %5590 = vmatpush.msk.msra.mxu3 %vm942_vm4, %v6651_v13  ;;  %vm846_vm0 = vcmp.eq.s32.totalorder %v6805_v23, %v6691_v7  ;;  %v6838_v26 = vadd.s32 40, %v6674_v1  ;;  %v6841_v27 = vadd.s32 168, %v6674_v1  ;;  %vm877_vm1 = vcmp.eq.s32.totalorder %v6787_v21, %v6700_v10 }
  0x1d   :  { %5557 = vmatpush.msk.msra.mxu1 %vm973_vm5, %v6651_v13  ;;  %5542 = vmatpush.msk.msra.mxu0 %vm429_vm6, %v6651_v13  ;;  %vm333_vm2 = vcmp.eq.s32.totalorder %v6802_v22, %v6700_v10  ;;  %vm302_vm3 = vcmp.eq.s32.totalorder %v6820_v24, %v6691_v7  ;;  %vm814_vm4 = vcmp.eq.s32.totalorder %v6823_v25, %v6691_v7  ;;  %v6856_v28 = vadd.s32 32, %v6674_v1 }
  0x1e   :  { %5575 = vmatpush.msk.msra.mxu2 %vm398_vm7, %v6651_v13  ;;  %5591 = vmatpush.msk.msra.mxu3 %vm910_vm8, %v6651_v13  ;;  %v6859_v29 = vadd.s32 160, %v6674_v1  ;;  %vm845_vm5 = vcmp.eq.s32.totalorder %v6805_v23, %v6700_v10  ;;  %vm301_vm6 = vcmp.eq.s32.totalorder %v6820_v24, %v6700_v10  ;;  %vm270_vm7 = vcmp.eq.s32.totalorder %v6838_v26, %v6691_v7 }
  0x1f   :  { %5558 = vmatpush.msk.msra.mxu1 %vm941_vm9, %v6651_v13  ;;  %5543 = vmatpush.msk.msra.mxu0 %vm397_vm10, %v6651_v13  ;;  %vm782_vm8 = vcmp.eq.s32.totalorder %v6841_v27, %v6691_v7  ;;  %v6874_v30 = vadd.s32 24, %v6674_v1  ;;  %v6877_v31 = vadd.s32 152, %v6674_v1  ;;  %vm813_vm9 = vcmp.eq.s32.totalorder %v6823_v25, %v6700_v10 }
  0x20   :  { %5576 = vmatpush.msk.msra.mxu2 %vm366_vm11, %v6651_v13  ;;  %5592 = vmatpush.msk.msra.mxu3 %vm878_vm12, %v6651_v13  ;;  %vm269_vm10 = vcmp.eq.s32.totalorder %v6838_v26, %v6700_v10  ;;  %vm238_vm11 = vcmp.eq.s32.totalorder %v6856_v28, %v6691_v7  ;;  %vm750_vm12 = vcmp.eq.s32.totalorder %v6859_v29, %v6691_v7  ;;  %v6892_v32 = vadd.s32 16, %v6674_v1 }
  0x21   :  { %5559 = vmatpush.msk.msra.mxu1 %vm909_vm13, %v6651_v13  ;;  %5544 = vmatpush.msk.msra.mxu0 %vm365_vm14, %v6651_v13  ;;  %v6895_v33 = vadd.s32 144, %v6674_v1  ;;  %vm781_vm13 = vcmp.eq.s32.totalorder %v6841_v27, %v6700_v10  ;;  %vm237_vm14 = vcmp.eq.s32.totalorder %v6856_v28, %v6700_v10  ;;  %v6910_v34 = vadd.s32 8, %v6674_v1 }
  0x22   :  { %5577 = vmatpush.msk.msra.mxu2 %vm334_vm15, %v6651_v13  ;;  %5593 = vmatpush.msk.msra.mxu3 %vm846_vm0, %v6651_v13  ;;  %vm206_vm15 = vcmp.eq.s32.totalorder %v6874_v30, %v6691_v7  ;;  %vm718_vm0 = vcmp.eq.s32.totalorder %v6877_v31, %v6691_v7  ;;  %v6913_v35 = vadd.s32 136, %v6674_v1  ;;  %v6928_v36 = vadd.s32 128, %v6674_v1 }
  0x23   :  { %5560 = vmatpush.msk.msra.mxu1 %vm877_vm1, %v6651_v13  ;;  %5545 = vmatpush.msk.msra.mxu0 %vm333_vm2, %v6651_v13  ;;  %vm749_vm1 = vcmp.eq.s32.totalorder %v6859_v29, %v6700_v10  ;;  %vm205_vm2 = vcmp.eq.s32.totalorder %v6874_v30, %v6700_v10  ;;  %v7782_v49 = vperm.slane %v7518_v45, 2  ;;  %v7943_v50 = vperm.slane %v7518_v45, 5 }
  0x24   :  { %5578 = vmatpush.msk.msra.mxu2 %vm302_vm3, %v6651_v13  ;;  %5594 = vmatpush.msk.msra.mxu3 %vm814_vm4, %v6651_v13  ;;  %vm174_vm3 = vcmp.eq.s32.totalorder %v6892_v32, %v6691_v7  ;;  %vm686_vm4 = vcmp.eq.s32.totalorder %v6895_v33, %v6691_v7  ;;  %v7988_v59 = vperm.slane %v7518_v45, 4  ;;  %v8149_v60 = vperm.slane %v7518_v45, 7 }
  0x25   :  { %5561 = vmatpush.msk.msra.mxu1 %vm845_vm5, %v6651_v13  ;;  %5546 = vmatpush.msk.msra.mxu0 %vm301_vm6, %v6651_v13  ;;  %vm717_vm5 = vcmp.eq.s32.totalorder %v6877_v31, %v6700_v10  ;;  %vm173_vm6 = vcmp.eq.s32.totalorder %v6892_v32, %v6700_v10 }
  0x26   :  { %5579 = vmatpush.msk.msra.mxu2 %vm270_vm7, %v6651_v13  ;;  %5595 = vmatpush.msk.msra.mxu3 %vm782_vm8, %v6651_v13  ;;  %vm142_vm7 = vcmp.eq.s32.totalorder %v6910_v34, %v6691_v7  ;;  %vm654_vm8 = vcmp.eq.s32.totalorder %v6913_v35, %v6691_v7 }
  0x27   :  { %5562 = vmatpush.msk.msra.mxu1 %vm813_vm9, %v6651_v13  ;;  %5547 = vmatpush.msk.msra.mxu0 %vm269_vm10, %v6651_v13  ;;  %vm685_vm9 = vcmp.eq.s32.totalorder %v6895_v33, %v6700_v10  ;;  %vm141_vm10 = vcmp.eq.s32.totalorder %v6910_v34, %v6700_v10 }
  0x28   :  { %5580 = vmatpush.msk.msra.mxu2 %vm238_vm11, %v6651_v13  ;;  %5596 = vmatpush.msk.msra.mxu3 %vm750_vm12, %v6651_v13  ;;  %vm110_vm11 = vcmp.eq.s32.totalorder %v6674_v1, %v6691_v7  ;;  %vm622_vm12 = vcmp.eq.s32.totalorder %v6928_v36, %v6691_v7 }
  0x29   :  { %5563 = vmatpush.msk.msra.mxu1 %vm781_vm13, %v6651_v13  ;;  %5548 = vmatpush.msk.msra.mxu0 %vm237_vm14, %v6651_v13  ;;  %vm592_vm13 = vcmp.eq.s32.totalorder %v6677_v2, %v6935_v37  ;;  %vm1104_vm14 = vcmp.eq.s32.totalorder %v6680_v3, %v6935_v37 }
  0x2a   :  { %5581 = vmatpush.msk.msra.mxu2 %vm206_vm15, %v6651_v13  ;;  %5597 = vmatpush.msk.msra.mxu3 %vm718_vm0, %v6651_v13  ;;  %vm653_vm15 = vcmp.eq.s32.totalorder %v6913_v35, %v6700_v10  ;;  %vm109_vm0 = vcmp.eq.s32.totalorder %v6674_v1, %v6700_v10 }
  0x2b   :  { %5564 = vmatpush.msk.msra.mxu1 %vm749_vm1, %v6651_v13  ;;  %5549 = vmatpush.msk.msra.mxu0 %vm205_vm2, %v6651_v13  ;;  %vm560_vm1 = vcmp.eq.s32.totalorder %v6683_v4, %v6935_v37  ;;  %vm1072_vm2 = vcmp.eq.s32.totalorder %v6686_v5, %v6935_v37 }
  0x2c   :  { %5582 = vmatpush.msk.msra.mxu2 %vm174_vm3, %v6651_v13  ;;  %5598 = vmatpush.msk.msra.mxu3 %vm686_vm4, %v6651_v13  ;;  %vm621_vm3 = vcmp.eq.s32.totalorder %v6928_v36, %v6700_v10  ;;  %vm591_vm4 = vcmp.eq.s32.totalorder %v6677_v2, %v6958_v38  ;;  %v8190_v10 = vperm.slane %v7518_v45, 6 }
  0x2d   :  { %5565 = vmatpush.msk.msra.mxu1 %vm717_vm5, %v6651_v13  ;;  %5550 = vmatpush.msk.msra.mxu0 %vm173_vm6, %v6651_v13  ;;  %vm528_vm5 = vcmp.eq.s32.totalorder %v6694_v8, %v6935_v37  ;;  %vm1040_vm6 = vcmp.eq.s32.totalorder %v6697_v9, %v6935_v37 }
  0x2e   :  { %5583 = vmatpush.msk.msra.mxu2 %vm142_vm7, %v6651_v13  ;;  %5599 = vmatpush.msk.msra.mxu3 %vm654_vm8, %v6651_v13  ;;  %vm1103_vm7 = vcmp.eq.s32.totalorder %v6680_v3, %v6958_v38  ;;  %vm559_vm8 = vcmp.eq.s32.totalorder %v6683_v4, %v6958_v38 }
  0x2f   :  { %5566 = vmatpush.msk.msra.mxu1 %vm685_vm9, %v6651_v13  ;;  %5551 = vmatpush.msk.msra.mxu0 %vm141_vm10, %v6651_v13  ;;  %vm496_vm9 = vcmp.eq.s32.totalorder %v6703_v11, %v6935_v37  ;;  %vm1008_vm10 = vcmp.eq.s32.totalorder %v6706_v12, %v6935_v37 }
  0x30   :  { %5584 = vmatpush.msk.msra.mxu2 %vm110_vm11, %v6651_v13  ;;  %5600 = vmatpush.msk.msra.mxu3 %vm622_vm12, %v6651_v13  ;;  %vm1071_vm11 = vcmp.eq.s32.totalorder %v6686_v5, %v6958_v38  ;;  %vm527_vm12 = vcmp.eq.s32.totalorder %v6694_v8, %v6958_v38 }
  0x31   :  { %5567 = vmatpush.msk.msra.mxu1 %vm653_vm15, %v6651_v13  ;;  %5552 = vmatpush.msk.msra.mxu0 %vm109_vm0, %v6651_v13  ;;  %vm1039_vm15 = vcmp.eq.s32.totalorder %v6697_v9, %v6958_v38  ;;  %vm495_vm0 = vcmp.eq.s32.totalorder %v6703_v11, %v6958_v38 }
  0x32   :  { %5633 = vmatpush.msk.msrb.mxu2 %vm592_vm13, %v6651_v13  ;;  %5649 = vmatpush.msk.msrb.mxu3 %vm1104_vm14, %v6651_v13  ;;  %vm464_vm13 = vcmp.eq.s32.totalorder %v6721_v14, %v6935_v37  ;;  %vm976_vm14 = vcmp.eq.s32.totalorder %v6724_v15, %v6935_v37 }
  0x33   :  { %5568 = vmatpush.msk.msra.mxu1 %vm621_vm3, %v6651_v13  ;;  %5601 = vmatpush.msk.msrb.mxu0 %vm591_vm4, %v6651_v13  ;;  %vm1007_vm3 = vcmp.eq.s32.totalorder %v6706_v12, %v6958_v38  ;;  %vm463_vm4 = vcmp.eq.s32.totalorder %v6721_v14, %v6958_v38 }
  0x34   :  { %5634 = vmatpush.msk.msrb.mxu2 %vm560_vm1, %v6651_v13  ;;  %5650 = vmatpush.msk.msrb.mxu3 %vm1072_vm2, %v6651_v13  ;;  %vm432_vm1 = vcmp.eq.s32.totalorder %v6740_v16, %v6935_v37  ;;  %vm944_vm2 = vcmp.eq.s32.totalorder %v6751_v17, %v6935_v37 }
  0x35   :  { %5617 = vmatpush.msk.msrb.mxu1 %vm1103_vm7, %v6651_v13  ;;  %5602 = vmatpush.msk.msrb.mxu0 %vm559_vm8, %v6651_v13  ;;  %vm975_vm7 = vcmp.eq.s32.totalorder %v6724_v15, %v6958_v38  ;;  %vm431_vm8 = vcmp.eq.s32.totalorder %v6740_v16, %v6958_v38 }
  0x36   :  { %5635 = vmatpush.msk.msrb.mxu2 %vm528_vm5, %v6651_v13  ;;  %5651 = vmatpush.msk.msrb.mxu3 %vm1040_vm6, %v6651_v13  ;;  %vm400_vm5 = vcmp.eq.s32.totalorder %v6766_v18, %v6935_v37  ;;  %vm912_vm6 = vcmp.eq.s32.totalorder %v6769_v19, %v6935_v37 }
  0x37   :  { %5618 = vmatpush.msk.msrb.mxu1 %vm1071_vm11, %v6651_v13  ;;  %5603 = vmatpush.msk.msrb.mxu0 %vm527_vm12, %v6651_v13  ;;  %vm943_vm11 = vcmp.eq.s32.totalorder %v6751_v17, %v6958_v38  ;;  %vm399_vm12 = vcmp.eq.s32.totalorder %v6766_v18, %v6958_v38 }
  0x38   :  { %5636 = vmatpush.msk.msrb.mxu2 %vm496_vm9, %v6651_v13  ;;  %5652 = vmatpush.msk.msrb.mxu3 %vm1008_vm10, %v6651_v13  ;;  %vm368_vm9 = vcmp.eq.s32.totalorder %v6784_v20, %v6935_v37  ;;  %vm880_vm10 = vcmp.eq.s32.totalorder %v6787_v21, %v6935_v37 }
  0x39   :  { %5619 = vmatpush.msk.msrb.mxu1 %vm1039_vm15, %v6651_v13  ;;  %5604 = vmatpush.msk.msrb.mxu0 %vm495_vm0, %v6651_v13  ;;  %vm911_vm15 = vcmp.eq.s32.totalorder %v6769_v19, %v6958_v38  ;;  %vm367_vm0 = vcmp.eq.s32.totalorder %v6784_v20, %v6958_v38 }
  0x3a   :  { %5637 = vmatpush.msk.msrb.mxu2 %vm464_vm13, %v6651_v13  ;;  %5653 = vmatpush.msk.msrb.mxu3 %vm976_vm14, %v6651_v13  ;;  %vm336_vm13 = vcmp.eq.s32.totalorder %v6802_v22, %v6935_v37  ;;  %vm848_vm14 = vcmp.eq.s32.totalorder %v6805_v23, %v6935_v37 }
  0x3b   :  { %5620 = vmatpush.msk.msrb.mxu1 %vm1007_vm3, %v6651_v13  ;;  %5605 = vmatpush.msk.msrb.mxu0 %vm463_vm4, %v6651_v13  ;;  %vm879_vm3 = vcmp.eq.s32.totalorder %v6787_v21, %v6958_v38  ;;  %vm335_vm4 = vcmp.eq.s32.totalorder %v6802_v22, %v6958_v38 }
  0x3c   :  { %5638 = vmatpush.msk.msrb.mxu2 %vm432_vm1, %v6651_v13  ;;  %5654 = vmatpush.msk.msrb.mxu3 %vm944_vm2, %v6651_v13  ;;  %vm304_vm1 = vcmp.eq.s32.totalorder %v6820_v24, %v6935_v37  ;;  %vm816_vm2 = vcmp.eq.s32.totalorder %v6823_v25, %v6935_v37 }
  0x3d   :  { %5621 = vmatpush.msk.msrb.mxu1 %vm975_vm7, %v6651_v13  ;;  %5606 = vmatpush.msk.msrb.mxu0 %vm431_vm8, %v6651_v13  ;;  %vm847_vm7 = vcmp.eq.s32.totalorder %v6805_v23, %v6958_v38  ;;  %vm303_vm8 = vcmp.eq.s32.totalorder %v6820_v24, %v6958_v38 }
  0x3e   :  { %5639 = vmatpush.msk.msrb.mxu2 %vm400_vm5, %v6651_v13  ;;  %5655 = vmatpush.msk.msrb.mxu3 %vm912_vm6, %v6651_v13  ;;  %vm272_vm5 = vcmp.eq.s32.totalorder %v6838_v26, %v6935_v37  ;;  %vm784_vm6 = vcmp.eq.s32.totalorder %v6841_v27, %v6935_v37 }
  0x3f   :  { %5622 = vmatpush.msk.msrb.mxu1 %vm943_vm11, %v6651_v13  ;;  %5607 = vmatpush.msk.msrb.mxu0 %vm399_vm12, %v6651_v13  ;;  %vm815_vm11 = vcmp.eq.s32.totalorder %v6823_v25, %v6958_v38  ;;  %vm271_vm12 = vcmp.eq.s32.totalorder %v6838_v26, %v6958_v38 }
  0x40   :  { %5640 = vmatpush.msk.msrb.mxu2 %vm368_vm9, %v6651_v13  ;;  %5656 = vmatpush.msk.msrb.mxu3 %vm880_vm10, %v6651_v13  ;;  %vm240_vm9 = vcmp.eq.s32.totalorder %v6856_v28, %v6935_v37  ;;  %vm752_vm10 = vcmp.eq.s32.totalorder %v6859_v29, %v6935_v37 }
  0x41   :  { %5623 = vmatpush.msk.msrb.mxu1 %vm911_vm15, %v6651_v13  ;;  %5608 = vmatpush.msk.msrb.mxu0 %vm367_vm0, %v6651_v13  ;;  %vm783_vm15 = vcmp.eq.s32.totalorder %v6841_v27, %v6958_v38  ;;  %vm239_vm0 = vcmp.eq.s32.totalorder %v6856_v28, %v6958_v38 }
  0x42   :  { %5641 = vmatpush.msk.msrb.mxu2 %vm336_vm13, %v6651_v13  ;;  %5657 = vmatpush.msk.msrb.mxu3 %vm848_vm14, %v6651_v13  ;;  %vm208_vm13 = vcmp.eq.s32.totalorder %v6874_v30, %v6935_v37  ;;  %vm720_vm14 = vcmp.eq.s32.totalorder %v6877_v31, %v6935_v37 }
  0x43   :  { %5624 = vmatpush.msk.msrb.mxu1 %vm879_vm3, %v6651_v13  ;;  %5609 = vmatpush.msk.msrb.mxu0 %vm335_vm4, %v6651_v13  ;;  %vm751_vm3 = vcmp.eq.s32.totalorder %v6859_v29, %v6958_v38  ;;  %vm207_vm4 = vcmp.eq.s32.totalorder %v6874_v30, %v6958_v38 }
  0x44   :  { %5642 = vmatpush.msk.msrb.mxu2 %vm304_vm1, %v6651_v13  ;;  %5658 = vmatpush.msk.msrb.mxu3 %vm816_vm2, %v6651_v13  ;;  %vm176_vm1 = vcmp.eq.s32.totalorder %v6892_v32, %v6935_v37  ;;  %vm688_vm2 = vcmp.eq.s32.totalorder %v6895_v33, %v6935_v37 }
  0x45   :  { %5625 = vmatpush.msk.msrb.mxu1 %vm847_vm7, %v6651_v13  ;;  %5610 = vmatpush.msk.msrb.mxu0 %vm303_vm8, %v6651_v13  ;;  %vm719_vm7 = vcmp.eq.s32.totalorder %v6877_v31, %v6958_v38  ;;  %vm112_vm8 = vcmp.eq.s32.totalorder %v6674_v1, %v6935_v37 }
  0x46   :  { %5643 = vmatpush.msk.msrb.mxu2 %vm272_vm5, %v6651_v13  ;;  %5659 = vmatpush.msk.msrb.mxu3 %vm784_vm6, %v6651_v13  ;;  %vm144_vm5 = vcmp.eq.s32.totalorder %v6910_v34, %v6935_v37  ;;  %vm656_vm6 = vcmp.eq.s32.totalorder %v6913_v35, %v6935_v37 }
  0x47   :  { %5626 = vmatpush.msk.msrb.mxu1 %vm815_vm11, %v6651_v13  ;;  %5611 = vmatpush.msk.msrb.mxu0 %vm271_vm12, %v6651_v13  ;;  %vm1106_vm11 = vcmp.eq.s32.totalorder %v6680_v3, %v7129_v39  ;;  %vm175_vm12 = vcmp.eq.s32.totalorder %v6892_v32, %v6958_v38 }
  0x48   :  { %5644 = vmatpush.msk.msrb.mxu2 %vm240_vm9, %v6651_v13  ;;  %5660 = vmatpush.msk.msrb.mxu3 %vm752_vm10, %v6651_v13  ;;  %vm624_vm9 = vcmp.eq.s32.totalorder %v6928_v36, %v6935_v37  ;;  %vm594_vm10 = vcmp.eq.s32.totalorder %v6677_v2, %v7129_v39  ;;  %v8332_v37 = vld [vmem:[#allocation2 + $0x10] sm:$0xff] }
  0x49   :  { %5627 = vmatpush.msk.msrb.mxu1 %vm783_vm15, %v6651_v13  ;;  %5612 = vmatpush.msk.msrb.mxu0 %vm239_vm0, %v6651_v13  ;;  %vm1074_vm15 = vcmp.eq.s32.totalorder %v6686_v5, %v7129_v39  ;;  %vm143_vm0 = vcmp.eq.s32.totalorder %v6910_v34, %v6958_v38  ;;  %v8394_v45 = vperm.slane %v8332_v37, 0 }
  0x4a   :  { %5645 = vmatpush.msk.msrb.mxu2 %vm208_vm13, %v6651_v13  ;;  %5661 = vmatpush.msk.msrb.mxu3 %vm720_vm14, %v6651_v13  ;;  %vm687_vm13 = vcmp.eq.s32.totalorder %v6895_v33, %v6958_v38  ;;  %vm562_vm14 = vcmp.eq.s32.totalorder %v6683_v4, %v7129_v39 }
  0x4b   :  { %5628 = vmatpush.msk.msrb.mxu1 %vm751_vm3, %v6651_v13  ;;  %5613 = vmatpush.msk.msrb.mxu0 %vm207_vm4, %v6651_v13  ;;  %vm1042_vm3 = vcmp.eq.s32.totalorder %v6697_v9, %v7129_v39  ;;  %vm111_vm4 = vcmp.eq.s32.totalorder %v6674_v1, %v6958_v38 }
  0x4c   :  { %5646 = vmatpush.msk.msrb.mxu2 %vm176_vm1, %v6651_v13  ;;  %5662 = vmatpush.msk.msrb.mxu3 %vm688_vm2, %v6651_v13  ;;  %vm655_vm1 = vcmp.eq.s32.totalorder %v6913_v35, %v6958_v38  ;;  %vm530_vm2 = vcmp.eq.s32.totalorder %v6694_v8, %v7129_v39 }
  0x4d   :  { %5629 = vmatpush.msk.msrb.mxu1 %vm719_vm7, %v6651_v13  ;;  %3239 = vmatmul.f32.vlgmr.msra.gmra.mxu2 %v7141_v40  ;;  %vm1105_vm7 = vcmp.eq.s32.totalorder %v6680_v3, %v7174_v42 }
  0x4e   :  { %5647 = vmatpush.msk.msrb.mxu2 %vm144_vm5, %v6651_v13  ;;  %5663 = vmatpush.msk.msrb.mxu3 %vm656_vm6, %v6651_v13  ;;  %vm623_vm5 = vcmp.eq.s32.totalorder %v6928_v36, %v6958_v38  ;;  %vm593_vm6 = vcmp.eq.s32.totalorder %v6677_v2, %v7174_v42  ;;  %v8353_v38 = vperm.slane %v8332_v37, 1 }
  0x4f   :  { %3259 = vmatmul.f32.vlgmr.msra.gmra.mxu3 %v7151_v41  ;;  %5614 = vmatpush.msk.msrb.mxu0 %vm175_vm12, %v6651_v13  ;;  %vm466_vm12 = vcmp.eq.s32.totalorder %v6721_v14, %v7129_v39 }
  0x50   :  { %5648 = vmatpush.msk.msrb.mxu2 %vm112_vm8, %v6651_v13  ;;  %5664 = vmatpush.msk.msrb.mxu3 %vm624_vm9, %v6651_v13  ;;  %vm498_vm8 = vcmp.eq.s32.totalorder %v6703_v11, %v7129_v39  ;;  %vm1010_vm9 = vcmp.eq.s32.totalorder %v6706_v12, %v7129_v39 }
  0x51   :  { %5630 = vmatpush.msk.msrb.mxu1 %vm687_vm13, %v6651_v13  ;;  %5615 = vmatpush.msk.msrb.mxu0 %vm143_vm0, %v6651_v13  ;;  %vm978_vm13 = vcmp.eq.s32.totalorder %v6724_v15, %v7129_v39  ;;  %vm434_vm0 = vcmp.eq.s32.totalorder %v6740_v16, %v7129_v39 }
  0x52   :  { %5697 = vmatpush.msk.msra.mxu2 %vm594_vm10, %v6651_v13  ;;  %5713 = vmatpush.msk.msra.mxu3 %vm1106_vm11, %v6651_v13  ;;  %vm561_vm10 = vcmp.eq.s32.totalorder %v6683_v4, %v7174_v42  ;;  %vm1073_vm11 = vcmp.eq.s32.totalorder %v6686_v5, %v7174_v42 }
  0x53   :  { %5631 = vmatpush.msk.msrb.mxu1 %vm655_vm1, %v6651_v13  ;;  %5616 = vmatpush.msk.msrb.mxu0 %vm111_vm4, %v6651_v13  ;;  %vm946_vm1 = vcmp.eq.s32.totalorder %v6751_v17, %v7129_v39  ;;  %vm402_vm4 = vcmp.eq.s32.totalorder %v6766_v18, %v7129_v39 }
  0x54   :  { %5698 = vmatpush.msk.msra.mxu2 %vm562_vm14, %v6651_v13  ;;  %5714 = vmatpush.msk.msra.mxu3 %vm1074_vm15, %v6651_v13  ;;  %vm529_vm14 = vcmp.eq.s32.totalorder %v6694_v8, %v7174_v42  ;;  %vm1041_vm15 = vcmp.eq.s32.totalorder %v6697_v9, %v7174_v42 }
  0x55   :  { %5632 = vmatpush.msk.msrb.mxu1 %vm623_vm5, %v6651_v13  ;;  %3199 = vmatmul.f32.vlgmr.msra.gmra.mxu0 %v7141_v40  ;;  %vm914_vm5 = vcmp.eq.s32.totalorder %v6769_v19, %v7129_v39 }
  0x56   :  { %5699 = vmatpush.msk.msra.mxu2 %vm530_vm2, %v6651_v13  ;;  %5715 = vmatpush.msk.msra.mxu3 %vm1042_vm3, %v6651_v13  ;;  %vm497_vm2 = vcmp.eq.s32.totalorder %v6703_v11, %v7174_v42  ;;  %vm1009_vm3 = vcmp.eq.s32.totalorder %v6706_v12, %v7174_v42 }
  0x57   :  { %3219 = vmatmul.f32.vlgmr.msra.gmra.mxu1 %v7151_v41  ;;  %5665 = vmatpush.msk.msra.mxu0 %vm593_vm6, %v6651_v13  ;;  %vm465_vm6 = vcmp.eq.s32.totalorder %v6721_v14, %v7174_v42 }
  0x58   :  { %5681 = vmatpush.msk.msra.mxu1 %vm1105_vm7, %v6651_v13  ;;  %5700 = vmatpush.msk.msra.mxu2 %vm498_vm8, %v6651_v13  ;;  %vm977_vm7 = vcmp.eq.s32.totalorder %v6724_v15, %v7174_v42  ;;  %vm370_vm8 = vcmp.eq.s32.totalorder %v6784_v20, %v7129_v39 }
  0x59   :  { %5716 = vmatpush.msk.msra.mxu3 %vm1010_vm9, %v6651_v13  ;;  %5666 = vmatpush.msk.msra.mxu0 %vm561_vm10, %v6651_v13  ;;  %vm882_vm9 = vcmp.eq.s32.totalorder %v6787_v21, %v7129_v39  ;;  %vm433_vm10 = vcmp.eq.s32.totalorder %v6740_v16, %v7174_v42 }
  0x5a   :  { %5682 = vmatpush.msk.msra.mxu1 %vm1073_vm11, %v6651_v13  ;;  %5701 = vmatpush.msk.msra.mxu2 %vm466_vm12, %v6651_v13  ;;  %vm945_vm11 = vcmp.eq.s32.totalorder %v6751_v17, %v7174_v42  ;;  %vm338_vm12 = vcmp.eq.s32.totalorder %v6802_v22, %v7129_v39 }
  0x5b   :  { %5717 = vmatpush.msk.msra.mxu3 %vm978_vm13, %v6651_v13  ;;  %5667 = vmatpush.msk.msra.mxu0 %vm529_vm14, %v6651_v13  ;;  %vm850_vm13 = vcmp.eq.s32.totalorder %v6805_v23, %v7129_v39  ;;  %vm401_vm14 = vcmp.eq.s32.totalorder %v6766_v18, %v7174_v42 }
  0x5c   :  { %5683 = vmatpush.msk.msra.mxu1 %vm1041_vm15, %v6651_v13  ;;  %5702 = vmatpush.msk.msra.mxu2 %vm434_vm0, %v6651_v13  ;;  %vm913_vm15 = vcmp.eq.s32.totalorder %v6769_v19, %v7174_v42  ;;  %vm306_vm0 = vcmp.eq.s32.totalorder %v6820_v24, %v7129_v39 }
  0x5d   :  { %5718 = vmatpush.msk.msra.mxu3 %vm946_vm1, %v6651_v13  ;;  %5668 = vmatpush.msk.msra.mxu0 %vm497_vm2, %v6651_v13  ;;  %vm818_vm1 = vcmp.eq.s32.totalorder %v6823_v25, %v7129_v39  ;;  %vm369_vm2 = vcmp.eq.s32.totalorder %v6784_v20, %v7174_v42 }
  0x5e   :  { %5684 = vmatpush.msk.msra.mxu1 %vm1009_vm3, %v6651_v13  ;;  %5703 = vmatpush.msk.msra.mxu2 %vm402_vm4, %v6651_v13  ;;  %vm881_vm3 = vcmp.eq.s32.totalorder %v6787_v21, %v7174_v42  ;;  %vm274_vm4 = vcmp.eq.s32.totalorder %v6838_v26, %v7129_v39 }
  0x5f   :  { %5719 = vmatpush.msk.msra.mxu3 %vm914_vm5, %v6651_v13  ;;  %5669 = vmatpush.msk.msra.mxu0 %vm465_vm6, %v6651_v13  ;;  %vm786_vm5 = vcmp.eq.s32.totalorder %v6841_v27, %v7129_v39  ;;  %vm337_vm6 = vcmp.eq.s32.totalorder %v6802_v22, %v7174_v42 }
  0x60   :  { %5685 = vmatpush.msk.msra.mxu1 %vm977_vm7, %v6651_v13  ;;  %5704 = vmatpush.msk.msra.mxu2 %vm370_vm8, %v6651_v13  ;;  %vm849_vm7 = vcmp.eq.s32.totalorder %v6805_v23, %v7174_v42  ;;  %vm242_vm8 = vcmp.eq.s32.totalorder %v6856_v28, %v7129_v39 }
  0x61   :  { %5720 = vmatpush.msk.msra.mxu3 %vm882_vm9, %v6651_v13  ;;  %5670 = vmatpush.msk.msra.mxu0 %vm433_vm10, %v6651_v13  ;;  %vm754_vm9 = vcmp.eq.s32.totalorder %v6859_v29, %v7129_v39  ;;  %vm305_vm10 = vcmp.eq.s32.totalorder %v6820_v24, %v7174_v42 }
  0x62   :  { %5686 = vmatpush.msk.msra.mxu1 %vm945_vm11, %v6651_v13  ;;  %5705 = vmatpush.msk.msra.mxu2 %vm338_vm12, %v6651_v13  ;;  %vm817_vm11 = vcmp.eq.s32.totalorder %v6823_v25, %v7174_v42  ;;  %vm210_vm12 = vcmp.eq.s32.totalorder %v6874_v30, %v7129_v39 }
  0x63   :  { %5721 = vmatpush.msk.msra.mxu3 %vm850_vm13, %v6651_v13  ;;  %5671 = vmatpush.msk.msra.mxu0 %vm401_vm14, %v6651_v13  ;;  %vm722_vm13 = vcmp.eq.s32.totalorder %v6877_v31, %v7129_v39  ;;  %vm273_vm14 = vcmp.eq.s32.totalorder %v6838_v26, %v7174_v42 }
  0x64   :  { %5687 = vmatpush.msk.msra.mxu1 %vm913_vm15, %v6651_v13  ;;  %5706 = vmatpush.msk.msra.mxu2 %vm306_vm0, %v6651_v13  ;;  %vm785_vm15 = vcmp.eq.s32.totalorder %v6841_v27, %v7174_v42  ;;  %vm178_vm0 = vcmp.eq.s32.totalorder %v6892_v32, %v7129_v39 }
  0x65   :  { %5722 = vmatpush.msk.msra.mxu3 %vm818_vm1, %v6651_v13  ;;  %5672 = vmatpush.msk.msra.mxu0 %vm369_vm2, %v6651_v13  ;;  %vm690_vm1 = vcmp.eq.s32.totalorder %v6895_v33, %v7129_v39  ;;  %vm241_vm2 = vcmp.eq.s32.totalorder %v6856_v28, %v7174_v42 }
  0x66   :  { %5688 = vmatpush.msk.msra.mxu1 %vm881_vm3, %v6651_v13  ;;  %5707 = vmatpush.msk.msra.mxu2 %vm274_vm4, %v6651_v13  ;;  %vm753_vm3 = vcmp.eq.s32.totalorder %v6859_v29, %v7174_v42  ;;  %vm146_vm4 = vcmp.eq.s32.totalorder %v6910_v34, %v7129_v39 }
  0x67   :  { %5723 = vmatpush.msk.msra.mxu3 %vm786_vm5, %v6651_v13  ;;  %5673 = vmatpush.msk.msra.mxu0 %vm337_vm6, %v6651_v13  ;;  %vm658_vm5 = vcmp.eq.s32.totalorder %v6913_v35, %v7129_v39  ;;  %vm209_vm6 = vcmp.eq.s32.totalorder %v6874_v30, %v7174_v42 }
  0x68   :  { %5689 = vmatpush.msk.msra.mxu1 %vm849_vm7, %v6651_v13  ;;  %5708 = vmatpush.msk.msra.mxu2 %vm242_vm8, %v6651_v13  ;;  %vm721_vm7 = vcmp.eq.s32.totalorder %v6877_v31, %v7174_v42  ;;  %vm114_vm8 = vcmp.eq.s32.totalorder %v6674_v1, %v7129_v39 }
  0x69   :  { %5724 = vmatpush.msk.msra.mxu3 %vm754_vm9, %v6651_v13  ;;  %5674 = vmatpush.msk.msra.mxu0 %vm305_vm10, %v6651_v13  ;;  %vm626_vm9 = vcmp.eq.s32.totalorder %v6928_v36, %v7129_v39  ;;  %vm596_vm10 = vcmp.eq.s32.totalorder %v6677_v2, %v7335_v43 }
  0x6a   :  { %5690 = vmatpush.msk.msra.mxu1 %vm817_vm11, %v6651_v13  ;;  %5709 = vmatpush.msk.msra.mxu2 %vm210_vm12, %v6651_v13  ;;  %vm1108_vm11 = vcmp.eq.s32.totalorder %v6680_v3, %v7335_v43  ;;  %vm177_vm12 = vcmp.eq.s32.totalorder %v6892_v32, %v7174_v42 }
  0x6b   :  { %5725 = vmatpush.msk.msra.mxu3 %vm722_vm13, %v6651_v13  ;;  %5675 = vmatpush.msk.msra.mxu0 %vm273_vm14, %v6651_v13  ;;  %vm689_vm13 = vcmp.eq.s32.totalorder %v6895_v33, %v7174_v42  ;;  %vm564_vm14 = vcmp.eq.s32.totalorder %v6683_v4, %v7335_v43 }
  0x6c   :  { %5691 = vmatpush.msk.msra.mxu1 %vm785_vm15, %v6651_v13  ;;  %5710 = vmatpush.msk.msra.mxu2 %vm178_vm0, %v6651_v13  ;;  %vm1076_vm15 = vcmp.eq.s32.totalorder %v6686_v5, %v7335_v43  ;;  %vm145_vm0 = vcmp.eq.s32.totalorder %v6910_v34, %v7174_v42 }
  0x6d   :  { %5726 = vmatpush.msk.msra.mxu3 %vm690_vm1, %v6651_v13  ;;  %5676 = vmatpush.msk.msra.mxu0 %vm241_vm2, %v6651_v13  ;;  %vm657_vm1 = vcmp.eq.s32.totalorder %v6913_v35, %v7174_v42  ;;  %vm532_vm2 = vcmp.eq.s32.totalorder %v6694_v8, %v7335_v43 }
  0x6e   :  { %5692 = vmatpush.msk.msra.mxu1 %vm753_vm3, %v6651_v13  ;;  %5711 = vmatpush.msk.msra.mxu2 %vm146_vm4, %v6651_v13  ;;  %vm1044_vm3 = vcmp.eq.s32.totalorder %v6697_v9, %v7335_v43  ;;  %vm113_vm4 = vcmp.eq.s32.totalorder %v6674_v1, %v7174_v42 }
  0x6f   :  { %5727 = vmatpush.msk.msra.mxu3 %vm658_vm5, %v6651_v13  ;;  %5677 = vmatpush.msk.msra.mxu0 %vm209_vm6, %v6651_v13  ;;  %vm625_vm5 = vcmp.eq.s32.totalorder %v6928_v36, %v7174_v42  ;;  %vm595_vm6 = vcmp.eq.s32.totalorder %v6677_v2, %v7376_v44 }
  0x70   :  { %5693 = vmatpush.msk.msra.mxu1 %vm721_vm7, %v6651_v13  ;;  %5712 = vmatpush.msk.msra.mxu2 %vm114_vm8, %v6651_v13  ;;  %vm1107_vm7 = vcmp.eq.s32.totalorder %v6680_v3, %v7376_v44  ;;  %vm500_vm8 = vcmp.eq.s32.totalorder %v6703_v11, %v7335_v43 }
  0x71   :  { %5728 = vmatpush.msk.msra.mxu3 %vm626_vm9, %v6651_v13  ;;  %3319 = vmatmul.f32.vlgmr.msrb.gmra.mxu2 %v7141_v40  ;;  %vm1012_vm9 = vcmp.eq.s32.totalorder %v6706_v12, %v7335_v43 }
  0x72   :  { %3339 = vmatmul.f32.vlgmr.msrb.gmra.mxu3 %v7151_v41  ;;  %5761 = vmatpush.msk.msrb.mxu2 %vm596_vm10, %v6651_v13  ;;  %vm563_vm10 = vcmp.eq.s32.totalorder %v6683_v4, %v7376_v44 }
  0x73   :  { %5777 = vmatpush.msk.msrb.mxu3 %vm1108_vm11, %v6651_v13  ;;  %5678 = vmatpush.msk.msra.mxu0 %vm177_vm12, %v6651_v13  ;;  %vm1075_vm11 = vcmp.eq.s32.totalorder %v6686_v5, %v7376_v44  ;;  %vm468_vm12 = vcmp.eq.s32.totalorder %v6721_v14, %v7335_v43 }
  0x74   :  { %5694 = vmatpush.msk.msra.mxu1 %vm689_vm13, %v6651_v13  ;;  %5762 = vmatpush.msk.msrb.mxu2 %vm564_vm14, %v6651_v13  ;;  %vm980_vm13 = vcmp.eq.s32.totalorder %v6724_v15, %v7335_v43  ;;  %vm531_vm14 = vcmp.eq.s32.totalorder %v6694_v8, %v7376_v44 }
  0x75   :  { %5778 = vmatpush.msk.msrb.mxu3 %vm1076_vm15, %v6651_v13  ;;  %5679 = vmatpush.msk.msra.mxu0 %vm145_vm0, %v6651_v13  ;;  %vm1043_vm15 = vcmp.eq.s32.totalorder %v6697_v9, %v7376_v44  ;;  %vm436_vm0 = vcmp.eq.s32.totalorder %v6740_v16, %v7335_v43 }
  0x76   :  { %5695 = vmatpush.msk.msra.mxu1 %vm657_vm1, %v6651_v13  ;;  %5763 = vmatpush.msk.msrb.mxu2 %vm532_vm2, %v6651_v13  ;;  %vm948_vm1 = vcmp.eq.s32.totalorder %v6751_v17, %v7335_v43  ;;  %vm499_vm2 = vcmp.eq.s32.totalorder %v6703_v11, %v7376_v44 }
  0x77   :  { %5779 = vmatpush.msk.msrb.mxu3 %vm1044_vm3, %v6651_v13  ;;  %5680 = vmatpush.msk.msra.mxu0 %vm113_vm4, %v6651_v13  ;;  %vm1011_vm3 = vcmp.eq.s32.totalorder %v6706_v12, %v7376_v44  ;;  %vm404_vm4 = vcmp.eq.s32.totalorder %v6766_v18, %v7335_v43 }
  0x78   :  { %5696 = vmatpush.msk.msra.mxu1 %vm625_vm5, %v6651_v13  ;;  %3279 = vmatmul.f32.vlgmr.msrb.gmra.mxu0 %v7141_v40  ;;  %vm916_vm5 = vcmp.eq.s32.totalorder %v6769_v19, %v7335_v43 }
  0x79   :  { %3299 = vmatmul.f32.vlgmr.msrb.gmra.mxu1 %v7151_v41  ;;  %5729 = vmatpush.msk.msrb.mxu0 %vm595_vm6, %v6651_v13  ;;  %vm467_vm6 = vcmp.eq.s32.totalorder %v6721_v14, %v7376_v44 }
  0x7a   :  { %5745 = vmatpush.msk.msrb.mxu1 %vm1107_vm7, %v6651_v13  ;;  %5764 = vmatpush.msk.msrb.mxu2 %vm500_vm8, %v6651_v13  ;;  %vm979_vm7 = vcmp.eq.s32.totalorder %v6724_v15, %v7376_v44  ;;  %vm372_vm8 = vcmp.eq.s32.totalorder %v6784_v20, %v7335_v43 }
  0x7b   :  { %5780 = vmatpush.msk.msrb.mxu3 %vm1012_vm9, %v6651_v13  ;;  %5730 = vmatpush.msk.msrb.mxu0 %vm563_vm10, %v6651_v13  ;;  %vm884_vm9 = vcmp.eq.s32.totalorder %v6787_v21, %v7335_v43  ;;  %vm435_vm10 = vcmp.eq.s32.totalorder %v6740_v16, %v7376_v44 }
  0x7c   :  { %5746 = vmatpush.msk.msrb.mxu1 %vm1075_vm11, %v6651_v13  ;;  %5765 = vmatpush.msk.msrb.mxu2 %vm468_vm12, %v6651_v13  ;;  %vm947_vm11 = vcmp.eq.s32.totalorder %v6751_v17, %v7376_v44  ;;  %vm340_vm12 = vcmp.eq.s32.totalorder %v6802_v22, %v7335_v43 }
  0x7d   :  { %5781 = vmatpush.msk.msrb.mxu3 %vm980_vm13, %v6651_v13  ;;  %5731 = vmatpush.msk.msrb.mxu0 %vm531_vm14, %v6651_v13  ;;  %vm852_vm13 = vcmp.eq.s32.totalorder %v6805_v23, %v7335_v43  ;;  %vm403_vm14 = vcmp.eq.s32.totalorder %v6766_v18, %v7376_v44 }
  0x7e   :  { %5747 = vmatpush.msk.msrb.mxu1 %vm1043_vm15, %v6651_v13  ;;  %5766 = vmatpush.msk.msrb.mxu2 %vm436_vm0, %v6651_v13  ;;  %vm915_vm15 = vcmp.eq.s32.totalorder %v6769_v19, %v7376_v44  ;;  %vm308_vm0 = vcmp.eq.s32.totalorder %v6820_v24, %v7335_v43 }
  0x7f   :  { %5782 = vmatpush.msk.msrb.mxu3 %vm948_vm1, %v6651_v13  ;;  %5732 = vmatpush.msk.msrb.mxu0 %vm499_vm2, %v6651_v13  ;;  %vm820_vm1 = vcmp.eq.s32.totalorder %v6823_v25, %v7335_v43  ;;  %vm371_vm2 = vcmp.eq.s32.totalorder %v6784_v20, %v7376_v44 }
  0x80   :  { %5748 = vmatpush.msk.msrb.mxu1 %vm1011_vm3, %v6651_v13  ;;  %5767 = vmatpush.msk.msrb.mxu2 %vm404_vm4, %v6651_v13  ;;  %vm883_vm3 = vcmp.eq.s32.totalorder %v6787_v21, %v7376_v44  ;;  %vm276_vm4 = vcmp.eq.s32.totalorder %v6838_v26, %v7335_v43 }
  0x81   :  { %5783 = vmatpush.msk.msrb.mxu3 %vm916_vm5, %v6651_v13  ;;  %5733 = vmatpush.msk.msrb.mxu0 %vm467_vm6, %v6651_v13  ;;  %vm788_vm5 = vcmp.eq.s32.totalorder %v6841_v27, %v7335_v43  ;;  %vm339_vm6 = vcmp.eq.s32.totalorder %v6802_v22, %v7376_v44 }
  0x82   :  { %5749 = vmatpush.msk.msrb.mxu1 %vm979_vm7, %v6651_v13  ;;  %5768 = vmatpush.msk.msrb.mxu2 %vm372_vm8, %v6651_v13  ;;  %vm851_vm7 = vcmp.eq.s32.totalorder %v6805_v23, %v7376_v44  ;;  %vm244_vm8 = vcmp.eq.s32.totalorder %v6856_v28, %v7335_v43 }
  0x83   :  { %5784 = vmatpush.msk.msrb.mxu3 %vm884_vm9, %v6651_v13  ;;  %5734 = vmatpush.msk.msrb.mxu0 %vm435_vm10, %v6651_v13  ;;  %vm756_vm9 = vcmp.eq.s32.totalorder %v6859_v29, %v7335_v43  ;;  %vm307_vm10 = vcmp.eq.s32.totalorder %v6820_v24, %v7376_v44 }
  0x84   :  { %5750 = vmatpush.msk.msrb.mxu1 %vm947_vm11, %v6651_v13  ;;  %5769 = vmatpush.msk.msrb.mxu2 %vm340_vm12, %v6651_v13  ;;  %vm819_vm11 = vcmp.eq.s32.totalorder %v6823_v25, %v7376_v44  ;;  %vm212_vm12 = vcmp.eq.s32.totalorder %v6874_v30, %v7335_v43 }
  0x85   :  { %5785 = vmatpush.msk.msrb.mxu3 %vm852_vm13, %v6651_v13  ;;  %5735 = vmatpush.msk.msrb.mxu0 %vm403_vm14, %v6651_v13  ;;  %vm724_vm13 = vcmp.eq.s32.totalorder %v6877_v31, %v7335_v43  ;;  %vm275_vm14 = vcmp.eq.s32.totalorder %v6838_v26, %v7376_v44 }
  0x86   :  { %5751 = vmatpush.msk.msrb.mxu1 %vm915_vm15, %v6651_v13  ;;  %5770 = vmatpush.msk.msrb.mxu2 %vm308_vm0, %v6651_v13  ;;  %vm787_vm15 = vcmp.eq.s32.totalorder %v6841_v27, %v7376_v44  ;;  %vm180_vm0 = vcmp.eq.s32.totalorder %v6892_v32, %v7335_v43 }
  0x87   :  { %5786 = vmatpush.msk.msrb.mxu3 %vm820_vm1, %v6651_v13  ;;  %5736 = vmatpush.msk.msrb.mxu0 %vm371_vm2, %v6651_v13  ;;  %vm692_vm1 = vcmp.eq.s32.totalorder %v6895_v33, %v7335_v43  ;;  %vm243_vm2 = vcmp.eq.s32.totalorder %v6856_v28, %v7376_v44 }
  0x88   :  { %5752 = vmatpush.msk.msrb.mxu1 %vm883_vm3, %v6651_v13  ;;  %5771 = vmatpush.msk.msrb.mxu2 %vm276_vm4, %v6651_v13  ;;  %vm755_vm3 = vcmp.eq.s32.totalorder %v6859_v29, %v7376_v44  ;;  %vm148_vm4 = vcmp.eq.s32.totalorder %v6910_v34, %v7335_v43 }
  0x89   :  { %5787 = vmatpush.msk.msrb.mxu3 %vm788_vm5, %v6651_v13  ;;  %5737 = vmatpush.msk.msrb.mxu0 %vm339_vm6, %v6651_v13  ;;  %vm660_vm5 = vcmp.eq.s32.totalorder %v6913_v35, %v7335_v43  ;;  %vm211_vm6 = vcmp.eq.s32.totalorder %v6874_v30, %v7376_v44 }
  0x8a   :  { %5753 = vmatpush.msk.msrb.mxu1 %vm851_vm7, %v6651_v13  ;;  %5772 = vmatpush.msk.msrb.mxu2 %vm244_vm8, %v6651_v13  ;;  %vm723_vm7 = vcmp.eq.s32.totalorder %v6877_v31, %v7376_v44  ;;  %vm116_vm8 = vcmp.eq.s32.totalorder %v6674_v1, %v7335_v43 }
  0x8b   :  { %5788 = vmatpush.msk.msrb.mxu3 %vm756_vm9, %v6651_v13  ;;  %5738 = vmatpush.msk.msrb.mxu0 %vm307_vm10, %v6651_v13  ;;  %vm628_vm9 = vcmp.eq.s32.totalorder %v6928_v36, %v7335_v43  ;;  %vm598_vm10 = vcmp.eq.s32.totalorder %v6677_v2, %v7539_v46 }
  0x8c   :  { %5754 = vmatpush.msk.msrb.mxu1 %vm819_vm11, %v6651_v13  ;;  %5773 = vmatpush.msk.msrb.mxu2 %vm212_vm12, %v6651_v13  ;;  %vm1110_vm11 = vcmp.eq.s32.totalorder %v6680_v3, %v7539_v46  ;;  %vm179_vm12 = vcmp.eq.s32.totalorder %v6892_v32, %v7376_v44 }
  0x8d   :  { %5789 = vmatpush.msk.msrb.mxu3 %vm724_vm13, %v6651_v13  ;;  %5739 = vmatpush.msk.msrb.mxu0 %vm275_vm14, %v6651_v13  ;;  %vm691_vm13 = vcmp.eq.s32.totalorder %v6895_v33, %v7376_v44  ;;  %vm566_vm14 = vcmp.eq.s32.totalorder %v6683_v4, %v7539_v46 }
  0x8e   :  { %5755 = vmatpush.msk.msrb.mxu1 %vm787_vm15, %v6651_v13  ;;  %5774 = vmatpush.msk.msrb.mxu2 %vm180_vm0, %v6651_v13  ;;  %vm1078_vm15 = vcmp.eq.s32.totalorder %v6686_v5, %v7539_v46  ;;  %vm147_vm0 = vcmp.eq.s32.totalorder %v6910_v34, %v7376_v44 }
  0x8f   :  { %5790 = vmatpush.msk.msrb.mxu3 %vm692_vm1, %v6651_v13  ;;  %5740 = vmatpush.msk.msrb.mxu0 %vm243_vm2, %v6651_v13  ;;  %vm659_vm1 = vcmp.eq.s32.totalorder %v6913_v35, %v7376_v44  ;;  %vm534_vm2 = vcmp.eq.s32.totalorder %v6694_v8, %v7539_v46 }
  0x90   :  { %5756 = vmatpush.msk.msrb.mxu1 %vm755_vm3, %v6651_v13  ;;  %5775 = vmatpush.msk.msrb.mxu2 %vm148_vm4, %v6651_v13  ;;  %vm1046_vm3 = vcmp.eq.s32.totalorder %v6697_v9, %v7539_v46  ;;  %vm115_vm4 = vcmp.eq.s32.totalorder %v6674_v1, %v7376_v44 }
  0x91   :  { %5791 = vmatpush.msk.msrb.mxu3 %vm660_vm5, %v6651_v13  ;;  %5741 = vmatpush.msk.msrb.mxu0 %vm211_vm6, %v6651_v13  ;;  %vm627_vm5 = vcmp.eq.s32.totalorder %v6928_v36, %v7376_v44  ;;  %vm597_vm6 = vcmp.eq.s32.totalorder %v6677_v2, %v7580_v47 }
  0x92   :  { %5757 = vmatpush.msk.msrb.mxu1 %vm723_vm7, %v6651_v13  ;;  %5776 = vmatpush.msk.msrb.mxu2 %vm116_vm8, %v6651_v13  ;;  %vm1109_vm7 = vcmp.eq.s32.totalorder %v6680_v3, %v7580_v47  ;;  %vm502_vm8 = vcmp.eq.s32.totalorder %v6703_v11, %v7539_v46 }
  0x93   :  { %5792 = vmatpush.msk.msrb.mxu3 %vm628_vm9, %v6651_v13  ;;  %3399 = vmatmul.f32.vlgmr.msra.gmra.mxu2 %v7141_v40  ;;  %vm1014_vm9 = vcmp.eq.s32.totalorder %v6706_v12, %v7539_v46 }
  0x94   :  { %3419 = vmatmul.f32.vlgmr.msra.gmra.mxu3 %v7151_v41  ;;  %5825 = vmatpush.msk.msra.mxu2 %vm598_vm10, %v6651_v13  ;;  %vm565_vm10 = vcmp.eq.s32.totalorder %v6683_v4, %v7580_v47 }
  0x95   :  { %5841 = vmatpush.msk.msra.mxu3 %vm1110_vm11, %v6651_v13  ;;  %5742 = vmatpush.msk.msrb.mxu0 %vm179_vm12, %v6651_v13  ;;  %vm1077_vm11 = vcmp.eq.s32.totalorder %v6686_v5, %v7580_v47  ;;  %vm470_vm12 = vcmp.eq.s32.totalorder %v6721_v14, %v7539_v46 }
  0x96   :  { %5758 = vmatpush.msk.msrb.mxu1 %vm691_vm13, %v6651_v13  ;;  %5826 = vmatpush.msk.msra.mxu2 %vm566_vm14, %v6651_v13  ;;  %vm982_vm13 = vcmp.eq.s32.totalorder %v6724_v15, %v7539_v46  ;;  %vm533_vm14 = vcmp.eq.s32.totalorder %v6694_v8, %v7580_v47 }
  0x97   :  { %5842 = vmatpush.msk.msra.mxu3 %vm1078_vm15, %v6651_v13  ;;  %5743 = vmatpush.msk.msrb.mxu0 %vm147_vm0, %v6651_v13  ;;  %vm1045_vm15 = vcmp.eq.s32.totalorder %v6697_v9, %v7580_v47  ;;  %vm438_vm0 = vcmp.eq.s32.totalorder %v6740_v16, %v7539_v46 }
  0x98   :  { %5759 = vmatpush.msk.msrb.mxu1 %vm659_vm1, %v6651_v13  ;;  %5827 = vmatpush.msk.msra.mxu2 %vm534_vm2, %v6651_v13  ;;  %vm950_vm1 = vcmp.eq.s32.totalorder %v6751_v17, %v7539_v46  ;;  %vm501_vm2 = vcmp.eq.s32.totalorder %v6703_v11, %v7580_v47 }
  0x99   :  { %5843 = vmatpush.msk.msra.mxu3 %vm1046_vm3, %v6651_v13  ;;  %5744 = vmatpush.msk.msrb.mxu0 %vm115_vm4, %v6651_v13  ;;  %vm1013_vm3 = vcmp.eq.s32.totalorder %v6706_v12, %v7580_v47  ;;  %vm406_vm4 = vcmp.eq.s32.totalorder %v6766_v18, %v7539_v46 }
  0x9a   :  { %5760 = vmatpush.msk.msrb.mxu1 %vm627_vm5, %v6651_v13  ;;  %3359 = vmatmul.f32.vlgmr.msra.gmra.mxu0 %v7141_v40  ;;  %vm918_vm5 = vcmp.eq.s32.totalorder %v6769_v19, %v7539_v46 }
  0x9b   :  { %3379 = vmatmul.f32.vlgmr.msra.gmra.mxu1 %v7151_v41  ;;  %5793 = vmatpush.msk.msra.mxu0 %vm597_vm6, %v6651_v13  ;;  %vm469_vm6 = vcmp.eq.s32.totalorder %v6721_v14, %v7580_v47 }
  0x9c   :  { %5809 = vmatpush.msk.msra.mxu1 %vm1109_vm7, %v6651_v13  ;;  %5828 = vmatpush.msk.msra.mxu2 %vm502_vm8, %v6651_v13  ;;  %vm981_vm7 = vcmp.eq.s32.totalorder %v6724_v15, %v7580_v47  ;;  %vm374_vm8 = vcmp.eq.s32.totalorder %v6784_v20, %v7539_v46 }
  0x9d   :  { %5844 = vmatpush.msk.msra.mxu3 %vm1014_vm9, %v6651_v13  ;;  %5794 = vmatpush.msk.msra.mxu0 %vm565_vm10, %v6651_v13  ;;  %vm886_vm9 = vcmp.eq.s32.totalorder %v6787_v21, %v7539_v46  ;;  %vm437_vm10 = vcmp.eq.s32.totalorder %v6740_v16, %v7580_v47 }
  0x9e   :  { %5810 = vmatpush.msk.msra.mxu1 %vm1077_vm11, %v6651_v13  ;;  %5829 = vmatpush.msk.msra.mxu2 %vm470_vm12, %v6651_v13  ;;  %vm949_vm11 = vcmp.eq.s32.totalorder %v6751_v17, %v7580_v47  ;;  %vm342_vm12 = vcmp.eq.s32.totalorder %v6802_v22, %v7539_v46 }
  0x9f   :  { %5845 = vmatpush.msk.msra.mxu3 %vm982_vm13, %v6651_v13  ;;  %5795 = vmatpush.msk.msra.mxu0 %vm533_vm14, %v6651_v13  ;;  %vm854_vm13 = vcmp.eq.s32.totalorder %v6805_v23, %v7539_v46  ;;  %vm405_vm14 = vcmp.eq.s32.totalorder %v6766_v18, %v7580_v47 }
  0xa0   :  { %5811 = vmatpush.msk.msra.mxu1 %vm1045_vm15, %v6651_v13  ;;  %5830 = vmatpush.msk.msra.mxu2 %vm438_vm0, %v6651_v13  ;;  %vm917_vm15 = vcmp.eq.s32.totalorder %v6769_v19, %v7580_v47  ;;  %vm310_vm0 = vcmp.eq.s32.totalorder %v6820_v24, %v7539_v46 }
  0xa1   :  { %5846 = vmatpush.msk.msra.mxu3 %vm950_vm1, %v6651_v13  ;;  %5796 = vmatpush.msk.msra.mxu0 %vm501_vm2, %v6651_v13  ;;  %vm822_vm1 = vcmp.eq.s32.totalorder %v6823_v25, %v7539_v46  ;;  %vm373_vm2 = vcmp.eq.s32.totalorder %v6784_v20, %v7580_v47 }
  0xa2   :  { %5812 = vmatpush.msk.msra.mxu1 %vm1013_vm3, %v6651_v13  ;;  %5831 = vmatpush.msk.msra.mxu2 %vm406_vm4, %v6651_v13  ;;  %vm885_vm3 = vcmp.eq.s32.totalorder %v6787_v21, %v7580_v47  ;;  %vm278_vm4 = vcmp.eq.s32.totalorder %v6838_v26, %v7539_v46 }
  0xa3   :  { %5847 = vmatpush.msk.msra.mxu3 %vm918_vm5, %v6651_v13  ;;  %5797 = vmatpush.msk.msra.mxu0 %vm469_vm6, %v6651_v13  ;;  %vm790_vm5 = vcmp.eq.s32.totalorder %v6841_v27, %v7539_v46  ;;  %vm341_vm6 = vcmp.eq.s32.totalorder %v6802_v22, %v7580_v47 }
  0xa4   :  { %5813 = vmatpush.msk.msra.mxu1 %vm981_vm7, %v6651_v13  ;;  %5832 = vmatpush.msk.msra.mxu2 %vm374_vm8, %v6651_v13  ;;  %vm853_vm7 = vcmp.eq.s32.totalorder %v6805_v23, %v7580_v47  ;;  %vm246_vm8 = vcmp.eq.s32.totalorder %v6856_v28, %v7539_v46 }
  0xa5   :  { %5848 = vmatpush.msk.msra.mxu3 %vm886_vm9, %v6651_v13  ;;  %5798 = vmatpush.msk.msra.mxu0 %vm437_vm10, %v6651_v13  ;;  %vm758_vm9 = vcmp.eq.s32.totalorder %v6859_v29, %v7539_v46  ;;  %vm309_vm10 = vcmp.eq.s32.totalorder %v6820_v24, %v7580_v47 }
  0xa6   :  { %5814 = vmatpush.msk.msra.mxu1 %vm949_vm11, %v6651_v13  ;;  %5833 = vmatpush.msk.msra.mxu2 %vm342_vm12, %v6651_v13  ;;  %vm821_vm11 = vcmp.eq.s32.totalorder %v6823_v25, %v7580_v47  ;;  %vm214_vm12 = vcmp.eq.s32.totalorder %v6874_v30, %v7539_v46 }
  0xa7   :  { %5849 = vmatpush.msk.msra.mxu3 %vm854_vm13, %v6651_v13  ;;  %5799 = vmatpush.msk.msra.mxu0 %vm405_vm14, %v6651_v13  ;;  %vm726_vm13 = vcmp.eq.s32.totalorder %v6877_v31, %v7539_v46  ;;  %vm277_vm14 = vcmp.eq.s32.totalorder %v6838_v26, %v7580_v47 }
  0xa8   :  { %5815 = vmatpush.msk.msra.mxu1 %vm917_vm15, %v6651_v13  ;;  %5834 = vmatpush.msk.msra.mxu2 %vm310_vm0, %v6651_v13  ;;  %vm789_vm15 = vcmp.eq.s32.totalorder %v6841_v27, %v7580_v47  ;;  %vm182_vm0 = vcmp.eq.s32.totalorder %v6892_v32, %v7539_v46 }
  0xa9   :  { %5850 = vmatpush.msk.msra.mxu3 %vm822_vm1, %v6651_v13  ;;  %5800 = vmatpush.msk.msra.mxu0 %vm373_vm2, %v6651_v13  ;;  %vm694_vm1 = vcmp.eq.s32.totalorder %v6895_v33, %v7539_v46  ;;  %vm245_vm2 = vcmp.eq.s32.totalorder %v6856_v28, %v7580_v47 }
  0xaa   :  { %5816 = vmatpush.msk.msra.mxu1 %vm885_vm3, %v6651_v13  ;;  %5835 = vmatpush.msk.msra.mxu2 %vm278_vm4, %v6651_v13  ;;  %vm757_vm3 = vcmp.eq.s32.totalorder %v6859_v29, %v7580_v47  ;;  %vm150_vm4 = vcmp.eq.s32.totalorder %v6910_v34, %v7539_v46 }
  0xab   :  { %5851 = vmatpush.msk.msra.mxu3 %vm790_vm5, %v6651_v13  ;;  %5801 = vmatpush.msk.msra.mxu0 %vm341_vm6, %v6651_v13  ;;  %vm662_vm5 = vcmp.eq.s32.totalorder %v6913_v35, %v7539_v46  ;;  %vm213_vm6 = vcmp.eq.s32.totalorder %v6874_v30, %v7580_v47 }
  0xac   :  { %5817 = vmatpush.msk.msra.mxu1 %vm853_vm7, %v6651_v13  ;;  %5836 = vmatpush.msk.msra.mxu2 %vm246_vm8, %v6651_v13  ;;  %vm725_vm7 = vcmp.eq.s32.totalorder %v6877_v31, %v7580_v47  ;;  %vm118_vm8 = vcmp.eq.s32.totalorder %v6674_v1, %v7539_v46 }
  0xad   :  { %5852 = vmatpush.msk.msra.mxu3 %vm758_vm9, %v6651_v13  ;;  %5802 = vmatpush.msk.msra.mxu0 %vm309_vm10, %v6651_v13  ;;  %vm630_vm9 = vcmp.eq.s32.totalorder %v6928_v36, %v7539_v46  ;;  %vm600_vm10 = vcmp.eq.s32.totalorder %v6677_v2, %v7741_v48  ;;  %v8555_v46 = vperm.slane %v8332_v37, 3 }
  0xae   :  { %5818 = vmatpush.msk.msra.mxu1 %vm821_vm11, %v6651_v13  ;;  %5837 = vmatpush.msk.msra.mxu2 %vm214_vm12, %v6651_v13  ;;  %vm1112_vm11 = vcmp.eq.s32.totalorder %v6680_v3, %v7741_v48  ;;  %vm181_vm12 = vcmp.eq.s32.totalorder %v6892_v32, %v7580_v47 }
  0xaf   :  { %5853 = vmatpush.msk.msra.mxu3 %vm726_vm13, %v6651_v13  ;;  %5803 = vmatpush.msk.msra.mxu0 %vm277_vm14, %v6651_v13  ;;  %vm693_vm13 = vcmp.eq.s32.totalorder %v6895_v33, %v7580_v47  ;;  %vm568_vm14 = vcmp.eq.s32.totalorder %v6683_v4, %v7741_v48 }
  0xb0   :  { %5819 = vmatpush.msk.msra.mxu1 %vm789_vm15, %v6651_v13  ;;  %5838 = vmatpush.msk.msra.mxu2 %vm182_vm0, %v6651_v13  ;;  %vm1080_vm15 = vcmp.eq.s32.totalorder %v6686_v5, %v7741_v48  ;;  %vm149_vm0 = vcmp.eq.s32.totalorder %v6910_v34, %v7580_v47 }
  0xb1   :  { %5854 = vmatpush.msk.msra.mxu3 %vm694_vm1, %v6651_v13  ;;  %5804 = vmatpush.msk.msra.mxu0 %vm245_vm2, %v6651_v13  ;;  %vm661_vm1 = vcmp.eq.s32.totalorder %v6913_v35, %v7580_v47  ;;  %vm536_vm2 = vcmp.eq.s32.totalorder %v6694_v8, %v7741_v48 }
  0xb2   :  { %5820 = vmatpush.msk.msra.mxu1 %vm757_vm3, %v6651_v13  ;;  %5839 = vmatpush.msk.msra.mxu2 %vm150_vm4, %v6651_v13  ;;  %vm1048_vm3 = vcmp.eq.s32.totalorder %v6697_v9, %v7741_v48  ;;  %vm117_vm4 = vcmp.eq.s32.totalorder %v6674_v1, %v7580_v47 }
  0xb3   :  { %5855 = vmatpush.msk.msra.mxu3 %vm662_vm5, %v6651_v13  ;;  %5805 = vmatpush.msk.msra.mxu0 %vm213_vm6, %v6651_v13  ;;  %vm629_vm5 = vcmp.eq.s32.totalorder %v6928_v36, %v7580_v47  ;;  %vm599_vm6 = vcmp.eq.s32.totalorder %v6677_v2, %v7782_v49 }
  0xb4   :  { %5821 = vmatpush.msk.msra.mxu1 %vm725_vm7, %v6651_v13  ;;  %5840 = vmatpush.msk.msra.mxu2 %vm118_vm8, %v6651_v13  ;;  %vm1111_vm7 = vcmp.eq.s32.totalorder %v6680_v3, %v7782_v49  ;;  %vm504_vm8 = vcmp.eq.s32.totalorder %v6703_v11, %v7741_v48 }
  0xb5   :  { %5856 = vmatpush.msk.msra.mxu3 %vm630_vm9, %v6651_v13  ;;  %3479 = vmatmul.f32.vlgmr.msrb.gmra.mxu2 %v7141_v40  ;;  %vm1016_vm9 = vcmp.eq.s32.totalorder %v6706_v12, %v7741_v48 }
  0xb6   :  { %3499 = vmatmul.f32.vlgmr.msrb.gmra.mxu3 %v7151_v41  ;;  %5889 = vmatpush.msk.msrb.mxu2 %vm600_vm10, %v6651_v13  ;;  %vm567_vm10 = vcmp.eq.s32.totalorder %v6683_v4, %v7782_v49 }
  0xb7   :  { %5905 = vmatpush.msk.msrb.mxu3 %vm1112_vm11, %v6651_v13  ;;  %5806 = vmatpush.msk.msra.mxu0 %vm181_vm12, %v6651_v13  ;;  %vm1079_vm11 = vcmp.eq.s32.totalorder %v6686_v5, %v7782_v49  ;;  %vm472_vm12 = vcmp.eq.s32.totalorder %v6721_v14, %v7741_v48 }
  0xb8   :  { %5822 = vmatpush.msk.msra.mxu1 %vm693_vm13, %v6651_v13  ;;  %5890 = vmatpush.msk.msrb.mxu2 %vm568_vm14, %v6651_v13  ;;  %vm984_vm13 = vcmp.eq.s32.totalorder %v6724_v15, %v7741_v48  ;;  %vm535_vm14 = vcmp.eq.s32.totalorder %v6694_v8, %v7782_v49 }
  0xb9   :  { %5906 = vmatpush.msk.msrb.mxu3 %vm1080_vm15, %v6651_v13  ;;  %5807 = vmatpush.msk.msra.mxu0 %vm149_vm0, %v6651_v13  ;;  %vm1047_vm15 = vcmp.eq.s32.totalorder %v6697_v9, %v7782_v49  ;;  %vm440_vm0 = vcmp.eq.s32.totalorder %v6740_v16, %v7741_v48 }
  0xba   :  { %5823 = vmatpush.msk.msra.mxu1 %vm661_vm1, %v6651_v13  ;;  %5891 = vmatpush.msk.msrb.mxu2 %vm536_vm2, %v6651_v13  ;;  %vm952_vm1 = vcmp.eq.s32.totalorder %v6751_v17, %v7741_v48  ;;  %vm503_vm2 = vcmp.eq.s32.totalorder %v6703_v11, %v7782_v49 }
  0xbb   :  { %5907 = vmatpush.msk.msrb.mxu3 %vm1048_vm3, %v6651_v13  ;;  %5808 = vmatpush.msk.msra.mxu0 %vm117_vm4, %v6651_v13  ;;  %vm1015_vm3 = vcmp.eq.s32.totalorder %v6706_v12, %v7782_v49  ;;  %vm408_vm4 = vcmp.eq.s32.totalorder %v6766_v18, %v7741_v48 }
  0xbc   :  { %5824 = vmatpush.msk.msra.mxu1 %vm629_vm5, %v6651_v13  ;;  %3439 = vmatmul.f32.vlgmr.msrb.gmra.mxu0 %v7141_v40  ;;  %vm920_vm5 = vcmp.eq.s32.totalorder %v6769_v19, %v7741_v48 }
  0xbd   :  { %3459 = vmatmul.f32.vlgmr.msrb.gmra.mxu1 %v7151_v41  ;;  %5857 = vmatpush.msk.msrb.mxu0 %vm599_vm6, %v6651_v13  ;;  %vm471_vm6 = vcmp.eq.s32.totalorder %v6721_v14, %v7782_v49 }
  0xbe   :  { %5873 = vmatpush.msk.msrb.mxu1 %vm1111_vm7, %v6651_v13  ;;  %5892 = vmatpush.msk.msrb.mxu2 %vm504_vm8, %v6651_v13  ;;  %vm983_vm7 = vcmp.eq.s32.totalorder %v6724_v15, %v7782_v49  ;;  %vm376_vm8 = vcmp.eq.s32.totalorder %v6784_v20, %v7741_v48 }
  0xbf   :  { %5908 = vmatpush.msk.msrb.mxu3 %vm1016_vm9, %v6651_v13  ;;  %5858 = vmatpush.msk.msrb.mxu0 %vm567_vm10, %v6651_v13  ;;  %vm888_vm9 = vcmp.eq.s32.totalorder %v6787_v21, %v7741_v48  ;;  %vm439_vm10 = vcmp.eq.s32.totalorder %v6740_v16, %v7782_v49 }
  0xc0   :  { %5874 = vmatpush.msk.msrb.mxu1 %vm1079_vm11, %v6651_v13  ;;  %5893 = vmatpush.msk.msrb.mxu2 %vm472_vm12, %v6651_v13  ;;  %vm951_vm11 = vcmp.eq.s32.totalorder %v6751_v17, %v7782_v49  ;;  %vm344_vm12 = vcmp.eq.s32.totalorder %v6802_v22, %v7741_v48 }
  0xc1   :  { %5909 = vmatpush.msk.msrb.mxu3 %vm984_vm13, %v6651_v13  ;;  %5859 = vmatpush.msk.msrb.mxu0 %vm535_vm14, %v6651_v13  ;;  %vm856_vm13 = vcmp.eq.s32.totalorder %v6805_v23, %v7741_v48  ;;  %vm407_vm14 = vcmp.eq.s32.totalorder %v6766_v18, %v7782_v49 }
  0xc2   :  { %5875 = vmatpush.msk.msrb.mxu1 %vm1047_vm15, %v6651_v13  ;;  %5894 = vmatpush.msk.msrb.mxu2 %vm440_vm0, %v6651_v13  ;;  %vm919_vm15 = vcmp.eq.s32.totalorder %v6769_v19, %v7782_v49  ;;  %vm312_vm0 = vcmp.eq.s32.totalorder %v6820_v24, %v7741_v48 }
  0xc3   :  { %5910 = vmatpush.msk.msrb.mxu3 %vm952_vm1, %v6651_v13  ;;  %5860 = vmatpush.msk.msrb.mxu0 %vm503_vm2, %v6651_v13  ;;  %vm824_vm1 = vcmp.eq.s32.totalorder %v6823_v25, %v7741_v48  ;;  %vm375_vm2 = vcmp.eq.s32.totalorder %v6784_v20, %v7782_v49 }
  0xc4   :  { %5876 = vmatpush.msk.msrb.mxu1 %vm1015_vm3, %v6651_v13  ;;  %5895 = vmatpush.msk.msrb.mxu2 %vm408_vm4, %v6651_v13  ;;  %vm887_vm3 = vcmp.eq.s32.totalorder %v6787_v21, %v7782_v49  ;;  %vm280_vm4 = vcmp.eq.s32.totalorder %v6838_v26, %v7741_v48 }
  0xc5   :  { %5911 = vmatpush.msk.msrb.mxu3 %vm920_vm5, %v6651_v13  ;;  %5861 = vmatpush.msk.msrb.mxu0 %vm471_vm6, %v6651_v13  ;;  %vm792_vm5 = vcmp.eq.s32.totalorder %v6841_v27, %v7741_v48  ;;  %vm343_vm6 = vcmp.eq.s32.totalorder %v6802_v22, %v7782_v49 }
  0xc6   :  { %5877 = vmatpush.msk.msrb.mxu1 %vm983_vm7, %v6651_v13  ;;  %5896 = vmatpush.msk.msrb.mxu2 %vm376_vm8, %v6651_v13  ;;  %vm855_vm7 = vcmp.eq.s32.totalorder %v6805_v23, %v7782_v49  ;;  %vm248_vm8 = vcmp.eq.s32.totalorder %v6856_v28, %v7741_v48 }
  0xc7   :  { %5912 = vmatpush.msk.msrb.mxu3 %vm888_vm9, %v6651_v13  ;;  %5862 = vmatpush.msk.msrb.mxu0 %vm439_vm10, %v6651_v13  ;;  %vm760_vm9 = vcmp.eq.s32.totalorder %v6859_v29, %v7741_v48  ;;  %vm311_vm10 = vcmp.eq.s32.totalorder %v6820_v24, %v7782_v49 }
  0xc8   :  { %5878 = vmatpush.msk.msrb.mxu1 %vm951_vm11, %v6651_v13  ;;  %5897 = vmatpush.msk.msrb.mxu2 %vm344_vm12, %v6651_v13  ;;  %vm823_vm11 = vcmp.eq.s32.totalorder %v6823_v25, %v7782_v49  ;;  %vm216_vm12 = vcmp.eq.s32.totalorder %v6874_v30, %v7741_v48 }
  0xc9   :  { %5913 = vmatpush.msk.msrb.mxu3 %vm856_vm13, %v6651_v13  ;;  %5863 = vmatpush.msk.msrb.mxu0 %vm407_vm14, %v6651_v13  ;;  %vm728_vm13 = vcmp.eq.s32.totalorder %v6877_v31, %v7741_v48  ;;  %vm279_vm14 = vcmp.eq.s32.totalorder %v6838_v26, %v7782_v49 }
  0xca   :  { %5879 = vmatpush.msk.msrb.mxu1 %vm919_vm15, %v6651_v13  ;;  %5898 = vmatpush.msk.msrb.mxu2 %vm312_vm0, %v6651_v13  ;;  %vm791_vm15 = vcmp.eq.s32.totalorder %v6841_v27, %v7782_v49  ;;  %vm184_vm0 = vcmp.eq.s32.totalorder %v6892_v32, %v7741_v48 }
  0xcb   :  { %5914 = vmatpush.msk.msrb.mxu3 %vm824_vm1, %v6651_v13  ;;  %5864 = vmatpush.msk.msrb.mxu0 %vm375_vm2, %v6651_v13  ;;  %vm696_vm1 = vcmp.eq.s32.totalorder %v6895_v33, %v7741_v48  ;;  %vm247_vm2 = vcmp.eq.s32.totalorder %v6856_v28, %v7782_v49 }
  0xcc   :  { %5880 = vmatpush.msk.msrb.mxu1 %vm887_vm3, %v6651_v13  ;;  %5899 = vmatpush.msk.msrb.mxu2 %vm280_vm4, %v6651_v13  ;;  %vm759_vm3 = vcmp.eq.s32.totalorder %v6859_v29, %v7782_v49  ;;  %vm152_vm4 = vcmp.eq.s32.totalorder %v6910_v34, %v7741_v48 }
  0xcd   :  { %5915 = vmatpush.msk.msrb.mxu3 %vm792_vm5, %v6651_v13  ;;  %5865 = vmatpush.msk.msrb.mxu0 %vm343_vm6, %v6651_v13  ;;  %vm664_vm5 = vcmp.eq.s32.totalorder %v6913_v35, %v7741_v48  ;;  %vm215_vm6 = vcmp.eq.s32.totalorder %v6874_v30, %v7782_v49 }
  0xce   :  { %5881 = vmatpush.msk.msrb.mxu1 %vm855_vm7, %v6651_v13  ;;  %5900 = vmatpush.msk.msrb.mxu2 %vm248_vm8, %v6651_v13  ;;  %vm727_vm7 = vcmp.eq.s32.totalorder %v6877_v31, %v7782_v49  ;;  %vm120_vm8 = vcmp.eq.s32.totalorder %v6674_v1, %v7741_v48 }
  0xcf   :  { %5916 = vmatpush.msk.msrb.mxu3 %vm760_vm9, %v6651_v13  ;;  %5866 = vmatpush.msk.msrb.mxu0 %vm311_vm10, %v6651_v13  ;;  %vm632_vm9 = vcmp.eq.s32.totalorder %v6928_v36, %v7741_v48  ;;  %vm602_vm10 = vcmp.eq.s32.totalorder %v6677_v2, %v7943_v50 }
  0xd0   :  { %5882 = vmatpush.msk.msrb.mxu1 %vm823_vm11, %v6651_v13  ;;  %5901 = vmatpush.msk.msrb.mxu2 %vm216_vm12, %v6651_v13  ;;  %v3240_v51 = vpop.f32.mrf.mxu2  ;;  %vm1114_vm11 = vcmp.eq.s32.totalorder %v6680_v3, %v7943_v50  ;;  %vm183_vm12 = vcmp.eq.s32.totalorder %v6892_v32, %v7782_v49 }
  0xd1   :  { %5917 = vmatpush.msk.msrb.mxu3 %vm728_vm13, %v6651_v13  ;;  %5867 = vmatpush.msk.msrb.mxu0 %vm279_vm14, %v6651_v13  ;;  %vm695_vm13 = vcmp.eq.s32.totalorder %v6895_v33, %v7782_v49  ;;  %vm570_vm14 = vcmp.eq.s32.totalorder %v6683_v4, %v7943_v50 }
  0xd2   :  { %5883 = vmatpush.msk.msrb.mxu1 %vm791_vm15, %v6651_v13  ;;  %5902 = vmatpush.msk.msrb.mxu2 %vm184_vm0, %v6651_v13  ;;  %v3200_v52 = vpop.f32.mrf.mxu0  ;;  %v3260_v53 = vpop.f32.mrf.mxu3  ;;  %vm1082_vm15 = vcmp.eq.s32.totalorder %v6686_v5, %v7943_v50  ;;  %vm151_vm0 = vcmp.eq.s32.totalorder %v6910_v34, %v7782_v49 }
  0xd3   :  { %5918 = vmatpush.msk.msrb.mxu3 %vm696_vm1, %v6651_v13  ;;  %5868 = vmatpush.msk.msrb.mxu0 %vm247_vm2, %v6651_v13  ;;  %v3261_v55 = vadd.f32 %v3260_v53, %v3240_v51  ;;  %vm663_vm1 = vcmp.eq.s32.totalorder %v6913_v35, %v7782_v49  ;;  %vm538_vm2 = vcmp.eq.s32.totalorder %v6694_v8, %v7943_v50  ;;  %v8596_v53 = vperm.slane %v8332_v37, 2 }
  0xd4   :  { %5884 = vmatpush.msk.msrb.mxu1 %vm759_vm3, %v6651_v13  ;;  %5903 = vmatpush.msk.msrb.mxu2 %vm152_vm4, %v6651_v13  ;;  %v3220_v54 = vpop.f32.mrf.mxu1  ;;  %vm1050_vm3 = vcmp.eq.s32.totalorder %v6697_v9, %v7943_v50  ;;  %vm119_vm4 = vcmp.eq.s32.totalorder %v6674_v1, %v7782_v49 }
  0xd5   :  { %5919 = vmatpush.msk.msrb.mxu3 %vm664_vm5, %v6651_v13  ;;  %5869 = vmatpush.msk.msrb.mxu0 %vm215_vm6, %v6651_v13  ;;  %v3221_v56 = vadd.f32 %v3220_v54, %v3200_v52  ;;  %4464 = vst [vmem:[#allocation7 + $0x8] sm:$0xff] %v3261_v55  ;;  %vm631_vm5 = vcmp.eq.s32.totalorder %v6928_v36, %v7782_v49  ;;  %v8757_v54 = vperm.slane %v8332_v37, 5 }
  0xd6   :  { %5885 = vmatpush.msk.msrb.mxu1 %vm727_vm7, %v6651_v13  ;;  %5904 = vmatpush.msk.msrb.mxu2 %vm120_vm8, %v6651_v13  ;;  %vm601_vm6 = vcmp.eq.s32.totalorder %v6677_v2, %v7988_v59  ;;  %vm1113_vm7 = vcmp.eq.s32.totalorder %v6680_v3, %v7988_v59  ;;  %vm506_vm8 = vcmp.eq.s32.totalorder %v6703_v11, %v7943_v50 }
  0xd7   :  { %5920 = vmatpush.msk.msrb.mxu3 %vm632_vm9, %v6651_v13  ;;  %3559 = vmatmul.f32.vlgmr.msra.gmra.mxu2 %v7972_v57  ;;  %4463 = vst [vmem:[#allocation7] sm:$0xff] %v3221_v56  ;;  %vm1018_vm9 = vcmp.eq.s32.totalorder %v6706_v12, %v7943_v50 }
  0xd8   :  { %3579 = vmatmul.f32.vlgmr.msra.gmra.mxu3 %v7979_v58  ;;  %5953 = vmatpush.msk.msra.mxu2 %vm602_vm10, %v6651_v13  ;;  %vm569_vm10 = vcmp.eq.s32.totalorder %v6683_v4, %v7988_v59 }
  0xd9   :  { %5969 = vmatpush.msk.msra.mxu3 %vm1114_vm11, %v6651_v13  ;;  %5870 = vmatpush.msk.msrb.mxu0 %vm183_vm12, %v6651_v13  ;;  %vm1081_vm11 = vcmp.eq.s32.totalorder %v6686_v5, %v7988_v59  ;;  %vm474_vm12 = vcmp.eq.s32.totalorder %v6721_v14, %v7943_v50 }
  0xda   :  { %5886 = vmatpush.msk.msrb.mxu1 %vm695_vm13, %v6651_v13  ;;  %5954 = vmatpush.msk.msra.mxu2 %vm570_vm14, %v6651_v13  ;;  %vm986_vm13 = vcmp.eq.s32.totalorder %v6724_v15, %v7943_v50  ;;  %vm537_vm14 = vcmp.eq.s32.totalorder %v6694_v8, %v7988_v59 }
  0xdb   :  { %5970 = vmatpush.msk.msra.mxu3 %vm1082_vm15, %v6651_v13  ;;  %5871 = vmatpush.msk.msrb.mxu0 %vm151_vm0, %v6651_v13  ;;  %vm1049_vm15 = vcmp.eq.s32.totalorder %v6697_v9, %v7988_v59  ;;  %vm442_vm0 = vcmp.eq.s32.totalorder %v6740_v16, %v7943_v50 }
  0xdc   :  { %5887 = vmatpush.msk.msrb.mxu1 %vm663_vm1, %v6651_v13  ;;  %5955 = vmatpush.msk.msra.mxu2 %vm538_vm2, %v6651_v13  ;;  %vm954_vm1 = vcmp.eq.s32.totalorder %v6751_v17, %v7943_v50  ;;  %vm505_vm2 = vcmp.eq.s32.totalorder %v6703_v11, %v7988_v59 }
  0xdd   :  { %5971 = vmatpush.msk.msra.mxu3 %vm1050_vm3, %v6651_v13  ;;  %5872 = vmatpush.msk.msrb.mxu0 %vm119_vm4, %v6651_v13  ;;  %vm1017_vm3 = vcmp.eq.s32.totalorder %v6706_v12, %v7988_v59  ;;  %vm410_vm4 = vcmp.eq.s32.totalorder %v6766_v18, %v7943_v50 }
  0xde   :  { %5888 = vmatpush.msk.msrb.mxu1 %vm631_vm5, %v6651_v13  ;;  %3519 = vmatmul.f32.vlgmr.msra.gmra.mxu0 %v7972_v57  ;;  %vm922_vm5 = vcmp.eq.s32.totalorder %v6769_v19, %v7943_v50 }
  0xdf   :  { %3539 = vmatmul.f32.vlgmr.msra.gmra.mxu1 %v7979_v58  ;;  %5921 = vmatpush.msk.msra.mxu0 %vm601_vm6, %v6651_v13  ;;  %vm473_vm6 = vcmp.eq.s32.totalorder %v6721_v14, %v7988_v59 }
  0xe0   :  { %5937 = vmatpush.msk.msra.mxu1 %vm1113_vm7, %v6651_v13  ;;  %5956 = vmatpush.msk.msra.mxu2 %vm506_vm8, %v6651_v13  ;;  %vm985_vm7 = vcmp.eq.s32.totalorder %v6724_v15, %v7988_v59  ;;  %vm378_vm8 = vcmp.eq.s32.totalorder %v6784_v20, %v7943_v50 }
  0xe1   :  { %5972 = vmatpush.msk.msra.mxu3 %vm1018_vm9, %v6651_v13  ;;  %5922 = vmatpush.msk.msra.mxu0 %vm569_vm10, %v6651_v13  ;;  %vm890_vm9 = vcmp.eq.s32.totalorder %v6787_v21, %v7943_v50  ;;  %vm441_vm10 = vcmp.eq.s32.totalorder %v6740_v16, %v7988_v59 }
  0xe2   :  { %5938 = vmatpush.msk.msra.mxu1 %vm1081_vm11, %v6651_v13  ;;  %5957 = vmatpush.msk.msra.mxu2 %vm474_vm12, %v6651_v13  ;;  %vm953_vm11 = vcmp.eq.s32.totalorder %v6751_v17, %v7988_v59  ;;  %vm346_vm12 = vcmp.eq.s32.totalorder %v6802_v22, %v7943_v50 }
  0xe3   :  { %5973 = vmatpush.msk.msra.mxu3 %vm986_vm13, %v6651_v13  ;;  %5923 = vmatpush.msk.msra.mxu0 %vm537_vm14, %v6651_v13  ;;  %vm858_vm13 = vcmp.eq.s32.totalorder %v6805_v23, %v7943_v50  ;;  %vm409_vm14 = vcmp.eq.s32.totalorder %v6766_v18, %v7988_v59 }
  0xe4   :  { %5939 = vmatpush.msk.msra.mxu1 %vm1049_vm15, %v6651_v13  ;;  %5958 = vmatpush.msk.msra.mxu2 %vm442_vm0, %v6651_v13  ;;  %vm921_vm15 = vcmp.eq.s32.totalorder %v6769_v19, %v7988_v59  ;;  %vm314_vm0 = vcmp.eq.s32.totalorder %v6820_v24, %v7943_v50 }
  0xe5   :  { %5974 = vmatpush.msk.msra.mxu3 %vm954_vm1, %v6651_v13  ;;  %5924 = vmatpush.msk.msra.mxu0 %vm505_vm2, %v6651_v13  ;;  %vm826_vm1 = vcmp.eq.s32.totalorder %v6823_v25, %v7943_v50  ;;  %vm377_vm2 = vcmp.eq.s32.totalorder %v6784_v20, %v7988_v59 }
  0xe6   :  { %5940 = vmatpush.msk.msra.mxu1 %vm1017_vm3, %v6651_v13  ;;  %5959 = vmatpush.msk.msra.mxu2 %vm410_vm4, %v6651_v13  ;;  %vm889_vm3 = vcmp.eq.s32.totalorder %v6787_v21, %v7988_v59  ;;  %vm282_vm4 = vcmp.eq.s32.totalorder %v6838_v26, %v7943_v50 }
  0xe7   :  { %5975 = vmatpush.msk.msra.mxu3 %vm922_vm5, %v6651_v13  ;;  %5925 = vmatpush.msk.msra.mxu0 %vm473_vm6, %v6651_v13  ;;  %vm794_vm5 = vcmp.eq.s32.totalorder %v6841_v27, %v7943_v50  ;;  %vm345_vm6 = vcmp.eq.s32.totalorder %v6802_v22, %v7988_v59 }
  0xe8   :  { %5941 = vmatpush.msk.msra.mxu1 %vm985_vm7, %v6651_v13  ;;  %5960 = vmatpush.msk.msra.mxu2 %vm378_vm8, %v6651_v13  ;;  %vm857_vm7 = vcmp.eq.s32.totalorder %v6805_v23, %v7988_v59  ;;  %vm250_vm8 = vcmp.eq.s32.totalorder %v6856_v28, %v7943_v50 }
  0xe9   :  { %5976 = vmatpush.msk.msra.mxu3 %vm890_vm9, %v6651_v13  ;;  %5926 = vmatpush.msk.msra.mxu0 %vm441_vm10, %v6651_v13  ;;  %vm762_vm9 = vcmp.eq.s32.totalorder %v6859_v29, %v7943_v50  ;;  %vm313_vm10 = vcmp.eq.s32.totalorder %v6820_v24, %v7988_v59 }
  0xea   :  { %5942 = vmatpush.msk.msra.mxu1 %vm953_vm11, %v6651_v13  ;;  %5961 = vmatpush.msk.msra.mxu2 %vm346_vm12, %v6651_v13  ;;  %vm825_vm11 = vcmp.eq.s32.totalorder %v6823_v25, %v7988_v59  ;;  %vm218_vm12 = vcmp.eq.s32.totalorder %v6874_v30, %v7943_v50 }
  0xeb   :  { %5977 = vmatpush.msk.msra.mxu3 %vm858_vm13, %v6651_v13  ;;  %5927 = vmatpush.msk.msra.mxu0 %vm409_vm14, %v6651_v13  ;;  %vm730_vm13 = vcmp.eq.s32.totalorder %v6877_v31, %v7943_v50  ;;  %vm281_vm14 = vcmp.eq.s32.totalorder %v6838_v26, %v7988_v59 }
  0xec   :  { %5943 = vmatpush.msk.msra.mxu1 %vm921_vm15, %v6651_v13  ;;  %5962 = vmatpush.msk.msra.mxu2 %vm314_vm0, %v6651_v13  ;;  %vm793_vm15 = vcmp.eq.s32.totalorder %v6841_v27, %v7988_v59  ;;  %vm186_vm0 = vcmp.eq.s32.totalorder %v6892_v32, %v7943_v50 }
  0xed   :  { %5978 = vmatpush.msk.msra.mxu3 %vm826_vm1, %v6651_v13  ;;  %5928 = vmatpush.msk.msra.mxu0 %vm377_vm2, %v6651_v13  ;;  %vm698_vm1 = vcmp.eq.s32.totalorder %v6895_v33, %v7943_v50  ;;  %vm249_vm2 = vcmp.eq.s32.totalorder %v6856_v28, %v7988_v59 }
  0xee   :  { %5944 = vmatpush.msk.msra.mxu1 %vm889_vm3, %v6651_v13  ;;  %5963 = vmatpush.msk.msra.mxu2 %vm282_vm4, %v6651_v13  ;;  %vm761_vm3 = vcmp.eq.s32.totalorder %v6859_v29, %v7988_v59  ;;  %vm154_vm4 = vcmp.eq.s32.totalorder %v6910_v34, %v7943_v50 }
  0xef   :  { %5979 = vmatpush.msk.msra.mxu3 %vm794_vm5, %v6651_v13  ;;  %5929 = vmatpush.msk.msra.mxu0 %vm345_vm6, %v6651_v13  ;;  %vm666_vm5 = vcmp.eq.s32.totalorder %v6913_v35, %v7943_v50  ;;  %vm217_vm6 = vcmp.eq.s32.totalorder %v6874_v30, %v7988_v59 }
  0xf0   :  { %5945 = vmatpush.msk.msra.mxu1 %vm857_vm7, %v6651_v13  ;;  %5964 = vmatpush.msk.msra.mxu2 %vm250_vm8, %v6651_v13  ;;  %vm729_vm7 = vcmp.eq.s32.totalorder %v6877_v31, %v7988_v59  ;;  %vm122_vm8 = vcmp.eq.s32.totalorder %v6674_v1, %v7943_v50 }
  0xf1   :  { %5980 = vmatpush.msk.msra.mxu3 %vm762_vm9, %v6651_v13  ;;  %5930 = vmatpush.msk.msra.mxu0 %vm313_vm10, %v6651_v13  ;;  %vm634_vm9 = vcmp.eq.s32.totalorder %v6928_v36, %v7943_v50  ;;  %vm604_vm10 = vcmp.eq.s32.totalorder %v6677_v2, %v8149_v60 }
  0xf2   :  { %5946 = vmatpush.msk.msra.mxu1 %vm825_vm11, %v6651_v13  ;;  %5965 = vmatpush.msk.msra.mxu2 %vm218_vm12, %v6651_v13  ;;  %vm1116_vm11 = vcmp.eq.s32.totalorder %v6680_v3, %v8149_v60  ;;  %vm185_vm12 = vcmp.eq.s32.totalorder %v6892_v32, %v7988_v59 }
  0xf3   :  { %5981 = vmatpush.msk.msra.mxu3 %vm730_vm13, %v6651_v13  ;;  %5931 = vmatpush.msk.msra.mxu0 %vm281_vm14, %v6651_v13  ;;  %vm697_vm13 = vcmp.eq.s32.totalorder %v6895_v33, %v7988_v59  ;;  %vm572_vm14 = vcmp.eq.s32.totalorder %v6683_v4, %v8149_v60 }
  0xf4   :  { %5947 = vmatpush.msk.msra.mxu1 %vm793_vm15, %v6651_v13  ;;  %5966 = vmatpush.msk.msra.mxu2 %vm186_vm0, %v6651_v13  ;;  %v3320_v61 = vpop.f32.mrf.mxu2  ;;  %vm1084_vm15 = vcmp.eq.s32.totalorder %v6686_v5, %v8149_v60  ;;  %vm153_vm0 = vcmp.eq.s32.totalorder %v6910_v34, %v7988_v59 }
  0xf5   :  { %5982 = vmatpush.msk.msra.mxu3 %vm698_vm1, %v6651_v13  ;;  %5932 = vmatpush.msk.msra.mxu0 %vm249_vm2, %v6651_v13  ;;  %v3280_v62 = vpop.f32.mrf.mxu0  ;;  %v3340_v63 = vpop.f32.mrf.mxu3  ;;  %vm665_vm1 = vcmp.eq.s32.totalorder %v6913_v35, %v7988_v59  ;;  %vm540_vm2 = vcmp.eq.s32.totalorder %v6694_v8, %v8149_v60 }
  0xf6   :  { %5948 = vmatpush.msk.msra.mxu1 %vm761_vm3, %v6651_v13  ;;  %5967 = vmatpush.msk.msra.mxu2 %vm154_vm4, %v6651_v13  ;;  %v3300_v0 = vpop.f32.mrf.mxu1  ;;  %v3341_v6 = vadd.f32 %v3340_v63, %v3320_v61  ;;  %vm1052_vm3 = vcmp.eq.s32.totalorder %v6697_v9, %v8149_v60  ;;  %vm121_vm4 = vcmp.eq.s32.totalorder %v6674_v1, %v7988_v59  ;;  %v8786_v61 = vld [vmem:[#allocation5] sm:$0xff]  ;;  %v8802_v63 = vperm.slane %v8332_v37, 4 }
  0xf7   :  { %5983 = vmatpush.msk.msra.mxu3 %vm666_vm5, %v6651_v13  ;;  %5933 = vmatpush.msk.msra.mxu0 %vm217_vm6, %v6651_v13  ;;  %v3301_v7 = vadd.f32 %v3300_v0, %v3280_v62  ;;  %vm633_vm5 = vcmp.eq.s32.totalorder %v6928_v36, %v7988_v59  ;;  %vm603_vm6 = vcmp.eq.s32.totalorder %v6677_v2, %v8190_v10  ;;  %v8793_v62 = vld [vmem:[#allocation5 + $0x8] sm:$0xff]  ;;  %v8963_v0 = vperm.slane %v8332_v37, 7 }
  0xf8   :  { %5949 = vmatpush.msk.msra.mxu1 %vm729_vm7, %v6651_v13  ;;  %5968 = vmatpush.msk.msra.mxu2 %vm122_vm8, %v6651_v13  ;;  %4466 = vst [vmem:[#allocation7 + $0x18] sm:$0xff] %v3341_v6  ;;  %vm1115_vm7 = vcmp.eq.s32.totalorder %v6680_v3, %v8190_v10  ;;  %vm508_vm8 = vcmp.eq.s32.totalorder %v6703_v11, %v8149_v60 }
  0xf9   :  { %5984 = vmatpush.msk.msra.mxu3 %vm634_vm9, %v6651_v13  ;;  %3639 = vmatmul.f32.vlgmr.msrb.gmra.mxu2 %v7972_v57  ;;  %4465 = vst [vmem:[#allocation7 + $0x10] sm:$0xff] %v3301_v7  ;;  %vm1020_vm9 = vcmp.eq.s32.totalorder %v6706_v12, %v8149_v60 }
  0xfa   :  { %3659 = vmatmul.f32.vlgmr.msrb.gmra.mxu3 %v7979_v58  ;;  %6017 = vmatpush.msk.msrb.mxu2 %vm604_vm10, %v6651_v13  ;;  %vm571_vm10 = vcmp.eq.s32.totalorder %v6683_v4, %v8190_v10 }
  0xfb   :  { %6033 = vmatpush.msk.msrb.mxu3 %vm1116_vm11, %v6651_v13  ;;  %5934 = vmatpush.msk.msra.mxu0 %vm185_vm12, %v6651_v13  ;;  %vm1083_vm11 = vcmp.eq.s32.totalorder %v6686_v5, %v8190_v10  ;;  %vm476_vm12 = vcmp.eq.s32.totalorder %v6721_v14, %v8149_v60 }
  0xfc   :  { %5950 = vmatpush.msk.msra.mxu1 %vm697_vm13, %v6651_v13  ;;  %6018 = vmatpush.msk.msrb.mxu2 %vm572_vm14, %v6651_v13  ;;  %vm988_vm13 = vcmp.eq.s32.totalorder %v6724_v15, %v8149_v60  ;;  %vm539_vm14 = vcmp.eq.s32.totalorder %v6694_v8, %v8190_v10 }
  0xfd   :  { %6034 = vmatpush.msk.msrb.mxu3 %vm1084_vm15, %v6651_v13  ;;  %5935 = vmatpush.msk.msra.mxu0 %vm153_vm0, %v6651_v13  ;;  %vm1051_vm15 = vcmp.eq.s32.totalorder %v6697_v9, %v8190_v10  ;;  %vm444_vm0 = vcmp.eq.s32.totalorder %v6740_v16, %v8149_v60 }
  0xfe   :  { %5951 = vmatpush.msk.msra.mxu1 %vm665_vm1, %v6651_v13  ;;  %6019 = vmatpush.msk.msrb.mxu2 %vm540_vm2, %v6651_v13  ;;  %vm956_vm1 = vcmp.eq.s32.totalorder %v6751_v17, %v8149_v60  ;;  %vm507_vm2 = vcmp.eq.s32.totalorder %v6703_v11, %v8190_v10 }
  0xff   :  { %6035 = vmatpush.msk.msrb.mxu3 %vm1052_vm3, %v6651_v13  ;;  %5936 = vmatpush.msk.msra.mxu0 %vm121_vm4, %v6651_v13  ;;  %vm1019_vm3 = vcmp.eq.s32.totalorder %v6706_v12, %v8190_v10  ;;  %vm412_vm4 = vcmp.eq.s32.totalorder %v6766_v18, %v8149_v60 }
 0x100   :  { %5952 = vmatpush.msk.msra.mxu1 %vm633_vm5, %v6651_v13  ;;  %3599 = vmatmul.f32.vlgmr.msrb.gmra.mxu0 %v7972_v57  ;;  %vm924_vm5 = vcmp.eq.s32.totalorder %v6769_v19, %v8149_v60 }
 0x101   :  { %3619 = vmatmul.f32.vlgmr.msrb.gmra.mxu1 %v7979_v58  ;;  %5985 = vmatpush.msk.msrb.mxu0 %vm603_vm6, %v6651_v13  ;;  %vm475_vm6 = vcmp.eq.s32.totalorder %v6721_v14, %v8190_v10 }
 0x102   :  { %6001 = vmatpush.msk.msrb.mxu1 %vm1115_vm7, %v6651_v13  ;;  %6020 = vmatpush.msk.msrb.mxu2 %vm508_vm8, %v6651_v13  ;;  %vm987_vm7 = vcmp.eq.s32.totalorder %v6724_v15, %v8190_v10  ;;  %vm380_vm8 = vcmp.eq.s32.totalorder %v6784_v20, %v8149_v60 }
 0x103   :  { %6036 = vmatpush.msk.msrb.mxu3 %vm1020_vm9, %v6651_v13  ;;  %5986 = vmatpush.msk.msrb.mxu0 %vm571_vm10, %v6651_v13  ;;  %vm892_vm9 = vcmp.eq.s32.totalorder %v6787_v21, %v8149_v60  ;;  %vm443_vm10 = vcmp.eq.s32.totalorder %v6740_v16, %v8190_v10 }
 0x104   :  { %6002 = vmatpush.msk.msrb.mxu1 %vm1083_vm11, %v6651_v13  ;;  %6021 = vmatpush.msk.msrb.mxu2 %vm476_vm12, %v6651_v13  ;;  %vm955_vm11 = vcmp.eq.s32.totalorder %v6751_v17, %v8190_v10  ;;  %vm348_vm12 = vcmp.eq.s32.totalorder %v6802_v22, %v8149_v60 }
 0x105   :  { %6037 = vmatpush.msk.msrb.mxu3 %vm988_vm13, %v6651_v13  ;;  %5987 = vmatpush.msk.msrb.mxu0 %vm539_vm14, %v6651_v13  ;;  %vm860_vm13 = vcmp.eq.s32.totalorder %v6805_v23, %v8149_v60  ;;  %vm411_vm14 = vcmp.eq.s32.totalorder %v6766_v18, %v8190_v10 }
 0x106   :  { %6003 = vmatpush.msk.msrb.mxu1 %vm1051_vm15, %v6651_v13  ;;  %6022 = vmatpush.msk.msrb.mxu2 %vm444_vm0, %v6651_v13  ;;  %vm923_vm15 = vcmp.eq.s32.totalorder %v6769_v19, %v8190_v10  ;;  %vm316_vm0 = vcmp.eq.s32.totalorder %v6820_v24, %v8149_v60 }
 0x107   :  { %6038 = vmatpush.msk.msrb.mxu3 %vm956_vm1, %v6651_v13  ;;  %5988 = vmatpush.msk.msrb.mxu0 %vm507_vm2, %v6651_v13  ;;  %vm828_vm1 = vcmp.eq.s32.totalorder %v6823_v25, %v8149_v60  ;;  %vm379_vm2 = vcmp.eq.s32.totalorder %v6784_v20, %v8190_v10 }
 0x108   :  { %6004 = vmatpush.msk.msrb.mxu1 %vm1019_vm3, %v6651_v13  ;;  %6023 = vmatpush.msk.msrb.mxu2 %vm412_vm4, %v6651_v13  ;;  %vm891_vm3 = vcmp.eq.s32.totalorder %v6787_v21, %v8190_v10  ;;  %vm284_vm4 = vcmp.eq.s32.totalorder %v6838_v26, %v8149_v60 }
 0x109   :  { %6039 = vmatpush.msk.msrb.mxu3 %vm924_vm5, %v6651_v13  ;;  %5989 = vmatpush.msk.msrb.mxu0 %vm475_vm6, %v6651_v13  ;;  %vm796_vm5 = vcmp.eq.s32.totalorder %v6841_v27, %v8149_v60  ;;  %vm347_vm6 = vcmp.eq.s32.totalorder %v6802_v22, %v8190_v10 }
 0x10a   :  { %6005 = vmatpush.msk.msrb.mxu1 %vm987_vm7, %v6651_v13  ;;  %6024 = vmatpush.msk.msrb.mxu2 %vm380_vm8, %v6651_v13  ;;  %vm859_vm7 = vcmp.eq.s32.totalorder %v6805_v23, %v8190_v10  ;;  %vm252_vm8 = vcmp.eq.s32.totalorder %v6856_v28, %v8149_v60 }
 0x10b   :  { %6040 = vmatpush.msk.msrb.mxu3 %vm892_vm9, %v6651_v13  ;;  %5990 = vmatpush.msk.msrb.mxu0 %vm443_vm10, %v6651_v13  ;;  %vm764_vm9 = vcmp.eq.s32.totalorder %v6859_v29, %v8149_v60  ;;  %vm315_vm10 = vcmp.eq.s32.totalorder %v6820_v24, %v8190_v10 }
 0x10c   :  { %6006 = vmatpush.msk.msrb.mxu1 %vm955_vm11, %v6651_v13  ;;  %6025 = vmatpush.msk.msrb.mxu2 %vm348_vm12, %v6651_v13  ;;  %vm827_vm11 = vcmp.eq.s32.totalorder %v6823_v25, %v8190_v10  ;;  %vm220_vm12 = vcmp.eq.s32.totalorder %v6874_v30, %v8149_v60 }
 0x10d   :  { %6041 = vmatpush.msk.msrb.mxu3 %vm860_vm13, %v6651_v13  ;;  %5991 = vmatpush.msk.msrb.mxu0 %vm411_vm14, %v6651_v13  ;;  %vm732_vm13 = vcmp.eq.s32.totalorder %v6877_v31, %v8149_v60  ;;  %vm283_vm14 = vcmp.eq.s32.totalorder %v6838_v26, %v8190_v10 }
 0x10e   :  { %6007 = vmatpush.msk.msrb.mxu1 %vm923_vm15, %v6651_v13  ;;  %6026 = vmatpush.msk.msrb.mxu2 %vm316_vm0, %v6651_v13  ;;  %vm795_vm15 = vcmp.eq.s32.totalorder %v6841_v27, %v8190_v10  ;;  %vm188_vm0 = vcmp.eq.s32.totalorder %v6892_v32, %v8149_v60 }
 0x10f   :  { %6042 = vmatpush.msk.msrb.mxu3 %vm828_vm1, %v6651_v13  ;;  %5992 = vmatpush.msk.msrb.mxu0 %vm379_vm2, %v6651_v13  ;;  %vm700_vm1 = vcmp.eq.s32.totalorder %v6895_v33, %v8149_v60  ;;  %vm251_vm2 = vcmp.eq.s32.totalorder %v6856_v28, %v8190_v10 }
 0x110   :  { %6008 = vmatpush.msk.msrb.mxu1 %vm891_vm3, %v6651_v13  ;;  %6027 = vmatpush.msk.msrb.mxu2 %vm284_vm4, %v6651_v13  ;;  %vm763_vm3 = vcmp.eq.s32.totalorder %v6859_v29, %v8190_v10  ;;  %vm156_vm4 = vcmp.eq.s32.totalorder %v6910_v34, %v8149_v60 }
 0x111   :  { %6043 = vmatpush.msk.msrb.mxu3 %vm796_vm5, %v6651_v13  ;;  %5993 = vmatpush.msk.msrb.mxu0 %vm347_vm6, %v6651_v13  ;;  %vm668_vm5 = vcmp.eq.s32.totalorder %v6913_v35, %v8149_v60  ;;  %vm219_vm6 = vcmp.eq.s32.totalorder %v6874_v30, %v8190_v10 }
 0x112   :  { %6009 = vmatpush.msk.msrb.mxu1 %vm859_vm7, %v6651_v13  ;;  %6028 = vmatpush.msk.msrb.mxu2 %vm252_vm8, %v6651_v13  ;;  %vm731_vm7 = vcmp.eq.s32.totalorder %v6877_v31, %v8190_v10  ;;  %vm124_vm8 = vcmp.eq.s32.totalorder %v6674_v1, %v8149_v60 }
 0x113   :  { %6044 = vmatpush.msk.msrb.mxu3 %vm764_vm9, %v6651_v13  ;;  %5994 = vmatpush.msk.msrb.mxu0 %vm315_vm10, %v6651_v13  ;;  %vm636_vm9 = vcmp.eq.s32.totalorder %v6928_v36, %v8149_v60  ;;  %vm606_vm10 = vcmp.eq.s32.totalorder %v6677_v2, %v8353_v38 }
 0x114   :  { %6010 = vmatpush.msk.msrb.mxu1 %vm827_vm11, %v6651_v13  ;;  %6029 = vmatpush.msk.msrb.mxu2 %vm220_vm12, %v6651_v13  ;;  %vm1118_vm11 = vcmp.eq.s32.totalorder %v6680_v3, %v8353_v38  ;;  %vm187_vm12 = vcmp.eq.s32.totalorder %v6892_v32, %v8190_v10 }
 0x115   :  { %6045 = vmatpush.msk.msrb.mxu3 %vm732_vm13, %v6651_v13  ;;  %5995 = vmatpush.msk.msrb.mxu0 %vm283_vm14, %v6651_v13  ;;  %vm699_vm13 = vcmp.eq.s32.totalorder %v6895_v33, %v8190_v10  ;;  %vm574_vm14 = vcmp.eq.s32.totalorder %v6683_v4, %v8353_v38 }
 0x116   :  { %6011 = vmatpush.msk.msrb.mxu1 %vm795_vm15, %v6651_v13  ;;  %6030 = vmatpush.msk.msrb.mxu2 %vm188_vm0, %v6651_v13  ;;  %v3400_v39 = vpop.f32.mrf.mxu2  ;;  %vm1086_vm15 = vcmp.eq.s32.totalorder %v6686_v5, %v8353_v38  ;;  %vm155_vm0 = vcmp.eq.s32.totalorder %v6910_v34, %v8190_v10 }
 0x117   :  { %6046 = vmatpush.msk.msrb.mxu3 %vm700_vm1, %v6651_v13  ;;  %5996 = vmatpush.msk.msrb.mxu0 %vm251_vm2, %v6651_v13  ;;  %v3360_v40 = vpop.f32.mrf.mxu0  ;;  %v3420_v41 = vpop.f32.mrf.mxu3  ;;  %vm667_vm1 = vcmp.eq.s32.totalorder %v6913_v35, %v8190_v10  ;;  %vm542_vm2 = vcmp.eq.s32.totalorder %v6694_v8, %v8353_v38 }
 0x118   :  { %6012 = vmatpush.msk.msrb.mxu1 %vm763_vm3, %v6651_v13  ;;  %6031 = vmatpush.msk.msrb.mxu2 %vm156_vm4, %v6651_v13  ;;  %v3380_v42 = vpop.f32.mrf.mxu1  ;;  %v3421_v43 = vadd.f32 %v3420_v41, %v3400_v39  ;;  %vm1054_vm3 = vcmp.eq.s32.totalorder %v6697_v9, %v8353_v38  ;;  %vm123_vm4 = vcmp.eq.s32.totalorder %v6674_v1, %v8190_v10  ;;  %v9004_v41 = vperm.slane %v8332_v37, 6  ;;  %v9146_v37 = vld [vmem:[#allocation2 + $0x18] sm:$0xff] }
 0x119   :  { %6047 = vmatpush.msk.msrb.mxu3 %vm668_vm5, %v6651_v13  ;;  %5997 = vmatpush.msk.msrb.mxu0 %vm219_vm6, %v6651_v13  ;;  %v3381_v44 = vadd.f32 %v3380_v42, %v3360_v40  ;;  %vm635_vm5 = vcmp.eq.s32.totalorder %v6928_v36, %v8190_v10  ;;  %vm605_vm6 = vcmp.eq.s32.totalorder %v6677_v2, %v8394_v45  ;;  %v9167_v42 = vperm.slane %v9146_v37, 1 }
 0x11a   :  { %6013 = vmatpush.msk.msrb.mxu1 %vm731_vm7, %v6651_v13  ;;  %6032 = vmatpush.msk.msrb.mxu2 %vm124_vm8, %v6651_v13  ;;  %4468 = vst [vmem:[#allocation7 + $0x28] sm:$0xff] %v3421_v43  ;;  %vm1117_vm7 = vcmp.eq.s32.totalorder %v6680_v3, %v8394_v45  ;;  %vm510_vm8 = vcmp.eq.s32.totalorder %v6703_v11, %v8353_v38 }
 0x11b   :  { %6048 = vmatpush.msk.msrb.mxu3 %vm636_vm9, %v6651_v13  ;;  %3719 = vmatmul.f32.vlgmr.msra.gmra.mxu2 %v7972_v57  ;;  %4467 = vst [vmem:[#allocation7 + $0x20] sm:$0xff] %v3381_v44  ;;  %vm1022_vm9 = vcmp.eq.s32.totalorder %v6706_v12, %v8353_v38 }
 0x11c   :  { %3739 = vmatmul.f32.vlgmr.msra.gmra.mxu3 %v7979_v58  ;;  %6081 = vmatpush.msk.msra.mxu2 %vm606_vm10, %v6651_v13  ;;  %vm573_vm10 = vcmp.eq.s32.totalorder %v6683_v4, %v8394_v45 }
 0x11d   :  { %6097 = vmatpush.msk.msra.mxu3 %vm1118_vm11, %v6651_v13  ;;  %5998 = vmatpush.msk.msrb.mxu0 %vm187_vm12, %v6651_v13  ;;  %vm1085_vm11 = vcmp.eq.s32.totalorder %v6686_v5, %v8394_v45  ;;  %vm478_vm12 = vcmp.eq.s32.totalorder %v6721_v14, %v8353_v38 }
 0x11e   :  { %6014 = vmatpush.msk.msrb.mxu1 %vm699_vm13, %v6651_v13  ;;  %6082 = vmatpush.msk.msra.mxu2 %vm574_vm14, %v6651_v13  ;;  %vm990_vm13 = vcmp.eq.s32.totalorder %v6724_v15, %v8353_v38  ;;  %vm541_vm14 = vcmp.eq.s32.totalorder %v6694_v8, %v8394_v45 }
 0x11f   :  { %6098 = vmatpush.msk.msra.mxu3 %vm1086_vm15, %v6651_v13  ;;  %5999 = vmatpush.msk.msrb.mxu0 %vm155_vm0, %v6651_v13  ;;  %vm1053_vm15 = vcmp.eq.s32.totalorder %v6697_v9, %v8394_v45  ;;  %vm446_vm0 = vcmp.eq.s32.totalorder %v6740_v16, %v8353_v38 }
 0x120   :  { %6015 = vmatpush.msk.msrb.mxu1 %vm667_vm1, %v6651_v13  ;;  %6083 = vmatpush.msk.msra.mxu2 %vm542_vm2, %v6651_v13  ;;  %vm958_vm1 = vcmp.eq.s32.totalorder %v6751_v17, %v8353_v38  ;;  %vm509_vm2 = vcmp.eq.s32.totalorder %v6703_v11, %v8394_v45 }
 0x121   :  { %6099 = vmatpush.msk.msra.mxu3 %vm1054_vm3, %v6651_v13  ;;  %6000 = vmatpush.msk.msrb.mxu0 %vm123_vm4, %v6651_v13  ;;  %vm1021_vm3 = vcmp.eq.s32.totalorder %v6706_v12, %v8394_v45  ;;  %vm414_vm4 = vcmp.eq.s32.totalorder %v6766_v18, %v8353_v38 }
 0x122   :  { %6016 = vmatpush.msk.msrb.mxu1 %vm635_vm5, %v6651_v13  ;;  %3679 = vmatmul.f32.vlgmr.msra.gmra.mxu0 %v7972_v57  ;;  %vm926_vm5 = vcmp.eq.s32.totalorder %v6769_v19, %v8353_v38 }
 0x123   :  { %3699 = vmatmul.f32.vlgmr.msra.gmra.mxu1 %v7979_v58  ;;  %6049 = vmatpush.msk.msra.mxu0 %vm605_vm6, %v6651_v13  ;;  %vm477_vm6 = vcmp.eq.s32.totalorder %v6721_v14, %v8394_v45 }
 0x124   :  { %6065 = vmatpush.msk.msra.mxu1 %vm1117_vm7, %v6651_v13  ;;  %6084 = vmatpush.msk.msra.mxu2 %vm510_vm8, %v6651_v13  ;;  %vm989_vm7 = vcmp.eq.s32.totalorder %v6724_v15, %v8394_v45  ;;  %vm382_vm8 = vcmp.eq.s32.totalorder %v6784_v20, %v8353_v38 }
 0x125   :  { %6100 = vmatpush.msk.msra.mxu3 %vm1022_vm9, %v6651_v13  ;;  %6050 = vmatpush.msk.msra.mxu0 %vm573_vm10, %v6651_v13  ;;  %vm894_vm9 = vcmp.eq.s32.totalorder %v6787_v21, %v8353_v38  ;;  %vm445_vm10 = vcmp.eq.s32.totalorder %v6740_v16, %v8394_v45 }
 0x126   :  { %6066 = vmatpush.msk.msra.mxu1 %vm1085_vm11, %v6651_v13  ;;  %6085 = vmatpush.msk.msra.mxu2 %vm478_vm12, %v6651_v13  ;;  %vm957_vm11 = vcmp.eq.s32.totalorder %v6751_v17, %v8394_v45  ;;  %vm350_vm12 = vcmp.eq.s32.totalorder %v6802_v22, %v8353_v38 }
 0x127   :  { %6101 = vmatpush.msk.msra.mxu3 %vm990_vm13, %v6651_v13  ;;  %6051 = vmatpush.msk.msra.mxu0 %vm541_vm14, %v6651_v13  ;;  %vm862_vm13 = vcmp.eq.s32.totalorder %v6805_v23, %v8353_v38  ;;  %vm413_vm14 = vcmp.eq.s32.totalorder %v6766_v18, %v8394_v45 }
 0x128   :  { %6067 = vmatpush.msk.msra.mxu1 %vm1053_vm15, %v6651_v13  ;;  %6086 = vmatpush.msk.msra.mxu2 %vm446_vm0, %v6651_v13  ;;  %vm925_vm15 = vcmp.eq.s32.totalorder %v6769_v19, %v8394_v45  ;;  %vm318_vm0 = vcmp.eq.s32.totalorder %v6820_v24, %v8353_v38 }
 0x129   :  { %6102 = vmatpush.msk.msra.mxu3 %vm958_vm1, %v6651_v13  ;;  %6052 = vmatpush.msk.msra.mxu0 %vm509_vm2, %v6651_v13  ;;  %vm830_vm1 = vcmp.eq.s32.totalorder %v6823_v25, %v8353_v38  ;;  %vm381_vm2 = vcmp.eq.s32.totalorder %v6784_v20, %v8394_v45 }
 0x12a   :  { %6068 = vmatpush.msk.msra.mxu1 %vm1021_vm3, %v6651_v13  ;;  %6087 = vmatpush.msk.msra.mxu2 %vm414_vm4, %v6651_v13  ;;  %vm893_vm3 = vcmp.eq.s32.totalorder %v6787_v21, %v8394_v45  ;;  %vm286_vm4 = vcmp.eq.s32.totalorder %v6838_v26, %v8353_v38 }
 0x12b   :  { %6103 = vmatpush.msk.msra.mxu3 %vm926_vm5, %v6651_v13  ;;  %6053 = vmatpush.msk.msra.mxu0 %vm477_vm6, %v6651_v13  ;;  %vm798_vm5 = vcmp.eq.s32.totalorder %v6841_v27, %v8353_v38  ;;  %vm349_vm6 = vcmp.eq.s32.totalorder %v6802_v22, %v8394_v45 }
 0x12c   :  { %6069 = vmatpush.msk.msra.mxu1 %vm989_vm7, %v6651_v13  ;;  %6088 = vmatpush.msk.msra.mxu2 %vm382_vm8, %v6651_v13  ;;  %vm861_vm7 = vcmp.eq.s32.totalorder %v6805_v23, %v8394_v45  ;;  %vm254_vm8 = vcmp.eq.s32.totalorder %v6856_v28, %v8353_v38 }
 0x12d   :  { %6104 = vmatpush.msk.msra.mxu3 %vm894_vm9, %v6651_v13  ;;  %6054 = vmatpush.msk.msra.mxu0 %vm445_vm10, %v6651_v13  ;;  %vm766_vm9 = vcmp.eq.s32.totalorder %v6859_v29, %v8353_v38  ;;  %vm317_vm10 = vcmp.eq.s32.totalorder %v6820_v24, %v8394_v45 }
 0x12e   :  { %6070 = vmatpush.msk.msra.mxu1 %vm957_vm11, %v6651_v13  ;;  %6089 = vmatpush.msk.msra.mxu2 %vm350_vm12, %v6651_v13  ;;  %vm829_vm11 = vcmp.eq.s32.totalorder %v6823_v25, %v8394_v45  ;;  %vm222_vm12 = vcmp.eq.s32.totalorder %v6874_v30, %v8353_v38 }
 0x12f   :  { %6105 = vmatpush.msk.msra.mxu3 %vm862_vm13, %v6651_v13  ;;  %6055 = vmatpush.msk.msra.mxu0 %vm413_vm14, %v6651_v13  ;;  %vm734_vm13 = vcmp.eq.s32.totalorder %v6877_v31, %v8353_v38  ;;  %vm285_vm14 = vcmp.eq.s32.totalorder %v6838_v26, %v8394_v45 }
 0x130   :  { %6071 = vmatpush.msk.msra.mxu1 %vm925_vm15, %v6651_v13  ;;  %6090 = vmatpush.msk.msra.mxu2 %vm318_vm0, %v6651_v13  ;;  %vm797_vm15 = vcmp.eq.s32.totalorder %v6841_v27, %v8394_v45  ;;  %vm190_vm0 = vcmp.eq.s32.totalorder %v6892_v32, %v8353_v38 }
 0x131   :  { %6106 = vmatpush.msk.msra.mxu3 %vm830_vm1, %v6651_v13  ;;  %6056 = vmatpush.msk.msra.mxu0 %vm381_vm2, %v6651_v13  ;;  %vm702_vm1 = vcmp.eq.s32.totalorder %v6895_v33, %v8353_v38  ;;  %vm253_vm2 = vcmp.eq.s32.totalorder %v6856_v28, %v8394_v45 }
 0x132   :  { %6072 = vmatpush.msk.msra.mxu1 %vm893_vm3, %v6651_v13  ;;  %6091 = vmatpush.msk.msra.mxu2 %vm286_vm4, %v6651_v13  ;;  %vm765_vm3 = vcmp.eq.s32.totalorder %v6859_v29, %v8394_v45  ;;  %vm158_vm4 = vcmp.eq.s32.totalorder %v6910_v34, %v8353_v38 }
 0x133   :  { %6107 = vmatpush.msk.msra.mxu3 %vm798_vm5, %v6651_v13  ;;  %6057 = vmatpush.msk.msra.mxu0 %vm349_vm6, %v6651_v13  ;;  %vm670_vm5 = vcmp.eq.s32.totalorder %v6913_v35, %v8353_v38  ;;  %vm221_vm6 = vcmp.eq.s32.totalorder %v6874_v30, %v8394_v45 }
 0x134   :  { %6073 = vmatpush.msk.msra.mxu1 %vm861_vm7, %v6651_v13  ;;  %6092 = vmatpush.msk.msra.mxu2 %vm254_vm8, %v6651_v13  ;;  %vm733_vm7 = vcmp.eq.s32.totalorder %v6877_v31, %v8394_v45  ;;  %vm126_vm8 = vcmp.eq.s32.totalorder %v6674_v1, %v8353_v38 }
 0x135   :  { %6108 = vmatpush.msk.msra.mxu3 %vm766_vm9, %v6651_v13  ;;  %6058 = vmatpush.msk.msra.mxu0 %vm317_vm10, %v6651_v13  ;;  %vm638_vm9 = vcmp.eq.s32.totalorder %v6928_v36, %v8353_v38  ;;  %vm608_vm10 = vcmp.eq.s32.totalorder %v6677_v2, %v8555_v46 }
 0x136   :  { %6074 = vmatpush.msk.msra.mxu1 %vm829_vm11, %v6651_v13  ;;  %6093 = vmatpush.msk.msra.mxu2 %vm222_vm12, %v6651_v13  ;;  %vm1120_vm11 = vcmp.eq.s32.totalorder %v6680_v3, %v8555_v46  ;;  %vm189_vm12 = vcmp.eq.s32.totalorder %v6892_v32, %v8394_v45 }
 0x137   :  { %6109 = vmatpush.msk.msra.mxu3 %vm734_vm13, %v6651_v13  ;;  %6059 = vmatpush.msk.msra.mxu0 %vm285_vm14, %v6651_v13  ;;  %vm701_vm13 = vcmp.eq.s32.totalorder %v6895_v33, %v8394_v45  ;;  %vm576_vm14 = vcmp.eq.s32.totalorder %v6683_v4, %v8555_v46 }
 0x138   :  { %6075 = vmatpush.msk.msra.mxu1 %vm797_vm15, %v6651_v13  ;;  %6094 = vmatpush.msk.msra.mxu2 %vm190_vm0, %v6651_v13  ;;  %v3480_v47 = vpop.f32.mrf.mxu2  ;;  %vm1088_vm15 = vcmp.eq.s32.totalorder %v6686_v5, %v8555_v46  ;;  %vm157_vm0 = vcmp.eq.s32.totalorder %v6910_v34, %v8394_v45 }
 0x139   :  { %6110 = vmatpush.msk.msra.mxu3 %vm702_vm1, %v6651_v13  ;;  %6060 = vmatpush.msk.msra.mxu0 %vm253_vm2, %v6651_v13  ;;  %v3440_v48 = vpop.f32.mrf.mxu0  ;;  %v3500_v49 = vpop.f32.mrf.mxu3  ;;  %vm669_vm1 = vcmp.eq.s32.totalorder %v6913_v35, %v8394_v45  ;;  %vm544_vm2 = vcmp.eq.s32.totalorder %v6694_v8, %v8555_v46 }
 0x13a   :  { %6076 = vmatpush.msk.msra.mxu1 %vm765_vm3, %v6651_v13  ;;  %6095 = vmatpush.msk.msra.mxu2 %vm158_vm4, %v6651_v13  ;;  %v3460_v50 = vpop.f32.mrf.mxu1  ;;  %v3501_v51 = vadd.f32 %v3500_v49, %v3480_v47  ;;  %vm1056_vm3 = vcmp.eq.s32.totalorder %v6697_v9, %v8555_v46  ;;  %vm125_vm4 = vcmp.eq.s32.totalorder %v6674_v1, %v8394_v45  ;;  %v9208_v49 = vperm.slane %v9146_v37, 0 }
 0x13b   :  { %6111 = vmatpush.msk.msra.mxu3 %vm670_vm5, %v6651_v13  ;;  %6061 = vmatpush.msk.msra.mxu0 %vm221_vm6, %v6651_v13  ;;  %v3461_v52 = vadd.f32 %v3460_v50, %v3440_v48  ;;  %vm637_vm5 = vcmp.eq.s32.totalorder %v6928_v36, %v8394_v45  ;;  %vm607_vm6 = vcmp.eq.s32.totalorder %v6677_v2, %v8596_v53  ;;  %v9369_v50 = vperm.slane %v9146_v37, 3 }
 0x13c   :  { %6077 = vmatpush.msk.msra.mxu1 %vm733_vm7, %v6651_v13  ;;  %6096 = vmatpush.msk.msra.mxu2 %vm126_vm8, %v6651_v13  ;;  %4470 = vst [vmem:[#allocation7 + $0x38] sm:$0xff] %v3501_v51  ;;  %vm1119_vm7 = vcmp.eq.s32.totalorder %v6680_v3, %v8596_v53  ;;  %vm512_vm8 = vcmp.eq.s32.totalorder %v6703_v11, %v8555_v46 }
 0x13d   :  { %6112 = vmatpush.msk.msra.mxu3 %vm638_vm9, %v6651_v13  ;;  %3799 = vmatmul.f32.vlgmr.msrb.gmra.mxu2 %v7972_v57  ;;  %4469 = vst [vmem:[#allocation7 + $0x30] sm:$0xff] %v3461_v52  ;;  %vm1024_vm9 = vcmp.eq.s32.totalorder %v6706_v12, %v8555_v46 }
 0x13e   :  { %3819 = vmatmul.f32.vlgmr.msrb.gmra.mxu3 %v7979_v58  ;;  %6145 = vmatpush.msk.msrb.mxu2 %vm608_vm10, %v6651_v13  ;;  %vm575_vm10 = vcmp.eq.s32.totalorder %v6683_v4, %v8596_v53 }
 0x13f   :  { %6161 = vmatpush.msk.msrb.mxu3 %vm1120_vm11, %v6651_v13  ;;  %6062 = vmatpush.msk.msra.mxu0 %vm189_vm12, %v6651_v13  ;;  %vm1087_vm11 = vcmp.eq.s32.totalorder %v6686_v5, %v8596_v53  ;;  %vm480_vm12 = vcmp.eq.s32.totalorder %v6721_v14, %v8555_v46 }
 0x140   :  { %6078 = vmatpush.msk.msra.mxu1 %vm701_vm13, %v6651_v13  ;;  %6146 = vmatpush.msk.msrb.mxu2 %vm576_vm14, %v6651_v13  ;;  %vm992_vm13 = vcmp.eq.s32.totalorder %v6724_v15, %v8555_v46  ;;  %vm543_vm14 = vcmp.eq.s32.totalorder %v6694_v8, %v8596_v53 }
 0x141   :  { %6162 = vmatpush.msk.msrb.mxu3 %vm1088_vm15, %v6651_v13  ;;  %6063 = vmatpush.msk.msra.mxu0 %vm157_vm0, %v6651_v13  ;;  %vm1055_vm15 = vcmp.eq.s32.totalorder %v6697_v9, %v8596_v53  ;;  %vm448_vm0 = vcmp.eq.s32.totalorder %v6740_v16, %v8555_v46 }
 0x142   :  { %6079 = vmatpush.msk.msra.mxu1 %vm669_vm1, %v6651_v13  ;;  %6147 = vmatpush.msk.msrb.mxu2 %vm544_vm2, %v6651_v13  ;;  %vm960_vm1 = vcmp.eq.s32.totalorder %v6751_v17, %v8555_v46  ;;  %vm511_vm2 = vcmp.eq.s32.totalorder %v6703_v11, %v8596_v53 }
 0x143   :  { %6163 = vmatpush.msk.msrb.mxu3 %vm1056_vm3, %v6651_v13  ;;  %6064 = vmatpush.msk.msra.mxu0 %vm125_vm4, %v6651_v13  ;;  %vm1023_vm3 = vcmp.eq.s32.totalorder %v6706_v12, %v8596_v53  ;;  %vm416_vm4 = vcmp.eq.s32.totalorder %v6766_v18, %v8555_v46 }
 0x144   :  { %6080 = vmatpush.msk.msra.mxu1 %vm637_vm5, %v6651_v13  ;;  %3759 = vmatmul.f32.vlgmr.msrb.gmra.mxu0 %v7972_v57  ;;  %vm928_vm5 = vcmp.eq.s32.totalorder %v6769_v19, %v8555_v46 }
 0x145   :  { %3779 = vmatmul.f32.vlgmr.msrb.gmra.mxu1 %v7979_v58  ;;  %6113 = vmatpush.msk.msrb.mxu0 %vm607_vm6, %v6651_v13  ;;  %vm479_vm6 = vcmp.eq.s32.totalorder %v6721_v14, %v8596_v53 }
 0x146   :  { %6129 = vmatpush.msk.msrb.mxu1 %vm1119_vm7, %v6651_v13  ;;  %6148 = vmatpush.msk.msrb.mxu2 %vm512_vm8, %v6651_v13  ;;  %vm991_vm7 = vcmp.eq.s32.totalorder %v6724_v15, %v8596_v53  ;;  %vm384_vm8 = vcmp.eq.s32.totalorder %v6784_v20, %v8555_v46 }
 0x147   :  { %6164 = vmatpush.msk.msrb.mxu3 %vm1024_vm9, %v6651_v13  ;;  %6114 = vmatpush.msk.msrb.mxu0 %vm575_vm10, %v6651_v13  ;;  %vm896_vm9 = vcmp.eq.s32.totalorder %v6787_v21, %v8555_v46  ;;  %vm447_vm10 = vcmp.eq.s32.totalorder %v6740_v16, %v8596_v53 }
 0x148   :  { %6130 = vmatpush.msk.msrb.mxu1 %vm1087_vm11, %v6651_v13  ;;  %6149 = vmatpush.msk.msrb.mxu2 %vm480_vm12, %v6651_v13  ;;  %vm959_vm11 = vcmp.eq.s32.totalorder %v6751_v17, %v8596_v53  ;;  %vm352_vm12 = vcmp.eq.s32.totalorder %v6802_v22, %v8555_v46 }
 0x149   :  { %6165 = vmatpush.msk.msrb.mxu3 %vm992_vm13, %v6651_v13  ;;  %6115 = vmatpush.msk.msrb.mxu0 %vm543_vm14, %v6651_v13  ;;  %vm864_vm13 = vcmp.eq.s32.totalorder %v6805_v23, %v8555_v46  ;;  %vm415_vm14 = vcmp.eq.s32.totalorder %v6766_v18, %v8596_v53 }
 0x14a   :  { %6131 = vmatpush.msk.msrb.mxu1 %vm1055_vm15, %v6651_v13  ;;  %6150 = vmatpush.msk.msrb.mxu2 %vm448_vm0, %v6651_v13  ;;  %vm927_vm15 = vcmp.eq.s32.totalorder %v6769_v19, %v8596_v53  ;;  %vm320_vm0 = vcmp.eq.s32.totalorder %v6820_v24, %v8555_v46 }
 0x14b   :  { %6166 = vmatpush.msk.msrb.mxu3 %vm960_vm1, %v6651_v13  ;;  %6116 = vmatpush.msk.msrb.mxu0 %vm511_vm2, %v6651_v13  ;;  %vm832_vm1 = vcmp.eq.s32.totalorder %v6823_v25, %v8555_v46  ;;  %vm383_vm2 = vcmp.eq.s32.totalorder %v6784_v20, %v8596_v53 }
 0x14c   :  { %6132 = vmatpush.msk.msrb.mxu1 %vm1023_vm3, %v6651_v13  ;;  %6151 = vmatpush.msk.msrb.mxu2 %vm416_vm4, %v6651_v13  ;;  %vm895_vm3 = vcmp.eq.s32.totalorder %v6787_v21, %v8596_v53  ;;  %vm288_vm4 = vcmp.eq.s32.totalorder %v6838_v26, %v8555_v46 }
 0x14d   :  { %6167 = vmatpush.msk.msrb.mxu3 %vm928_vm5, %v6651_v13  ;;  %6117 = vmatpush.msk.msrb.mxu0 %vm479_vm6, %v6651_v13  ;;  %vm800_vm5 = vcmp.eq.s32.totalorder %v6841_v27, %v8555_v46  ;;  %vm351_vm6 = vcmp.eq.s32.totalorder %v6802_v22, %v8596_v53 }
 0x14e   :  { %6133 = vmatpush.msk.msrb.mxu1 %vm991_vm7, %v6651_v13  ;;  %6152 = vmatpush.msk.msrb.mxu2 %vm384_vm8, %v6651_v13  ;;  %vm863_vm7 = vcmp.eq.s32.totalorder %v6805_v23, %v8596_v53  ;;  %vm256_vm8 = vcmp.eq.s32.totalorder %v6856_v28, %v8555_v46 }
 0x14f   :  { %6168 = vmatpush.msk.msrb.mxu3 %vm896_vm9, %v6651_v13  ;;  %6118 = vmatpush.msk.msrb.mxu0 %vm447_vm10, %v6651_v13  ;;  %vm768_vm9 = vcmp.eq.s32.totalorder %v6859_v29, %v8555_v46  ;;  %vm319_vm10 = vcmp.eq.s32.totalorder %v6820_v24, %v8596_v53 }
 0x150   :  { %6134 = vmatpush.msk.msrb.mxu1 %vm959_vm11, %v6651_v13  ;;  %6153 = vmatpush.msk.msrb.mxu2 %vm352_vm12, %v6651_v13  ;;  %vm831_vm11 = vcmp.eq.s32.totalorder %v6823_v25, %v8596_v53  ;;  %vm224_vm12 = vcmp.eq.s32.totalorder %v6874_v30, %v8555_v46 }
 0x151   :  { %6169 = vmatpush.msk.msrb.mxu3 %vm864_vm13, %v6651_v13  ;;  %6119 = vmatpush.msk.msrb.mxu0 %vm415_vm14, %v6651_v13  ;;  %vm736_vm13 = vcmp.eq.s32.totalorder %v6877_v31, %v8555_v46  ;;  %vm287_vm14 = vcmp.eq.s32.totalorder %v6838_v26, %v8596_v53 }
 0x152   :  { %6135 = vmatpush.msk.msrb.mxu1 %vm927_vm15, %v6651_v13  ;;  %6154 = vmatpush.msk.msrb.mxu2 %vm320_vm0, %v6651_v13  ;;  %vm799_vm15 = vcmp.eq.s32.totalorder %v6841_v27, %v8596_v53  ;;  %vm192_vm0 = vcmp.eq.s32.totalorder %v6892_v32, %v8555_v46 }
 0x153   :  { %6170 = vmatpush.msk.msrb.mxu3 %vm832_vm1, %v6651_v13  ;;  %6120 = vmatpush.msk.msrb.mxu0 %vm383_vm2, %v6651_v13  ;;  %vm704_vm1 = vcmp.eq.s32.totalorder %v6895_v33, %v8555_v46  ;;  %vm255_vm2 = vcmp.eq.s32.totalorder %v6856_v28, %v8596_v53 }
 0x154   :  { %6136 = vmatpush.msk.msrb.mxu1 %vm895_vm3, %v6651_v13  ;;  %6155 = vmatpush.msk.msrb.mxu2 %vm288_vm4, %v6651_v13  ;;  %vm767_vm3 = vcmp.eq.s32.totalorder %v6859_v29, %v8596_v53  ;;  %vm160_vm4 = vcmp.eq.s32.totalorder %v6910_v34, %v8555_v46 }
 0x155   :  { %6171 = vmatpush.msk.msrb.mxu3 %vm800_vm5, %v6651_v13  ;;  %6121 = vmatpush.msk.msrb.mxu0 %vm351_vm6, %v6651_v13  ;;  %vm672_vm5 = vcmp.eq.s32.totalorder %v6913_v35, %v8555_v46  ;;  %vm223_vm6 = vcmp.eq.s32.totalorder %v6874_v30, %v8596_v53 }
 0x156   :  { %6137 = vmatpush.msk.msrb.mxu1 %vm863_vm7, %v6651_v13  ;;  %6156 = vmatpush.msk.msrb.mxu2 %vm256_vm8, %v6651_v13  ;;  %vm735_vm7 = vcmp.eq.s32.totalorder %v6877_v31, %v8596_v53  ;;  %vm128_vm8 = vcmp.eq.s32.totalorder %v6674_v1, %v8555_v46 }
 0x157   :  { %6172 = vmatpush.msk.msrb.mxu3 %vm768_vm9, %v6651_v13  ;;  %6122 = vmatpush.msk.msrb.mxu0 %vm319_vm10, %v6651_v13  ;;  %vm640_vm9 = vcmp.eq.s32.totalorder %v6928_v36, %v8555_v46  ;;  %vm610_vm10 = vcmp.eq.s32.totalorder %v6677_v2, %v8757_v54 }
 0x158   :  { %6138 = vmatpush.msk.msrb.mxu1 %vm831_vm11, %v6651_v13  ;;  %6157 = vmatpush.msk.msrb.mxu2 %vm224_vm12, %v6651_v13  ;;  %vm1122_vm11 = vcmp.eq.s32.totalorder %v6680_v3, %v8757_v54  ;;  %vm191_vm12 = vcmp.eq.s32.totalorder %v6892_v32, %v8596_v53 }
 0x159   :  { %6173 = vmatpush.msk.msrb.mxu3 %vm736_vm13, %v6651_v13  ;;  %6123 = vmatpush.msk.msrb.mxu0 %vm287_vm14, %v6651_v13  ;;  %vm703_vm13 = vcmp.eq.s32.totalorder %v6895_v33, %v8596_v53  ;;  %vm578_vm14 = vcmp.eq.s32.totalorder %v6683_v4, %v8757_v54 }
 0x15a   :  { %6139 = vmatpush.msk.msrb.mxu1 %vm799_vm15, %v6651_v13  ;;  %6158 = vmatpush.msk.msrb.mxu2 %vm192_vm0, %v6651_v13  ;;  %v3560_v55 = vpop.f32.mrf.mxu2  ;;  %vm1090_vm15 = vcmp.eq.s32.totalorder %v6686_v5, %v8757_v54  ;;  %vm159_vm0 = vcmp.eq.s32.totalorder %v6910_v34, %v8596_v53 }
 0x15b   :  { %6174 = vmatpush.msk.msrb.mxu3 %vm704_vm1, %v6651_v13  ;;  %6124 = vmatpush.msk.msrb.mxu0 %vm255_vm2, %v6651_v13  ;;  %v3520_v56 = vpop.f32.mrf.mxu0  ;;  %v3580_v57 = vpop.f32.mrf.mxu3  ;;  %vm671_vm1 = vcmp.eq.s32.totalorder %v6913_v35, %v8596_v53  ;;  %vm546_vm2 = vcmp.eq.s32.totalorder %v6694_v8, %v8757_v54 }
 0x15c   :  { %6140 = vmatpush.msk.msrb.mxu1 %vm767_vm3, %v6651_v13  ;;  %6159 = vmatpush.msk.msrb.mxu2 %vm160_vm4, %v6651_v13  ;;  %v3540_v58 = vpop.f32.mrf.mxu1  ;;  %v3581_v59 = vadd.f32 %v3580_v57, %v3560_v55  ;;  %vm1058_vm3 = vcmp.eq.s32.totalorder %v6697_v9, %v8757_v54  ;;  %vm127_vm4 = vcmp.eq.s32.totalorder %v6674_v1, %v8596_v53  ;;  %v9410_v57 = vperm.slane %v9146_v37, 2 }
 0x15d   :  { %6175 = vmatpush.msk.msrb.mxu3 %vm672_vm5, %v6651_v13  ;;  %6125 = vmatpush.msk.msrb.mxu0 %vm223_vm6, %v6651_v13  ;;  %v3541_v60 = vadd.f32 %v3540_v58, %v3520_v56  ;;  %vm639_vm5 = vcmp.eq.s32.totalorder %v6928_v36, %v8596_v53  ;;  %vm609_vm6 = vcmp.eq.s32.totalorder %v6677_v2, %v8802_v63  ;;  %v9571_v58 = vperm.slane %v9146_v37, 5 }
 0x15e   :  { %6141 = vmatpush.msk.msrb.mxu1 %vm735_vm7, %v6651_v13  ;;  %6160 = vmatpush.msk.msrb.mxu2 %vm128_vm8, %v6651_v13  ;;  %4472 = vst [vmem:[#allocation7 + $0x48] sm:$0xff] %v3581_v59  ;;  %vm1121_vm7 = vcmp.eq.s32.totalorder %v6680_v3, %v8802_v63  ;;  %vm514_vm8 = vcmp.eq.s32.totalorder %v6703_v11, %v8757_v54 }
 0x15f   :  { %6176 = vmatpush.msk.msrb.mxu3 %vm640_vm9, %v6651_v13  ;;  %3879 = vmatmul.f32.vlgmr.msra.gmra.mxu2 %v8786_v61  ;;  %4471 = vst [vmem:[#allocation7 + $0x40] sm:$0xff] %v3541_v60  ;;  %vm1026_vm9 = vcmp.eq.s32.totalorder %v6706_v12, %v8757_v54 }
 0x160   :  { %3899 = vmatmul.f32.vlgmr.msra.gmra.mxu3 %v8793_v62  ;;  %6209 = vmatpush.msk.msra.mxu2 %vm610_vm10, %v6651_v13  ;;  %vm577_vm10 = vcmp.eq.s32.totalorder %v6683_v4, %v8802_v63 }
 0x161   :  { %6225 = vmatpush.msk.msra.mxu3 %vm1122_vm11, %v6651_v13  ;;  %6126 = vmatpush.msk.msrb.mxu0 %vm191_vm12, %v6651_v13  ;;  %vm1089_vm11 = vcmp.eq.s32.totalorder %v6686_v5, %v8802_v63  ;;  %vm482_vm12 = vcmp.eq.s32.totalorder %v6721_v14, %v8757_v54 }
 0x162   :  { %6142 = vmatpush.msk.msrb.mxu1 %vm703_vm13, %v6651_v13  ;;  %6210 = vmatpush.msk.msra.mxu2 %vm578_vm14, %v6651_v13  ;;  %vm994_vm13 = vcmp.eq.s32.totalorder %v6724_v15, %v8757_v54  ;;  %vm545_vm14 = vcmp.eq.s32.totalorder %v6694_v8, %v8802_v63 }
 0x163   :  { %6226 = vmatpush.msk.msra.mxu3 %vm1090_vm15, %v6651_v13  ;;  %6127 = vmatpush.msk.msrb.mxu0 %vm159_vm0, %v6651_v13  ;;  %vm1057_vm15 = vcmp.eq.s32.totalorder %v6697_v9, %v8802_v63  ;;  %vm450_vm0 = vcmp.eq.s32.totalorder %v6740_v16, %v8757_v54 }
 0x164   :  { %6143 = vmatpush.msk.msrb.mxu1 %vm671_vm1, %v6651_v13  ;;  %6211 = vmatpush.msk.msra.mxu2 %vm546_vm2, %v6651_v13  ;;  %vm962_vm1 = vcmp.eq.s32.totalorder %v6751_v17, %v8757_v54  ;;  %vm513_vm2 = vcmp.eq.s32.totalorder %v6703_v11, %v8802_v63 }
 0x165   :  { %6227 = vmatpush.msk.msra.mxu3 %vm1058_vm3, %v6651_v13  ;;  %6128 = vmatpush.msk.msrb.mxu0 %vm127_vm4, %v6651_v13  ;;  %vm1025_vm3 = vcmp.eq.s32.totalorder %v6706_v12, %v8802_v63  ;;  %vm418_vm4 = vcmp.eq.s32.totalorder %v6766_v18, %v8757_v54 }
 0x166   :  { %6144 = vmatpush.msk.msrb.mxu1 %vm639_vm5, %v6651_v13  ;;  %3839 = vmatmul.f32.vlgmr.msra.gmra.mxu0 %v8786_v61  ;;  %vm930_vm5 = vcmp.eq.s32.totalorder %v6769_v19, %v8757_v54 }
 0x167   :  { %3859 = vmatmul.f32.vlgmr.msra.gmra.mxu1 %v8793_v62  ;;  %6177 = vmatpush.msk.msra.mxu0 %vm609_vm6, %v6651_v13  ;;  %vm481_vm6 = vcmp.eq.s32.totalorder %v6721_v14, %v8802_v63 }
 0x168   :  { %6193 = vmatpush.msk.msra.mxu1 %vm1121_vm7, %v6651_v13  ;;  %6212 = vmatpush.msk.msra.mxu2 %vm514_vm8, %v6651_v13  ;;  %vm993_vm7 = vcmp.eq.s32.totalorder %v6724_v15, %v8802_v63  ;;  %vm386_vm8 = vcmp.eq.s32.totalorder %v6784_v20, %v8757_v54 }
 0x169   :  { %6228 = vmatpush.msk.msra.mxu3 %vm1026_vm9, %v6651_v13  ;;  %6178 = vmatpush.msk.msra.mxu0 %vm577_vm10, %v6651_v13  ;;  %vm898_vm9 = vcmp.eq.s32.totalorder %v6787_v21, %v8757_v54  ;;  %vm449_vm10 = vcmp.eq.s32.totalorder %v6740_v16, %v8802_v63 }
 0x16a   :  { %6194 = vmatpush.msk.msra.mxu1 %vm1089_vm11, %v6651_v13  ;;  %6213 = vmatpush.msk.msra.mxu2 %vm482_vm12, %v6651_v13  ;;  %vm961_vm11 = vcmp.eq.s32.totalorder %v6751_v17, %v8802_v63  ;;  %vm354_vm12 = vcmp.eq.s32.totalorder %v6802_v22, %v8757_v54 }
 0x16b   :  { %6229 = vmatpush.msk.msra.mxu3 %vm994_vm13, %v6651_v13  ;;  %6179 = vmatpush.msk.msra.mxu0 %vm545_vm14, %v6651_v13  ;;  %vm866_vm13 = vcmp.eq.s32.totalorder %v6805_v23, %v8757_v54  ;;  %vm417_vm14 = vcmp.eq.s32.totalorder %v6766_v18, %v8802_v63 }
 0x16c   :  { %6195 = vmatpush.msk.msra.mxu1 %vm1057_vm15, %v6651_v13  ;;  %6214 = vmatpush.msk.msra.mxu2 %vm450_vm0, %v6651_v13  ;;  %vm929_vm15 = vcmp.eq.s32.totalorder %v6769_v19, %v8802_v63  ;;  %vm322_vm0 = vcmp.eq.s32.totalorder %v6820_v24, %v8757_v54 }
 0x16d   :  { %6230 = vmatpush.msk.msra.mxu3 %vm962_vm1, %v6651_v13  ;;  %6180 = vmatpush.msk.msra.mxu0 %vm513_vm2, %v6651_v13  ;;  %vm834_vm1 = vcmp.eq.s32.totalorder %v6823_v25, %v8757_v54  ;;  %vm385_vm2 = vcmp.eq.s32.totalorder %v6784_v20, %v8802_v63 }
 0x16e   :  { %6196 = vmatpush.msk.msra.mxu1 %vm1025_vm3, %v6651_v13  ;;  %6215 = vmatpush.msk.msra.mxu2 %vm418_vm4, %v6651_v13  ;;  %vm897_vm3 = vcmp.eq.s32.totalorder %v6787_v21, %v8802_v63  ;;  %vm290_vm4 = vcmp.eq.s32.totalorder %v6838_v26, %v8757_v54 }
 0x16f   :  { %6231 = vmatpush.msk.msra.mxu3 %vm930_vm5, %v6651_v13  ;;  %6181 = vmatpush.msk.msra.mxu0 %vm481_vm6, %v6651_v13  ;;  %vm802_vm5 = vcmp.eq.s32.totalorder %v6841_v27, %v8757_v54  ;;  %vm353_vm6 = vcmp.eq.s32.totalorder %v6802_v22, %v8802_v63 }
 0x170   :  { %6197 = vmatpush.msk.msra.mxu1 %vm993_vm7, %v6651_v13  ;;  %6216 = vmatpush.msk.msra.mxu2 %vm386_vm8, %v6651_v13  ;;  %vm865_vm7 = vcmp.eq.s32.totalorder %v6805_v23, %v8802_v63  ;;  %vm258_vm8 = vcmp.eq.s32.totalorder %v6856_v28, %v8757_v54 }
 0x171   :  { %6232 = vmatpush.msk.msra.mxu3 %vm898_vm9, %v6651_v13  ;;  %6182 = vmatpush.msk.msra.mxu0 %vm449_vm10, %v6651_v13  ;;  %vm770_vm9 = vcmp.eq.s32.totalorder %v6859_v29, %v8757_v54  ;;  %vm321_vm10 = vcmp.eq.s32.totalorder %v6820_v24, %v8802_v63 }
 0x172   :  { %6198 = vmatpush.msk.msra.mxu1 %vm961_vm11, %v6651_v13  ;;  %6217 = vmatpush.msk.msra.mxu2 %vm354_vm12, %v6651_v13  ;;  %vm833_vm11 = vcmp.eq.s32.totalorder %v6823_v25, %v8802_v63  ;;  %vm226_vm12 = vcmp.eq.s32.totalorder %v6874_v30, %v8757_v54 }
 0x173   :  { %6233 = vmatpush.msk.msra.mxu3 %vm866_vm13, %v6651_v13  ;;  %6183 = vmatpush.msk.msra.mxu0 %vm417_vm14, %v6651_v13  ;;  %vm738_vm13 = vcmp.eq.s32.totalorder %v6877_v31, %v8757_v54  ;;  %vm289_vm14 = vcmp.eq.s32.totalorder %v6838_v26, %v8802_v63 }
 0x174   :  { %6199 = vmatpush.msk.msra.mxu1 %vm929_vm15, %v6651_v13  ;;  %6218 = vmatpush.msk.msra.mxu2 %vm322_vm0, %v6651_v13  ;;  %vm801_vm15 = vcmp.eq.s32.totalorder %v6841_v27, %v8802_v63  ;;  %vm194_vm0 = vcmp.eq.s32.totalorder %v6892_v32, %v8757_v54 }
 0x175   :  { %6234 = vmatpush.msk.msra.mxu3 %vm834_vm1, %v6651_v13  ;;  %6184 = vmatpush.msk.msra.mxu0 %vm385_vm2, %v6651_v13  ;;  %vm706_vm1 = vcmp.eq.s32.totalorder %v6895_v33, %v8757_v54  ;;  %vm257_vm2 = vcmp.eq.s32.totalorder %v6856_v28, %v8802_v63 }
 0x176   :  { %6200 = vmatpush.msk.msra.mxu1 %vm897_vm3, %v6651_v13  ;;  %6219 = vmatpush.msk.msra.mxu2 %vm290_vm4, %v6651_v13  ;;  %vm769_vm3 = vcmp.eq.s32.totalorder %v6859_v29, %v8802_v63  ;;  %vm162_vm4 = vcmp.eq.s32.totalorder %v6910_v34, %v8757_v54 }
 0x177   :  { %6235 = vmatpush.msk.msra.mxu3 %vm802_vm5, %v6651_v13  ;;  %6185 = vmatpush.msk.msra.mxu0 %vm353_vm6, %v6651_v13  ;;  %vm674_vm5 = vcmp.eq.s32.totalorder %v6913_v35, %v8757_v54  ;;  %vm225_vm6 = vcmp.eq.s32.totalorder %v6874_v30, %v8802_v63 }
 0x178   :  { %6201 = vmatpush.msk.msra.mxu1 %vm865_vm7, %v6651_v13  ;;  %6220 = vmatpush.msk.msra.mxu2 %vm258_vm8, %v6651_v13  ;;  %vm737_vm7 = vcmp.eq.s32.totalorder %v6877_v31, %v8802_v63  ;;  %vm130_vm8 = vcmp.eq.s32.totalorder %v6674_v1, %v8757_v54 }
 0x179   :  { %6236 = vmatpush.msk.msra.mxu3 %vm770_vm9, %v6651_v13  ;;  %6186 = vmatpush.msk.msra.mxu0 %vm321_vm10, %v6651_v13  ;;  %vm642_vm9 = vcmp.eq.s32.totalorder %v6928_v36, %v8757_v54  ;;  %vm612_vm10 = vcmp.eq.s32.totalorder %v6677_v2, %v8963_v0 }
 0x17a   :  { %6202 = vmatpush.msk.msra.mxu1 %vm833_vm11, %v6651_v13  ;;  %6221 = vmatpush.msk.msra.mxu2 %vm226_vm12, %v6651_v13  ;;  %vm1124_vm11 = vcmp.eq.s32.totalorder %v6680_v3, %v8963_v0  ;;  %vm193_vm12 = vcmp.eq.s32.totalorder %v6892_v32, %v8802_v63 }
 0x17b   :  { %6237 = vmatpush.msk.msra.mxu3 %vm738_vm13, %v6651_v13  ;;  %6187 = vmatpush.msk.msra.mxu0 %vm289_vm14, %v6651_v13  ;;  %vm705_vm13 = vcmp.eq.s32.totalorder %v6895_v33, %v8802_v63  ;;  %vm580_vm14 = vcmp.eq.s32.totalorder %v6683_v4, %v8963_v0 }
 0x17c   :  { %6203 = vmatpush.msk.msra.mxu1 %vm801_vm15, %v6651_v13  ;;  %6222 = vmatpush.msk.msra.mxu2 %vm194_vm0, %v6651_v13  ;;  %v3640_v6 = vpop.f32.mrf.mxu2  ;;  %vm1092_vm15 = vcmp.eq.s32.totalorder %v6686_v5, %v8963_v0  ;;  %vm161_vm0 = vcmp.eq.s32.totalorder %v6910_v34, %v8802_v63 }
 0x17d   :  { %6238 = vmatpush.msk.msra.mxu3 %vm706_vm1, %v6651_v13  ;;  %6188 = vmatpush.msk.msra.mxu0 %vm257_vm2, %v6651_v13  ;;  %v3600_v7 = vpop.f32.mrf.mxu0  ;;  %v3660_v10 = vpop.f32.mrf.mxu3  ;;  %vm673_vm1 = vcmp.eq.s32.totalorder %v6913_v35, %v8802_v63  ;;  %vm548_vm2 = vcmp.eq.s32.totalorder %v6694_v8, %v8963_v0 }
 0x17e   :  { %6204 = vmatpush.msk.msra.mxu1 %vm769_vm3, %v6651_v13  ;;  %6223 = vmatpush.msk.msra.mxu2 %vm162_vm4, %v6651_v13  ;;  %v3620_v38 = vpop.f32.mrf.mxu1  ;;  %v3661_v39 = vadd.f32 %v3660_v10, %v3640_v6  ;;  %vm1060_vm3 = vcmp.eq.s32.totalorder %v6697_v9, %v8963_v0  ;;  %vm129_vm4 = vcmp.eq.s32.totalorder %v6674_v1, %v8802_v63  ;;  %v9600_v6 = vld [vmem:[#allocation5] sm:$0xff]  ;;  %v9616_v10 = vperm.slane %v9146_v37, 4 }
 0x17f   :  { %6239 = vmatpush.msk.msra.mxu3 %vm674_vm5, %v6651_v13  ;;  %6189 = vmatpush.msk.msra.mxu0 %vm225_vm6, %v6651_v13  ;;  %v3621_v40 = vadd.f32 %v3620_v38, %v3600_v7  ;;  %vm641_vm5 = vcmp.eq.s32.totalorder %v6928_v36, %v8802_v63  ;;  %vm611_vm6 = vcmp.eq.s32.totalorder %v6677_v2, %v9004_v41  ;;  %v9607_v7 = vld [vmem:[#allocation5 + $0x8] sm:$0xff]  ;;  %v9777_v38 = vperm.slane %v9146_v37, 7 }
 0x180   :  { %6205 = vmatpush.msk.msra.mxu1 %vm737_vm7, %v6651_v13  ;;  %6224 = vmatpush.msk.msra.mxu2 %vm130_vm8, %v6651_v13  ;;  %4474 = vst [vmem:[#allocation7 + $0x58] sm:$0xff] %v3661_v39  ;;  %vm1123_vm7 = vcmp.eq.s32.totalorder %v6680_v3, %v9004_v41  ;;  %vm516_vm8 = vcmp.eq.s32.totalorder %v6703_v11, %v8963_v0 }
 0x181   :  { %6240 = vmatpush.msk.msra.mxu3 %vm642_vm9, %v6651_v13  ;;  %3959 = vmatmul.f32.vlgmr.msrb.gmra.mxu2 %v8786_v61  ;;  %4473 = vst [vmem:[#allocation7 + $0x50] sm:$0xff] %v3621_v40  ;;  %vm1028_vm9 = vcmp.eq.s32.totalorder %v6706_v12, %v8963_v0 }
 0x182   :  { %3979 = vmatmul.f32.vlgmr.msrb.gmra.mxu3 %v8793_v62  ;;  %6273 = vmatpush.msk.msrb.mxu2 %vm612_vm10, %v6651_v13  ;;  %vm579_vm10 = vcmp.eq.s32.totalorder %v6683_v4, %v9004_v41 }
 0x183   :  { %6289 = vmatpush.msk.msrb.mxu3 %vm1124_vm11, %v6651_v13  ;;  %6190 = vmatpush.msk.msra.mxu0 %vm193_vm12, %v6651_v13  ;;  %vm1091_vm11 = vcmp.eq.s32.totalorder %v6686_v5, %v9004_v41  ;;  %vm484_vm12 = vcmp.eq.s32.totalorder %v6721_v14, %v8963_v0 }
 0x184   :  { %6206 = vmatpush.msk.msra.mxu1 %vm705_vm13, %v6651_v13  ;;  %6274 = vmatpush.msk.msrb.mxu2 %vm580_vm14, %v6651_v13  ;;  %vm996_vm13 = vcmp.eq.s32.totalorder %v6724_v15, %v8963_v0  ;;  %vm547_vm14 = vcmp.eq.s32.totalorder %v6694_v8, %v9004_v41 }
 0x185   :  { %6290 = vmatpush.msk.msrb.mxu3 %vm1092_vm15, %v6651_v13  ;;  %6191 = vmatpush.msk.msra.mxu0 %vm161_vm0, %v6651_v13  ;;  %vm1059_vm15 = vcmp.eq.s32.totalorder %v6697_v9, %v9004_v41  ;;  %vm452_vm0 = vcmp.eq.s32.totalorder %v6740_v16, %v8963_v0 }
 0x186   :  { %6207 = vmatpush.msk.msra.mxu1 %vm673_vm1, %v6651_v13  ;;  %6275 = vmatpush.msk.msrb.mxu2 %vm548_vm2, %v6651_v13  ;;  %vm964_vm1 = vcmp.eq.s32.totalorder %v6751_v17, %v8963_v0  ;;  %vm515_vm2 = vcmp.eq.s32.totalorder %v6703_v11, %v9004_v41 }
 0x187   :  { %6291 = vmatpush.msk.msrb.mxu3 %vm1060_vm3, %v6651_v13  ;;  %6192 = vmatpush.msk.msra.mxu0 %vm129_vm4, %v6651_v13  ;;  %vm1027_vm3 = vcmp.eq.s32.totalorder %v6706_v12, %v9004_v41  ;;  %vm420_vm4 = vcmp.eq.s32.totalorder %v6766_v18, %v8963_v0 }
 0x188   :  { %6208 = vmatpush.msk.msra.mxu1 %vm641_vm5, %v6651_v13  ;;  %3919 = vmatmul.f32.vlgmr.msrb.gmra.mxu0 %v8786_v61  ;;  %vm932_vm5 = vcmp.eq.s32.totalorder %v6769_v19, %v8963_v0 }
 0x189   :  { %3939 = vmatmul.f32.vlgmr.msrb.gmra.mxu1 %v8793_v62  ;;  %6241 = vmatpush.msk.msrb.mxu0 %vm611_vm6, %v6651_v13  ;;  %vm483_vm6 = vcmp.eq.s32.totalorder %v6721_v14, %v9004_v41 }
 0x18a   :  { %6257 = vmatpush.msk.msrb.mxu1 %vm1123_vm7, %v6651_v13  ;;  %6276 = vmatpush.msk.msrb.mxu2 %vm516_vm8, %v6651_v13  ;;  %vm995_vm7 = vcmp.eq.s32.totalorder %v6724_v15, %v9004_v41  ;;  %vm388_vm8 = vcmp.eq.s32.totalorder %v6784_v20, %v8963_v0 }
 0x18b   :  { %6292 = vmatpush.msk.msrb.mxu3 %vm1028_vm9, %v6651_v13  ;;  %6242 = vmatpush.msk.msrb.mxu0 %vm579_vm10, %v6651_v13  ;;  %vm900_vm9 = vcmp.eq.s32.totalorder %v6787_v21, %v8963_v0  ;;  %vm451_vm10 = vcmp.eq.s32.totalorder %v6740_v16, %v9004_v41 }
 0x18c   :  { %6258 = vmatpush.msk.msrb.mxu1 %vm1091_vm11, %v6651_v13  ;;  %6277 = vmatpush.msk.msrb.mxu2 %vm484_vm12, %v6651_v13  ;;  %vm963_vm11 = vcmp.eq.s32.totalorder %v6751_v17, %v9004_v41  ;;  %vm356_vm12 = vcmp.eq.s32.totalorder %v6802_v22, %v8963_v0 }
 0x18d   :  { %6293 = vmatpush.msk.msrb.mxu3 %vm996_vm13, %v6651_v13  ;;  %6243 = vmatpush.msk.msrb.mxu0 %vm547_vm14, %v6651_v13  ;;  %vm868_vm13 = vcmp.eq.s32.totalorder %v6805_v23, %v8963_v0  ;;  %vm419_vm14 = vcmp.eq.s32.totalorder %v6766_v18, %v9004_v41 }
 0x18e   :  { %6259 = vmatpush.msk.msrb.mxu1 %vm1059_vm15, %v6651_v13  ;;  %6278 = vmatpush.msk.msrb.mxu2 %vm452_vm0, %v6651_v13  ;;  %vm931_vm15 = vcmp.eq.s32.totalorder %v6769_v19, %v9004_v41  ;;  %vm324_vm0 = vcmp.eq.s32.totalorder %v6820_v24, %v8963_v0 }
 0x18f   :  { %6294 = vmatpush.msk.msrb.mxu3 %vm964_vm1, %v6651_v13  ;;  %6244 = vmatpush.msk.msrb.mxu0 %vm515_vm2, %v6651_v13  ;;  %vm836_vm1 = vcmp.eq.s32.totalorder %v6823_v25, %v8963_v0  ;;  %vm387_vm2 = vcmp.eq.s32.totalorder %v6784_v20, %v9004_v41 }
 0x190   :  { %6260 = vmatpush.msk.msrb.mxu1 %vm1027_vm3, %v6651_v13  ;;  %6279 = vmatpush.msk.msrb.mxu2 %vm420_vm4, %v6651_v13  ;;  %vm899_vm3 = vcmp.eq.s32.totalorder %v6787_v21, %v9004_v41  ;;  %vm292_vm4 = vcmp.eq.s32.totalorder %v6838_v26, %v8963_v0 }
 0x191   :  { %6295 = vmatpush.msk.msrb.mxu3 %vm932_vm5, %v6651_v13  ;;  %6245 = vmatpush.msk.msrb.mxu0 %vm483_vm6, %v6651_v13  ;;  %vm804_vm5 = vcmp.eq.s32.totalorder %v6841_v27, %v8963_v0  ;;  %vm355_vm6 = vcmp.eq.s32.totalorder %v6802_v22, %v9004_v41 }
 0x192   :  { %6261 = vmatpush.msk.msrb.mxu1 %vm995_vm7, %v6651_v13  ;;  %6280 = vmatpush.msk.msrb.mxu2 %vm388_vm8, %v6651_v13  ;;  %vm867_vm7 = vcmp.eq.s32.totalorder %v6805_v23, %v9004_v41  ;;  %vm260_vm8 = vcmp.eq.s32.totalorder %v6856_v28, %v8963_v0 }
 0x193   :  { %6296 = vmatpush.msk.msrb.mxu3 %vm900_vm9, %v6651_v13  ;;  %6246 = vmatpush.msk.msrb.mxu0 %vm451_vm10, %v6651_v13  ;;  %vm772_vm9 = vcmp.eq.s32.totalorder %v6859_v29, %v8963_v0  ;;  %vm323_vm10 = vcmp.eq.s32.totalorder %v6820_v24, %v9004_v41 }
 0x194   :  { %6262 = vmatpush.msk.msrb.mxu1 %vm963_vm11, %v6651_v13  ;;  %6281 = vmatpush.msk.msrb.mxu2 %vm356_vm12, %v6651_v13  ;;  %vm835_vm11 = vcmp.eq.s32.totalorder %v6823_v25, %v9004_v41  ;;  %vm228_vm12 = vcmp.eq.s32.totalorder %v6874_v30, %v8963_v0 }
 0x195   :  { %6297 = vmatpush.msk.msrb.mxu3 %vm868_vm13, %v6651_v13  ;;  %6247 = vmatpush.msk.msrb.mxu0 %vm419_vm14, %v6651_v13  ;;  %vm740_vm13 = vcmp.eq.s32.totalorder %v6877_v31, %v8963_v0  ;;  %vm291_vm14 = vcmp.eq.s32.totalorder %v6838_v26, %v9004_v41 }
 0x196   :  { %6263 = vmatpush.msk.msrb.mxu1 %vm931_vm15, %v6651_v13  ;;  %6282 = vmatpush.msk.msrb.mxu2 %vm324_vm0, %v6651_v13  ;;  %vm803_vm15 = vcmp.eq.s32.totalorder %v6841_v27, %v9004_v41  ;;  %vm196_vm0 = vcmp.eq.s32.totalorder %v6892_v32, %v8963_v0 }
 0x197   :  { %6298 = vmatpush.msk.msrb.mxu3 %vm836_vm1, %v6651_v13  ;;  %6248 = vmatpush.msk.msrb.mxu0 %vm387_vm2, %v6651_v13  ;;  %vm708_vm1 = vcmp.eq.s32.totalorder %v6895_v33, %v8963_v0  ;;  %vm259_vm2 = vcmp.eq.s32.totalorder %v6856_v28, %v9004_v41 }
 0x198   :  { %6264 = vmatpush.msk.msrb.mxu1 %vm899_vm3, %v6651_v13  ;;  %6283 = vmatpush.msk.msrb.mxu2 %vm292_vm4, %v6651_v13  ;;  %vm771_vm3 = vcmp.eq.s32.totalorder %v6859_v29, %v9004_v41  ;;  %vm164_vm4 = vcmp.eq.s32.totalorder %v6910_v34, %v8963_v0 }
 0x199   :  { %6299 = vmatpush.msk.msrb.mxu3 %vm804_vm5, %v6651_v13  ;;  %6249 = vmatpush.msk.msrb.mxu0 %vm355_vm6, %v6651_v13  ;;  %vm676_vm5 = vcmp.eq.s32.totalorder %v6913_v35, %v8963_v0  ;;  %vm227_vm6 = vcmp.eq.s32.totalorder %v6874_v30, %v9004_v41 }
 0x19a   :  { %6265 = vmatpush.msk.msrb.mxu1 %vm867_vm7, %v6651_v13  ;;  %6284 = vmatpush.msk.msrb.mxu2 %vm260_vm8, %v6651_v13  ;;  %vm739_vm7 = vcmp.eq.s32.totalorder %v6877_v31, %v9004_v41  ;;  %vm132_vm8 = vcmp.eq.s32.totalorder %v6674_v1, %v8963_v0 }
 0x19b   :  { %6300 = vmatpush.msk.msrb.mxu3 %vm772_vm9, %v6651_v13  ;;  %6250 = vmatpush.msk.msrb.mxu0 %vm323_vm10, %v6651_v13  ;;  %vm644_vm9 = vcmp.eq.s32.totalorder %v6928_v36, %v8963_v0  ;;  %vm614_vm10 = vcmp.eq.s32.totalorder %v6677_v2, %v9167_v42 }
 0x19c   :  { %6266 = vmatpush.msk.msrb.mxu1 %vm835_vm11, %v6651_v13  ;;  %6285 = vmatpush.msk.msrb.mxu2 %vm228_vm12, %v6651_v13  ;;  %vm1126_vm11 = vcmp.eq.s32.totalorder %v6680_v3, %v9167_v42  ;;  %vm195_vm12 = vcmp.eq.s32.totalorder %v6892_v32, %v9004_v41 }
 0x19d   :  { %6301 = vmatpush.msk.msrb.mxu3 %vm740_vm13, %v6651_v13  ;;  %6251 = vmatpush.msk.msrb.mxu0 %vm291_vm14, %v6651_v13  ;;  %vm707_vm13 = vcmp.eq.s32.totalorder %v6895_v33, %v9004_v41  ;;  %vm582_vm14 = vcmp.eq.s32.totalorder %v6683_v4, %v9167_v42 }
 0x19e   :  { %6267 = vmatpush.msk.msrb.mxu1 %vm803_vm15, %v6651_v13  ;;  %6286 = vmatpush.msk.msrb.mxu2 %vm196_vm0, %v6651_v13  ;;  %v3720_v43 = vpop.f32.mrf.mxu2  ;;  %vm1094_vm15 = vcmp.eq.s32.totalorder %v6686_v5, %v9167_v42  ;;  %vm163_vm0 = vcmp.eq.s32.totalorder %v6910_v34, %v9004_v41 }
 0x19f   :  { %6302 = vmatpush.msk.msrb.mxu3 %vm708_vm1, %v6651_v13  ;;  %6252 = vmatpush.msk.msrb.mxu0 %vm259_vm2, %v6651_v13  ;;  %v3680_v44 = vpop.f32.mrf.mxu0  ;;  %v3740_v45 = vpop.f32.mrf.mxu3  ;;  %vm675_vm1 = vcmp.eq.s32.totalorder %v6913_v35, %v9004_v41  ;;  %vm550_vm2 = vcmp.eq.s32.totalorder %v6694_v8, %v9167_v42 }
 0x1a0   :  { %6268 = vmatpush.msk.msrb.mxu1 %vm771_vm3, %v6651_v13  ;;  %6287 = vmatpush.msk.msrb.mxu2 %vm164_vm4, %v6651_v13  ;;  %v3700_v46 = vpop.f32.mrf.mxu1  ;;  %v3741_v47 = vadd.f32 %v3740_v45, %v3720_v43  ;;  %vm1062_vm3 = vcmp.eq.s32.totalorder %v6697_v9, %v9167_v42  ;;  %vm131_vm4 = vcmp.eq.s32.totalorder %v6674_v1, %v9004_v41  ;;  %v9818_v45 = vperm.slane %v9146_v37, 6 }
 0x1a1   :  { %6303 = vmatpush.msk.msrb.mxu3 %vm676_vm5, %v6651_v13  ;;  %6253 = vmatpush.msk.msrb.mxu0 %vm227_vm6, %v6651_v13  ;;  %v3701_v48 = vadd.f32 %v3700_v46, %v3680_v44  ;;  %vm643_vm5 = vcmp.eq.s32.totalorder %v6928_v36, %v9004_v41  ;;  %vm613_vm6 = vcmp.eq.s32.totalorder %v6677_v2, %v9208_v49 }
 0x1a2   :  { %6269 = vmatpush.msk.msrb.mxu1 %vm739_vm7, %v6651_v13  ;;  %6288 = vmatpush.msk.msrb.mxu2 %vm132_vm8, %v6651_v13  ;;  %4476 = vst [vmem:[#allocation7 + $0x68] sm:$0xff] %v3741_v47  ;;  %vm1125_vm7 = vcmp.eq.s32.totalorder %v6680_v3, %v9208_v49  ;;  %vm518_vm8 = vcmp.eq.s32.totalorder %v6703_v11, %v9167_v42 }
 0x1a3   :  { %6304 = vmatpush.msk.msrb.mxu3 %vm644_vm9, %v6651_v13  ;;  %4039 = vmatmul.f32.vlgmr.msra.gmra.mxu2 %v8786_v61  ;;  %4475 = vst [vmem:[#allocation7 + $0x60] sm:$0xff] %v3701_v48  ;;  %vm1030_vm9 = vcmp.eq.s32.totalorder %v6706_v12, %v9167_v42 }
 0x1a4   :  { %4059 = vmatmul.f32.vlgmr.msra.gmra.mxu3 %v8793_v62  ;;  %6337 = vmatpush.msk.msra.mxu2 %vm614_vm10, %v6651_v13  ;;  %vm581_vm10 = vcmp.eq.s32.totalorder %v6683_v4, %v9208_v49 }
 0x1a5   :  { %6353 = vmatpush.msk.msra.mxu3 %vm1126_vm11, %v6651_v13  ;;  %6254 = vmatpush.msk.msrb.mxu0 %vm195_vm12, %v6651_v13  ;;  %vm1093_vm11 = vcmp.eq.s32.totalorder %v6686_v5, %v9208_v49  ;;  %vm486_vm12 = vcmp.eq.s32.totalorder %v6721_v14, %v9167_v42 }
 0x1a6   :  { %6270 = vmatpush.msk.msrb.mxu1 %vm707_vm13, %v6651_v13  ;;  %6338 = vmatpush.msk.msra.mxu2 %vm582_vm14, %v6651_v13  ;;  %vm998_vm13 = vcmp.eq.s32.totalorder %v6724_v15, %v9167_v42  ;;  %vm549_vm14 = vcmp.eq.s32.totalorder %v6694_v8, %v9208_v49 }
 0x1a7   :  { %6354 = vmatpush.msk.msra.mxu3 %vm1094_vm15, %v6651_v13  ;;  %6255 = vmatpush.msk.msrb.mxu0 %vm163_vm0, %v6651_v13  ;;  %vm1061_vm15 = vcmp.eq.s32.totalorder %v6697_v9, %v9208_v49  ;;  %vm454_vm0 = vcmp.eq.s32.totalorder %v6740_v16, %v9167_v42 }
 0x1a8   :  { %6271 = vmatpush.msk.msrb.mxu1 %vm675_vm1, %v6651_v13  ;;  %6339 = vmatpush.msk.msra.mxu2 %vm550_vm2, %v6651_v13  ;;  %vm966_vm1 = vcmp.eq.s32.totalorder %v6751_v17, %v9167_v42  ;;  %vm517_vm2 = vcmp.eq.s32.totalorder %v6703_v11, %v9208_v49 }
 0x1a9   :  { %6355 = vmatpush.msk.msra.mxu3 %vm1062_vm3, %v6651_v13  ;;  %6256 = vmatpush.msk.msrb.mxu0 %vm131_vm4, %v6651_v13  ;;  %vm1029_vm3 = vcmp.eq.s32.totalorder %v6706_v12, %v9208_v49  ;;  %vm422_vm4 = vcmp.eq.s32.totalorder %v6766_v18, %v9167_v42 }
 0x1aa   :  { %6272 = vmatpush.msk.msrb.mxu1 %vm643_vm5, %v6651_v13  ;;  %3999 = vmatmul.f32.vlgmr.msra.gmra.mxu0 %v8786_v61  ;;  %vm934_vm5 = vcmp.eq.s32.totalorder %v6769_v19, %v9167_v42 }
 0x1ab   :  { %4019 = vmatmul.f32.vlgmr.msra.gmra.mxu1 %v8793_v62  ;;  %6305 = vmatpush.msk.msra.mxu0 %vm613_vm6, %v6651_v13  ;;  %vm485_vm6 = vcmp.eq.s32.totalorder %v6721_v14, %v9208_v49 }
 0x1ac   :  { %6321 = vmatpush.msk.msra.mxu1 %vm1125_vm7, %v6651_v13  ;;  %6340 = vmatpush.msk.msra.mxu2 %vm518_vm8, %v6651_v13  ;;  %vm997_vm7 = vcmp.eq.s32.totalorder %v6724_v15, %v9208_v49  ;;  %vm390_vm8 = vcmp.eq.s32.totalorder %v6784_v20, %v9167_v42 }
 0x1ad   :  { %6356 = vmatpush.msk.msra.mxu3 %vm1030_vm9, %v6651_v13  ;;  %6306 = vmatpush.msk.msra.mxu0 %vm581_vm10, %v6651_v13  ;;  %vm902_vm9 = vcmp.eq.s32.totalorder %v6787_v21, %v9167_v42  ;;  %vm453_vm10 = vcmp.eq.s32.totalorder %v6740_v16, %v9208_v49 }
 0x1ae   :  { %6322 = vmatpush.msk.msra.mxu1 %vm1093_vm11, %v6651_v13  ;;  %6341 = vmatpush.msk.msra.mxu2 %vm486_vm12, %v6651_v13  ;;  %vm965_vm11 = vcmp.eq.s32.totalorder %v6751_v17, %v9208_v49  ;;  %vm358_vm12 = vcmp.eq.s32.totalorder %v6802_v22, %v9167_v42 }
 0x1af   :  { %6357 = vmatpush.msk.msra.mxu3 %vm998_vm13, %v6651_v13  ;;  %6307 = vmatpush.msk.msra.mxu0 %vm549_vm14, %v6651_v13  ;;  %vm870_vm13 = vcmp.eq.s32.totalorder %v6805_v23, %v9167_v42  ;;  %vm421_vm14 = vcmp.eq.s32.totalorder %v6766_v18, %v9208_v49 }
 0x1b0   :  { %6323 = vmatpush.msk.msra.mxu1 %vm1061_vm15, %v6651_v13  ;;  %6342 = vmatpush.msk.msra.mxu2 %vm454_vm0, %v6651_v13  ;;  %vm933_vm15 = vcmp.eq.s32.totalorder %v6769_v19, %v9208_v49  ;;  %vm326_vm0 = vcmp.eq.s32.totalorder %v6820_v24, %v9167_v42 }
 0x1b1   :  { %6358 = vmatpush.msk.msra.mxu3 %vm966_vm1, %v6651_v13  ;;  %6308 = vmatpush.msk.msra.mxu0 %vm517_vm2, %v6651_v13  ;;  %vm838_vm1 = vcmp.eq.s32.totalorder %v6823_v25, %v9167_v42  ;;  %vm389_vm2 = vcmp.eq.s32.totalorder %v6784_v20, %v9208_v49 }
 0x1b2   :  { %6324 = vmatpush.msk.msra.mxu1 %vm1029_vm3, %v6651_v13  ;;  %6343 = vmatpush.msk.msra.mxu2 %vm422_vm4, %v6651_v13  ;;  %vm901_vm3 = vcmp.eq.s32.totalorder %v6787_v21, %v9208_v49  ;;  %vm294_vm4 = vcmp.eq.s32.totalorder %v6838_v26, %v9167_v42 }
 0x1b3   :  { %6359 = vmatpush.msk.msra.mxu3 %vm934_vm5, %v6651_v13  ;;  %6309 = vmatpush.msk.msra.mxu0 %vm485_vm6, %v6651_v13  ;;  %vm806_vm5 = vcmp.eq.s32.totalorder %v6841_v27, %v9167_v42  ;;  %vm357_vm6 = vcmp.eq.s32.totalorder %v6802_v22, %v9208_v49 }
 0x1b4   :  { %6325 = vmatpush.msk.msra.mxu1 %vm997_vm7, %v6651_v13  ;;  %6344 = vmatpush.msk.msra.mxu2 %vm390_vm8, %v6651_v13  ;;  %vm869_vm7 = vcmp.eq.s32.totalorder %v6805_v23, %v9208_v49  ;;  %vm262_vm8 = vcmp.eq.s32.totalorder %v6856_v28, %v9167_v42 }
 0x1b5   :  { %6360 = vmatpush.msk.msra.mxu3 %vm902_vm9, %v6651_v13  ;;  %6310 = vmatpush.msk.msra.mxu0 %vm453_vm10, %v6651_v13  ;;  %vm774_vm9 = vcmp.eq.s32.totalorder %v6859_v29, %v9167_v42  ;;  %vm325_vm10 = vcmp.eq.s32.totalorder %v6820_v24, %v9208_v49 }
 0x1b6   :  { %6326 = vmatpush.msk.msra.mxu1 %vm965_vm11, %v6651_v13  ;;  %6345 = vmatpush.msk.msra.mxu2 %vm358_vm12, %v6651_v13  ;;  %vm837_vm11 = vcmp.eq.s32.totalorder %v6823_v25, %v9208_v49  ;;  %vm230_vm12 = vcmp.eq.s32.totalorder %v6874_v30, %v9167_v42 }
 0x1b7   :  { %6361 = vmatpush.msk.msra.mxu3 %vm870_vm13, %v6651_v13  ;;  %6311 = vmatpush.msk.msra.mxu0 %vm421_vm14, %v6651_v13  ;;  %vm742_vm13 = vcmp.eq.s32.totalorder %v6877_v31, %v9167_v42  ;;  %vm293_vm14 = vcmp.eq.s32.totalorder %v6838_v26, %v9208_v49 }
 0x1b8   :  { %6327 = vmatpush.msk.msra.mxu1 %vm933_vm15, %v6651_v13  ;;  %6346 = vmatpush.msk.msra.mxu2 %vm326_vm0, %v6651_v13  ;;  %vm805_vm15 = vcmp.eq.s32.totalorder %v6841_v27, %v9208_v49  ;;  %vm198_vm0 = vcmp.eq.s32.totalorder %v6892_v32, %v9167_v42 }
 0x1b9   :  { %6362 = vmatpush.msk.msra.mxu3 %vm838_vm1, %v6651_v13  ;;  %6312 = vmatpush.msk.msra.mxu0 %vm389_vm2, %v6651_v13  ;;  %vm710_vm1 = vcmp.eq.s32.totalorder %v6895_v33, %v9167_v42  ;;  %vm261_vm2 = vcmp.eq.s32.totalorder %v6856_v28, %v9208_v49 }
 0x1ba   :  { %6328 = vmatpush.msk.msra.mxu1 %vm901_vm3, %v6651_v13  ;;  %6347 = vmatpush.msk.msra.mxu2 %vm294_vm4, %v6651_v13  ;;  %vm773_vm3 = vcmp.eq.s32.totalorder %v6859_v29, %v9208_v49  ;;  %vm166_vm4 = vcmp.eq.s32.totalorder %v6910_v34, %v9167_v42 }
 0x1bb   :  { %6363 = vmatpush.msk.msra.mxu3 %vm806_vm5, %v6651_v13  ;;  %6313 = vmatpush.msk.msra.mxu0 %vm357_vm6, %v6651_v13  ;;  %vm678_vm5 = vcmp.eq.s32.totalorder %v6913_v35, %v9167_v42  ;;  %vm229_vm6 = vcmp.eq.s32.totalorder %v6874_v30, %v9208_v49 }
 0x1bc   :  { %6329 = vmatpush.msk.msra.mxu1 %vm869_vm7, %v6651_v13  ;;  %6348 = vmatpush.msk.msra.mxu2 %vm262_vm8, %v6651_v13  ;;  %vm741_vm7 = vcmp.eq.s32.totalorder %v6877_v31, %v9208_v49  ;;  %vm134_vm8 = vcmp.eq.s32.totalorder %v6674_v1, %v9167_v42 }
 0x1bd   :  { %6364 = vmatpush.msk.msra.mxu3 %vm774_vm9, %v6651_v13  ;;  %6314 = vmatpush.msk.msra.mxu0 %vm325_vm10, %v6651_v13  ;;  %vm646_vm9 = vcmp.eq.s32.totalorder %v6928_v36, %v9167_v42  ;;  %vm616_vm10 = vcmp.eq.s32.totalorder %v6677_v2, %v9369_v50 }
 0x1be   :  { %6330 = vmatpush.msk.msra.mxu1 %vm837_vm11, %v6651_v13  ;;  %6349 = vmatpush.msk.msra.mxu2 %vm230_vm12, %v6651_v13  ;;  %vm1128_vm11 = vcmp.eq.s32.totalorder %v6680_v3, %v9369_v50  ;;  %vm197_vm12 = vcmp.eq.s32.totalorder %v6892_v32, %v9208_v49 }
 0x1bf   :  { %6365 = vmatpush.msk.msra.mxu3 %vm742_vm13, %v6651_v13  ;;  %6315 = vmatpush.msk.msra.mxu0 %vm293_vm14, %v6651_v13  ;;  %vm709_vm13 = vcmp.eq.s32.totalorder %v6895_v33, %v9208_v49  ;;  %vm584_vm14 = vcmp.eq.s32.totalorder %v6683_v4, %v9369_v50 }
 0x1c0   :  { %6331 = vmatpush.msk.msra.mxu1 %vm805_vm15, %v6651_v13  ;;  %6350 = vmatpush.msk.msra.mxu2 %vm198_vm0, %v6651_v13  ;;  %v3800_v51 = vpop.f32.mrf.mxu2  ;;  %vm1096_vm15 = vcmp.eq.s32.totalorder %v6686_v5, %v9369_v50  ;;  %vm165_vm0 = vcmp.eq.s32.totalorder %v6910_v34, %v9208_v49 }
 0x1c1   :  { %6366 = vmatpush.msk.msra.mxu3 %vm710_vm1, %v6651_v13  ;;  %6316 = vmatpush.msk.msra.mxu0 %vm261_vm2, %v6651_v13  ;;  %v3760_v52 = vpop.f32.mrf.mxu0  ;;  %v3820_v53 = vpop.f32.mrf.mxu3  ;;  %vm677_vm1 = vcmp.eq.s32.totalorder %v6913_v35, %v9208_v49  ;;  %vm552_vm2 = vcmp.eq.s32.totalorder %v6694_v8, %v9369_v50 }
 0x1c2   :  { %6332 = vmatpush.msk.msra.mxu1 %vm773_vm3, %v6651_v13  ;;  %6351 = vmatpush.msk.msra.mxu2 %vm166_vm4, %v6651_v13  ;;  %v3780_v54 = vpop.f32.mrf.mxu1  ;;  %v3821_v55 = vadd.f32 %v3820_v53, %v3800_v51  ;;  %vm1064_vm3 = vcmp.eq.s32.totalorder %v6697_v9, %v9369_v50  ;;  %vm133_vm4 = vcmp.eq.s32.totalorder %v6674_v1, %v9208_v49 }
 0x1c3   :  { %6367 = vmatpush.msk.msra.mxu3 %vm678_vm5, %v6651_v13  ;;  %6317 = vmatpush.msk.msra.mxu0 %vm229_vm6, %v6651_v13  ;;  %v3781_v56 = vadd.f32 %v3780_v54, %v3760_v52  ;;  %vm645_vm5 = vcmp.eq.s32.totalorder %v6928_v36, %v9208_v49  ;;  %vm615_vm6 = vcmp.eq.s32.totalorder %v6677_v2, %v9410_v57 }
 0x1c4   :  { %6333 = vmatpush.msk.msra.mxu1 %vm741_vm7, %v6651_v13  ;;  %6352 = vmatpush.msk.msra.mxu2 %vm134_vm8, %v6651_v13  ;;  %4478 = vst [vmem:[#allocation7 + $0x78] sm:$0xff] %v3821_v55  ;;  %vm1127_vm7 = vcmp.eq.s32.totalorder %v6680_v3, %v9410_v57  ;;  %vm520_vm8 = vcmp.eq.s32.totalorder %v6703_v11, %v9369_v50 }
 0x1c5   :  { %6368 = vmatpush.msk.msra.mxu3 %vm646_vm9, %v6651_v13  ;;  %4119 = vmatmul.f32.vlgmr.msrb.gmra.mxu2 %v8786_v61  ;;  %4477 = vst [vmem:[#allocation7 + $0x70] sm:$0xff] %v3781_v56  ;;  %vm1032_vm9 = vcmp.eq.s32.totalorder %v6706_v12, %v9369_v50 }
 0x1c6   :  { %4139 = vmatmul.f32.vlgmr.msrb.gmra.mxu3 %v8793_v62  ;;  %6401 = vmatpush.msk.msrb.mxu2 %vm616_vm10, %v6651_v13  ;;  %vm583_vm10 = vcmp.eq.s32.totalorder %v6683_v4, %v9410_v57 }
 0x1c7   :  { %6417 = vmatpush.msk.msrb.mxu3 %vm1128_vm11, %v6651_v13  ;;  %6318 = vmatpush.msk.msra.mxu0 %vm197_vm12, %v6651_v13  ;;  %vm1095_vm11 = vcmp.eq.s32.totalorder %v6686_v5, %v9410_v57  ;;  %vm488_vm12 = vcmp.eq.s32.totalorder %v6721_v14, %v9369_v50 }
 0x1c8   :  { %6334 = vmatpush.msk.msra.mxu1 %vm709_vm13, %v6651_v13  ;;  %6402 = vmatpush.msk.msrb.mxu2 %vm584_vm14, %v6651_v13  ;;  %vm1000_vm13 = vcmp.eq.s32.totalorder %v6724_v15, %v9369_v50  ;;  %vm551_vm14 = vcmp.eq.s32.totalorder %v6694_v8, %v9410_v57 }
 0x1c9   :  { %6418 = vmatpush.msk.msrb.mxu3 %vm1096_vm15, %v6651_v13  ;;  %6319 = vmatpush.msk.msra.mxu0 %vm165_vm0, %v6651_v13  ;;  %vm1063_vm15 = vcmp.eq.s32.totalorder %v6697_v9, %v9410_v57  ;;  %vm456_vm0 = vcmp.eq.s32.totalorder %v6740_v16, %v9369_v50 }
 0x1ca   :  { %6335 = vmatpush.msk.msra.mxu1 %vm677_vm1, %v6651_v13  ;;  %6403 = vmatpush.msk.msrb.mxu2 %vm552_vm2, %v6651_v13  ;;  %vm968_vm1 = vcmp.eq.s32.totalorder %v6751_v17, %v9369_v50  ;;  %vm519_vm2 = vcmp.eq.s32.totalorder %v6703_v11, %v9410_v57 }
 0x1cb   :  { %6419 = vmatpush.msk.msrb.mxu3 %vm1064_vm3, %v6651_v13  ;;  %6320 = vmatpush.msk.msra.mxu0 %vm133_vm4, %v6651_v13  ;;  %vm1031_vm3 = vcmp.eq.s32.totalorder %v6706_v12, %v9410_v57  ;;  %vm424_vm4 = vcmp.eq.s32.totalorder %v6766_v18, %v9369_v50 }
 0x1cc   :  { %6336 = vmatpush.msk.msra.mxu1 %vm645_vm5, %v6651_v13  ;;  %4079 = vmatmul.f32.vlgmr.msrb.gmra.mxu0 %v8786_v61  ;;  %vm936_vm5 = vcmp.eq.s32.totalorder %v6769_v19, %v9369_v50 }
 0x1cd   :  { %4099 = vmatmul.f32.vlgmr.msrb.gmra.mxu1 %v8793_v62  ;;  %6369 = vmatpush.msk.msrb.mxu0 %vm615_vm6, %v6651_v13  ;;  %vm487_vm6 = vcmp.eq.s32.totalorder %v6721_v14, %v9410_v57 }
 0x1ce   :  { %6385 = vmatpush.msk.msrb.mxu1 %vm1127_vm7, %v6651_v13  ;;  %6404 = vmatpush.msk.msrb.mxu2 %vm520_vm8, %v6651_v13  ;;  %vm999_vm7 = vcmp.eq.s32.totalorder %v6724_v15, %v9410_v57  ;;  %vm392_vm8 = vcmp.eq.s32.totalorder %v6784_v20, %v9369_v50 }
 0x1cf   :  { %6420 = vmatpush.msk.msrb.mxu3 %vm1032_vm9, %v6651_v13  ;;  %6370 = vmatpush.msk.msrb.mxu0 %vm583_vm10, %v6651_v13  ;;  %vm904_vm9 = vcmp.eq.s32.totalorder %v6787_v21, %v9369_v50  ;;  %vm455_vm10 = vcmp.eq.s32.totalorder %v6740_v16, %v9410_v57 }
 0x1d0   :  { %6386 = vmatpush.msk.msrb.mxu1 %vm1095_vm11, %v6651_v13  ;;  %6405 = vmatpush.msk.msrb.mxu2 %vm488_vm12, %v6651_v13  ;;  %vm967_vm11 = vcmp.eq.s32.totalorder %v6751_v17, %v9410_v57  ;;  %vm360_vm12 = vcmp.eq.s32.totalorder %v6802_v22, %v9369_v50 }
 0x1d1   :  { %6421 = vmatpush.msk.msrb.mxu3 %vm1000_vm13, %v6651_v13  ;;  %6371 = vmatpush.msk.msrb.mxu0 %vm551_vm14, %v6651_v13  ;;  %vm872_vm13 = vcmp.eq.s32.totalorder %v6805_v23, %v9369_v50  ;;  %vm423_vm14 = vcmp.eq.s32.totalorder %v6766_v18, %v9410_v57 }
 0x1d2   :  { %6387 = vmatpush.msk.msrb.mxu1 %vm1063_vm15, %v6651_v13  ;;  %6406 = vmatpush.msk.msrb.mxu2 %vm456_vm0, %v6651_v13  ;;  %vm935_vm15 = vcmp.eq.s32.totalorder %v6769_v19, %v9410_v57  ;;  %vm328_vm0 = vcmp.eq.s32.totalorder %v6820_v24, %v9369_v50 }
 0x1d3   :  { %6422 = vmatpush.msk.msrb.mxu3 %vm968_vm1, %v6651_v13  ;;  %6372 = vmatpush.msk.msrb.mxu0 %vm519_vm2, %v6651_v13  ;;  %vm840_vm1 = vcmp.eq.s32.totalorder %v6823_v25, %v9369_v50  ;;  %vm391_vm2 = vcmp.eq.s32.totalorder %v6784_v20, %v9410_v57 }
 0x1d4   :  { %6388 = vmatpush.msk.msrb.mxu1 %vm1031_vm3, %v6651_v13  ;;  %6407 = vmatpush.msk.msrb.mxu2 %vm424_vm4, %v6651_v13  ;;  %vm903_vm3 = vcmp.eq.s32.totalorder %v6787_v21, %v9410_v57  ;;  %vm296_vm4 = vcmp.eq.s32.totalorder %v6838_v26, %v9369_v50 }
 0x1d5   :  { %6423 = vmatpush.msk.msrb.mxu3 %vm936_vm5, %v6651_v13  ;;  %6373 = vmatpush.msk.msrb.mxu0 %vm487_vm6, %v6651_v13  ;;  %vm808_vm5 = vcmp.eq.s32.totalorder %v6841_v27, %v9369_v50  ;;  %vm359_vm6 = vcmp.eq.s32.totalorder %v6802_v22, %v9410_v57 }
 0x1d6   :  { %6389 = vmatpush.msk.msrb.mxu1 %vm999_vm7, %v6651_v13  ;;  %6408 = vmatpush.msk.msrb.mxu2 %vm392_vm8, %v6651_v13  ;;  %vm871_vm7 = vcmp.eq.s32.totalorder %v6805_v23, %v9410_v57  ;;  %vm264_vm8 = vcmp.eq.s32.totalorder %v6856_v28, %v9369_v50 }
 0x1d7   :  { %6424 = vmatpush.msk.msrb.mxu3 %vm904_vm9, %v6651_v13  ;;  %6374 = vmatpush.msk.msrb.mxu0 %vm455_vm10, %v6651_v13  ;;  %vm776_vm9 = vcmp.eq.s32.totalorder %v6859_v29, %v9369_v50  ;;  %vm327_vm10 = vcmp.eq.s32.totalorder %v6820_v24, %v9410_v57 }
 0x1d8   :  { %6390 = vmatpush.msk.msrb.mxu1 %vm967_vm11, %v6651_v13  ;;  %6409 = vmatpush.msk.msrb.mxu2 %vm360_vm12, %v6651_v13  ;;  %vm839_vm11 = vcmp.eq.s32.totalorder %v6823_v25, %v9410_v57  ;;  %vm232_vm12 = vcmp.eq.s32.totalorder %v6874_v30, %v9369_v50 }
 0x1d9   :  { %6425 = vmatpush.msk.msrb.mxu3 %vm872_vm13, %v6651_v13  ;;  %6375 = vmatpush.msk.msrb.mxu0 %vm423_vm14, %v6651_v13  ;;  %vm744_vm13 = vcmp.eq.s32.totalorder %v6877_v31, %v9369_v50  ;;  %vm295_vm14 = vcmp.eq.s32.totalorder %v6838_v26, %v9410_v57 }
 0x1da   :  { %6391 = vmatpush.msk.msrb.mxu1 %vm935_vm15, %v6651_v13  ;;  %6410 = vmatpush.msk.msrb.mxu2 %vm328_vm0, %v6651_v13  ;;  %vm807_vm15 = vcmp.eq.s32.totalorder %v6841_v27, %v9410_v57  ;;  %vm200_vm0 = vcmp.eq.s32.totalorder %v6892_v32, %v9369_v50 }
 0x1db   :  { %6426 = vmatpush.msk.msrb.mxu3 %vm840_vm1, %v6651_v13  ;;  %6376 = vmatpush.msk.msrb.mxu0 %vm391_vm2, %v6651_v13  ;;  %vm712_vm1 = vcmp.eq.s32.totalorder %v6895_v33, %v9369_v50  ;;  %vm263_vm2 = vcmp.eq.s32.totalorder %v6856_v28, %v9410_v57 }
 0x1dc   :  { %6392 = vmatpush.msk.msrb.mxu1 %vm903_vm3, %v6651_v13  ;;  %6411 = vmatpush.msk.msrb.mxu2 %vm296_vm4, %v6651_v13  ;;  %vm775_vm3 = vcmp.eq.s32.totalorder %v6859_v29, %v9410_v57  ;;  %vm168_vm4 = vcmp.eq.s32.totalorder %v6910_v34, %v9369_v50 }
 0x1dd   :  { %6427 = vmatpush.msk.msrb.mxu3 %vm808_vm5, %v6651_v13  ;;  %6377 = vmatpush.msk.msrb.mxu0 %vm359_vm6, %v6651_v13  ;;  %vm680_vm5 = vcmp.eq.s32.totalorder %v6913_v35, %v9369_v50  ;;  %vm231_vm6 = vcmp.eq.s32.totalorder %v6874_v30, %v9410_v57 }
 0x1de   :  { %6393 = vmatpush.msk.msrb.mxu1 %vm871_vm7, %v6651_v13  ;;  %6412 = vmatpush.msk.msrb.mxu2 %vm264_vm8, %v6651_v13  ;;  %vm743_vm7 = vcmp.eq.s32.totalorder %v6877_v31, %v9410_v57  ;;  %vm136_vm8 = vcmp.eq.s32.totalorder %v6674_v1, %v9369_v50 }
 0x1df   :  { %6428 = vmatpush.msk.msrb.mxu3 %vm776_vm9, %v6651_v13  ;;  %6378 = vmatpush.msk.msrb.mxu0 %vm327_vm10, %v6651_v13  ;;  %vm648_vm9 = vcmp.eq.s32.totalorder %v6928_v36, %v9369_v50  ;;  %vm618_vm10 = vcmp.eq.s32.totalorder %v6677_v2, %v9571_v58 }
 0x1e0   :  { %6394 = vmatpush.msk.msrb.mxu1 %vm839_vm11, %v6651_v13  ;;  %6413 = vmatpush.msk.msrb.mxu2 %vm232_vm12, %v6651_v13  ;;  %vm1130_vm11 = vcmp.eq.s32.totalorder %v6680_v3, %v9571_v58  ;;  %vm199_vm12 = vcmp.eq.s32.totalorder %v6892_v32, %v9410_v57 }
 0x1e1   :  { %6429 = vmatpush.msk.msrb.mxu3 %vm744_vm13, %v6651_v13  ;;  %6379 = vmatpush.msk.msrb.mxu0 %vm295_vm14, %v6651_v13  ;;  %vm711_vm13 = vcmp.eq.s32.totalorder %v6895_v33, %v9410_v57  ;;  %vm586_vm14 = vcmp.eq.s32.totalorder %v6683_v4, %v9571_v58 }
 0x1e2   :  { %6395 = vmatpush.msk.msrb.mxu1 %vm807_vm15, %v6651_v13  ;;  %6414 = vmatpush.msk.msrb.mxu2 %vm200_vm0, %v6651_v13  ;;  %v3880_v59 = vpop.f32.mrf.mxu2  ;;  %vm1098_vm15 = vcmp.eq.s32.totalorder %v6686_v5, %v9571_v58  ;;  %vm167_vm0 = vcmp.eq.s32.totalorder %v6910_v34, %v9410_v57 }
 0x1e3   :  { %6430 = vmatpush.msk.msrb.mxu3 %vm712_vm1, %v6651_v13  ;;  %6380 = vmatpush.msk.msrb.mxu0 %vm263_vm2, %v6651_v13  ;;  %v3840_v60 = vpop.f32.mrf.mxu0  ;;  %v3900_v61 = vpop.f32.mrf.mxu3  ;;  %vm679_vm1 = vcmp.eq.s32.totalorder %v6913_v35, %v9410_v57  ;;  %vm554_vm2 = vcmp.eq.s32.totalorder %v6694_v8, %v9571_v58 }
 0x1e4   :  { %6396 = vmatpush.msk.msrb.mxu1 %vm775_vm3, %v6651_v13  ;;  %6415 = vmatpush.msk.msrb.mxu2 %vm168_vm4, %v6651_v13  ;;  %v3860_v62 = vpop.f32.mrf.mxu1  ;;  %v3901_v63 = vadd.f32 %v3900_v61, %v3880_v59  ;;  %vm1066_vm3 = vcmp.eq.s32.totalorder %v6697_v9, %v9571_v58  ;;  %vm135_vm4 = vcmp.eq.s32.totalorder %v6674_v1, %v9410_v57 }
 0x1e5   :  { %6431 = vmatpush.msk.msrb.mxu3 %vm680_vm5, %v6651_v13  ;;  %6381 = vmatpush.msk.msrb.mxu0 %vm231_vm6, %v6651_v13  ;;  %v3861_v0 = vadd.f32 %v3860_v62, %v3840_v60  ;;  %vm647_vm5 = vcmp.eq.s32.totalorder %v6928_v36, %v9410_v57  ;;  %vm617_vm6 = vcmp.eq.s32.totalorder %v6677_v2, %v9616_v10 }
 0x1e6   :  { %6397 = vmatpush.msk.msrb.mxu1 %vm743_vm7, %v6651_v13  ;;  %6416 = vmatpush.msk.msrb.mxu2 %vm136_vm8, %v6651_v13  ;;  %4480 = vst [vmem:[#allocation7 + $0x88] sm:$0xff] %v3901_v63  ;;  %vm1129_vm7 = vcmp.eq.s32.totalorder %v6680_v3, %v9616_v10  ;;  %vm522_vm8 = vcmp.eq.s32.totalorder %v6703_v11, %v9571_v58 }
 0x1e7   :  { %6432 = vmatpush.msk.msrb.mxu3 %vm648_vm9, %v6651_v13  ;;  %4199 = vmatmul.f32.vlgmr.msra.gmra.mxu2 %v9600_v6  ;;  %4479 = vst [vmem:[#allocation7 + $0x80] sm:$0xff] %v3861_v0  ;;  %vm1034_vm9 = vcmp.eq.s32.totalorder %v6706_v12, %v9571_v58 }
 0x1e8   :  { %4219 = vmatmul.f32.vlgmr.msra.gmra.mxu3 %v9607_v7  ;;  %6465 = vmatpush.msk.msra.mxu2 %vm618_vm10, %v6651_v13  ;;  %vm585_vm10 = vcmp.eq.s32.totalorder %v6683_v4, %v9616_v10 }
 0x1e9   :  { %6481 = vmatpush.msk.msra.mxu3 %vm1130_vm11, %v6651_v13  ;;  %6382 = vmatpush.msk.msrb.mxu0 %vm199_vm12, %v6651_v13  ;;  %vm1097_vm11 = vcmp.eq.s32.totalorder %v6686_v5, %v9616_v10  ;;  %vm490_vm12 = vcmp.eq.s32.totalorder %v6721_v14, %v9571_v58 }
 0x1ea   :  { %6398 = vmatpush.msk.msrb.mxu1 %vm711_vm13, %v6651_v13  ;;  %6466 = vmatpush.msk.msra.mxu2 %vm586_vm14, %v6651_v13  ;;  %vm1002_vm13 = vcmp.eq.s32.totalorder %v6724_v15, %v9571_v58  ;;  %vm553_vm14 = vcmp.eq.s32.totalorder %v6694_v8, %v9616_v10 }
 0x1eb   :  { %6482 = vmatpush.msk.msra.mxu3 %vm1098_vm15, %v6651_v13  ;;  %6383 = vmatpush.msk.msrb.mxu0 %vm167_vm0, %v6651_v13  ;;  %vm1065_vm15 = vcmp.eq.s32.totalorder %v6697_v9, %v9616_v10  ;;  %vm458_vm0 = vcmp.eq.s32.totalorder %v6740_v16, %v9571_v58 }
 0x1ec   :  { %6399 = vmatpush.msk.msrb.mxu1 %vm679_vm1, %v6651_v13  ;;  %6467 = vmatpush.msk.msra.mxu2 %vm554_vm2, %v6651_v13  ;;  %vm970_vm1 = vcmp.eq.s32.totalorder %v6751_v17, %v9571_v58  ;;  %vm521_vm2 = vcmp.eq.s32.totalorder %v6703_v11, %v9616_v10 }
 0x1ed   :  { %6483 = vmatpush.msk.msra.mxu3 %vm1066_vm3, %v6651_v13  ;;  %6384 = vmatpush.msk.msrb.mxu0 %vm135_vm4, %v6651_v13  ;;  %vm1033_vm3 = vcmp.eq.s32.totalorder %v6706_v12, %v9616_v10  ;;  %vm426_vm4 = vcmp.eq.s32.totalorder %v6766_v18, %v9571_v58 }
 0x1ee   :  { %6400 = vmatpush.msk.msrb.mxu1 %vm647_vm5, %v6651_v13  ;;  %4159 = vmatmul.f32.vlgmr.msra.gmra.mxu0 %v9600_v6  ;;  %vm938_vm5 = vcmp.eq.s32.totalorder %v6769_v19, %v9571_v58 }
 0x1ef   :  { %4179 = vmatmul.f32.vlgmr.msra.gmra.mxu1 %v9607_v7  ;;  %6433 = vmatpush.msk.msra.mxu0 %vm617_vm6, %v6651_v13  ;;  %vm489_vm6 = vcmp.eq.s32.totalorder %v6721_v14, %v9616_v10 }
 0x1f0   :  { %6449 = vmatpush.msk.msra.mxu1 %vm1129_vm7, %v6651_v13  ;;  %6468 = vmatpush.msk.msra.mxu2 %vm522_vm8, %v6651_v13  ;;  %vm1001_vm7 = vcmp.eq.s32.totalorder %v6724_v15, %v9616_v10  ;;  %vm394_vm8 = vcmp.eq.s32.totalorder %v6784_v20, %v9571_v58 }
 0x1f1   :  { %6484 = vmatpush.msk.msra.mxu3 %vm1034_vm9, %v6651_v13  ;;  %6434 = vmatpush.msk.msra.mxu0 %vm585_vm10, %v6651_v13  ;;  %vm906_vm9 = vcmp.eq.s32.totalorder %v6787_v21, %v9571_v58  ;;  %vm457_vm10 = vcmp.eq.s32.totalorder %v6740_v16, %v9616_v10 }
 0x1f2   :  { %6450 = vmatpush.msk.msra.mxu1 %vm1097_vm11, %v6651_v13  ;;  %6469 = vmatpush.msk.msra.mxu2 %vm490_vm12, %v6651_v13  ;;  %vm969_vm11 = vcmp.eq.s32.totalorder %v6751_v17, %v9616_v10  ;;  %vm362_vm12 = vcmp.eq.s32.totalorder %v6802_v22, %v9571_v58 }
 0x1f3   :  { %6485 = vmatpush.msk.msra.mxu3 %vm1002_vm13, %v6651_v13  ;;  %6435 = vmatpush.msk.msra.mxu0 %vm553_vm14, %v6651_v13  ;;  %vm874_vm13 = vcmp.eq.s32.totalorder %v6805_v23, %v9571_v58  ;;  %vm425_vm14 = vcmp.eq.s32.totalorder %v6766_v18, %v9616_v10 }
 0x1f4   :  { %6451 = vmatpush.msk.msra.mxu1 %vm1065_vm15, %v6651_v13  ;;  %6470 = vmatpush.msk.msra.mxu2 %vm458_vm0, %v6651_v13  ;;  %vm937_vm15 = vcmp.eq.s32.totalorder %v6769_v19, %v9616_v10  ;;  %vm330_vm0 = vcmp.eq.s32.totalorder %v6820_v24, %v9571_v58 }
 0x1f5   :  { %6486 = vmatpush.msk.msra.mxu3 %vm970_vm1, %v6651_v13  ;;  %6436 = vmatpush.msk.msra.mxu0 %vm521_vm2, %v6651_v13  ;;  %vm842_vm1 = vcmp.eq.s32.totalorder %v6823_v25, %v9571_v58  ;;  %vm393_vm2 = vcmp.eq.s32.totalorder %v6784_v20, %v9616_v10 }
 0x1f6   :  { %6452 = vmatpush.msk.msra.mxu1 %vm1033_vm3, %v6651_v13  ;;  %6471 = vmatpush.msk.msra.mxu2 %vm426_vm4, %v6651_v13  ;;  %vm905_vm3 = vcmp.eq.s32.totalorder %v6787_v21, %v9616_v10  ;;  %vm298_vm4 = vcmp.eq.s32.totalorder %v6838_v26, %v9571_v58 }
 0x1f7   :  { %6487 = vmatpush.msk.msra.mxu3 %vm938_vm5, %v6651_v13  ;;  %6437 = vmatpush.msk.msra.mxu0 %vm489_vm6, %v6651_v13  ;;  %vm810_vm5 = vcmp.eq.s32.totalorder %v6841_v27, %v9571_v58  ;;  %vm361_vm6 = vcmp.eq.s32.totalorder %v6802_v22, %v9616_v10 }
 0x1f8   :  { %6453 = vmatpush.msk.msra.mxu1 %vm1001_vm7, %v6651_v13  ;;  %6472 = vmatpush.msk.msra.mxu2 %vm394_vm8, %v6651_v13  ;;  %vm873_vm7 = vcmp.eq.s32.totalorder %v6805_v23, %v9616_v10  ;;  %vm266_vm8 = vcmp.eq.s32.totalorder %v6856_v28, %v9571_v58 }
 0x1f9   :  { %6488 = vmatpush.msk.msra.mxu3 %vm906_vm9, %v6651_v13  ;;  %6438 = vmatpush.msk.msra.mxu0 %vm457_vm10, %v6651_v13  ;;  %vm778_vm9 = vcmp.eq.s32.totalorder %v6859_v29, %v9571_v58  ;;  %vm329_vm10 = vcmp.eq.s32.totalorder %v6820_v24, %v9616_v10 }
 0x1fa   :  { %6454 = vmatpush.msk.msra.mxu1 %vm969_vm11, %v6651_v13  ;;  %6473 = vmatpush.msk.msra.mxu2 %vm362_vm12, %v6651_v13  ;;  %vm841_vm11 = vcmp.eq.s32.totalorder %v6823_v25, %v9616_v10  ;;  %vm234_vm12 = vcmp.eq.s32.totalorder %v6874_v30, %v9571_v58 }
 0x1fb   :  { %6489 = vmatpush.msk.msra.mxu3 %vm874_vm13, %v6651_v13  ;;  %6439 = vmatpush.msk.msra.mxu0 %vm425_vm14, %v6651_v13  ;;  %vm746_vm13 = vcmp.eq.s32.totalorder %v6877_v31, %v9571_v58  ;;  %vm297_vm14 = vcmp.eq.s32.totalorder %v6838_v26, %v9616_v10 }
 0x1fc   :  { %6455 = vmatpush.msk.msra.mxu1 %vm937_vm15, %v6651_v13  ;;  %6474 = vmatpush.msk.msra.mxu2 %vm330_vm0, %v6651_v13  ;;  %vm809_vm15 = vcmp.eq.s32.totalorder %v6841_v27, %v9616_v10  ;;  %vm202_vm0 = vcmp.eq.s32.totalorder %v6892_v32, %v9571_v58 }
 0x1fd   :  { %6490 = vmatpush.msk.msra.mxu3 %vm842_vm1, %v6651_v13  ;;  %6440 = vmatpush.msk.msra.mxu0 %vm393_vm2, %v6651_v13  ;;  %vm714_vm1 = vcmp.eq.s32.totalorder %v6895_v33, %v9571_v58  ;;  %vm265_vm2 = vcmp.eq.s32.totalorder %v6856_v28, %v9616_v10 }
 0x1fe   :  { %6456 = vmatpush.msk.msra.mxu1 %vm905_vm3, %v6651_v13  ;;  %6475 = vmatpush.msk.msra.mxu2 %vm298_vm4, %v6651_v13  ;;  %vm777_vm3 = vcmp.eq.s32.totalorder %v6859_v29, %v9616_v10  ;;  %vm170_vm4 = vcmp.eq.s32.totalorder %v6910_v34, %v9571_v58 }
 0x1ff   :  { %6491 = vmatpush.msk.msra.mxu3 %vm810_vm5, %v6651_v13  ;;  %6441 = vmatpush.msk.msra.mxu0 %vm361_vm6, %v6651_v13  ;;  %vm682_vm5 = vcmp.eq.s32.totalorder %v6913_v35, %v9571_v58  ;;  %vm233_vm6 = vcmp.eq.s32.totalorder %v6874_v30, %v9616_v10 }
 0x200   :  { %6457 = vmatpush.msk.msra.mxu1 %vm873_vm7, %v6651_v13  ;;  %6476 = vmatpush.msk.msra.mxu2 %vm266_vm8, %v6651_v13  ;;  %vm745_vm7 = vcmp.eq.s32.totalorder %v6877_v31, %v9616_v10  ;;  %vm138_vm8 = vcmp.eq.s32.totalorder %v6674_v1, %v9571_v58 }
 0x201   :  { %6492 = vmatpush.msk.msra.mxu3 %vm778_vm9, %v6651_v13  ;;  %6442 = vmatpush.msk.msra.mxu0 %vm329_vm10, %v6651_v13  ;;  %vm650_vm9 = vcmp.eq.s32.totalorder %v6928_v36, %v9571_v58  ;;  %vm620_vm10 = vcmp.eq.s32.totalorder %v6677_v2, %v9777_v38 }
 0x202   :  { %6458 = vmatpush.msk.msra.mxu1 %vm841_vm11, %v6651_v13  ;;  %6477 = vmatpush.msk.msra.mxu2 %vm234_vm12, %v6651_v13  ;;  %vm1132_vm11 = vcmp.eq.s32.totalorder %v6680_v3, %v9777_v38  ;;  %vm201_vm12 = vcmp.eq.s32.totalorder %v6892_v32, %v9616_v10 }
 0x203   :  { %6493 = vmatpush.msk.msra.mxu3 %vm746_vm13, %v6651_v13  ;;  %6443 = vmatpush.msk.msra.mxu0 %vm297_vm14, %v6651_v13  ;;  %vm713_vm13 = vcmp.eq.s32.totalorder %v6895_v33, %v9616_v10  ;;  %vm588_vm14 = vcmp.eq.s32.totalorder %v6683_v4, %v9777_v38 }
 0x204   :  { %6459 = vmatpush.msk.msra.mxu1 %vm809_vm15, %v6651_v13  ;;  %6478 = vmatpush.msk.msra.mxu2 %vm202_vm0, %v6651_v13  ;;  %v3960_v39 = vpop.f32.mrf.mxu2  ;;  %vm1100_vm15 = vcmp.eq.s32.totalorder %v6686_v5, %v9777_v38  ;;  %vm169_vm0 = vcmp.eq.s32.totalorder %v6910_v34, %v9616_v10 }
 0x205   :  { %6494 = vmatpush.msk.msra.mxu3 %vm714_vm1, %v6651_v13  ;;  %6444 = vmatpush.msk.msra.mxu0 %vm265_vm2, %v6651_v13  ;;  %v3920_v40 = vpop.f32.mrf.mxu0  ;;  %v3980_v41 = vpop.f32.mrf.mxu3  ;;  %vm681_vm1 = vcmp.eq.s32.totalorder %v6913_v35, %v9616_v10  ;;  %vm556_vm2 = vcmp.eq.s32.totalorder %v6694_v8, %v9777_v38 }
 0x206   :  { %6460 = vmatpush.msk.msra.mxu1 %vm777_vm3, %v6651_v13  ;;  %6479 = vmatpush.msk.msra.mxu2 %vm170_vm4, %v6651_v13  ;;  %v3940_v42 = vpop.f32.mrf.mxu1  ;;  %v3981_v43 = vadd.f32 %v3980_v41, %v3960_v39  ;;  %vm1068_vm3 = vcmp.eq.s32.totalorder %v6697_v9, %v9777_v38  ;;  %vm137_vm4 = vcmp.eq.s32.totalorder %v6674_v1, %v9616_v10 }
 0x207   :  { %6495 = vmatpush.msk.msra.mxu3 %vm682_vm5, %v6651_v13  ;;  %6445 = vmatpush.msk.msra.mxu0 %vm233_vm6, %v6651_v13  ;;  %v3941_v44 = vadd.f32 %v3940_v42, %v3920_v40  ;;  %vm649_vm5 = vcmp.eq.s32.totalorder %v6928_v36, %v9616_v10  ;;  %vm619_vm6 = vcmp.eq.s32.totalorder %v6677_v2, %v9818_v45 }
 0x208   :  { %6461 = vmatpush.msk.msra.mxu1 %vm745_vm7, %v6651_v13  ;;  %6480 = vmatpush.msk.msra.mxu2 %vm138_vm8, %v6651_v13  ;;  %4482 = vst [vmem:[#allocation7 + $0x98] sm:$0xff] %v3981_v43  ;;  %vm1131_vm7 = vcmp.eq.s32.totalorder %v6680_v3, %v9818_v45  ;;  %vm524_vm8 = vcmp.eq.s32.totalorder %v6703_v11, %v9777_v38 }
 0x209   :  { %6496 = vmatpush.msk.msra.mxu3 %vm650_vm9, %v6651_v13  ;;  %4279 = vmatmul.f32.vlgmr.msrb.gmra.mxu2 %v9600_v6  ;;  %4481 = vst [vmem:[#allocation7 + $0x90] sm:$0xff] %v3941_v44  ;;  %vm1036_vm9 = vcmp.eq.s32.totalorder %v6706_v12, %v9777_v38 }
 0x20a   :  { %4299 = vmatmul.f32.vlgmr.msrb.gmra.mxu3 %v9607_v7  ;;  %6529 = vmatpush.msk.msrb.mxu2 %vm620_vm10, %v6651_v13  ;;  %vm587_vm10 = vcmp.eq.s32.totalorder %v6683_v4, %v9818_v45 }
 0x20b   :  { %6545 = vmatpush.msk.msrb.mxu3 %vm1132_vm11, %v6651_v13  ;;  %6446 = vmatpush.msk.msra.mxu0 %vm201_vm12, %v6651_v13  ;;  %vm1099_vm11 = vcmp.eq.s32.totalorder %v6686_v5, %v9818_v45  ;;  %vm492_vm12 = vcmp.eq.s32.totalorder %v6721_v14, %v9777_v38 }
 0x20c   :  { %6462 = vmatpush.msk.msra.mxu1 %vm713_vm13, %v6651_v13  ;;  %6530 = vmatpush.msk.msrb.mxu2 %vm588_vm14, %v6651_v13  ;;  %vm1004_vm13 = vcmp.eq.s32.totalorder %v6724_v15, %v9777_v38  ;;  %vm555_vm14 = vcmp.eq.s32.totalorder %v6694_v8, %v9818_v45 }
 0x20d   :  { %6546 = vmatpush.msk.msrb.mxu3 %vm1100_vm15, %v6651_v13  ;;  %6447 = vmatpush.msk.msra.mxu0 %vm169_vm0, %v6651_v13  ;;  %vm1067_vm15 = vcmp.eq.s32.totalorder %v6697_v9, %v9818_v45  ;;  %vm460_vm0 = vcmp.eq.s32.totalorder %v6740_v16, %v9777_v38 }
 0x20e   :  { %6463 = vmatpush.msk.msra.mxu1 %vm681_vm1, %v6651_v13  ;;  %6531 = vmatpush.msk.msrb.mxu2 %vm556_vm2, %v6651_v13  ;;  %vm972_vm1 = vcmp.eq.s32.totalorder %v6751_v17, %v9777_v38  ;;  %vm523_vm2 = vcmp.eq.s32.totalorder %v6703_v11, %v9818_v45 }
 0x20f   :  { %6547 = vmatpush.msk.msrb.mxu3 %vm1068_vm3, %v6651_v13  ;;  %6448 = vmatpush.msk.msra.mxu0 %vm137_vm4, %v6651_v13  ;;  %vm1035_vm3 = vcmp.eq.s32.totalorder %v6706_v12, %v9818_v45  ;;  %vm428_vm4 = vcmp.eq.s32.totalorder %v6766_v18, %v9777_v38 }
 0x210   :  { %6464 = vmatpush.msk.msra.mxu1 %vm649_vm5, %v6651_v13  ;;  %4239 = vmatmul.f32.vlgmr.msrb.gmra.mxu0 %v9600_v6  ;;  %vm940_vm5 = vcmp.eq.s32.totalorder %v6769_v19, %v9777_v38 }
 0x211   :  { %4259 = vmatmul.f32.vlgmr.msrb.gmra.mxu1 %v9607_v7  ;;  %6497 = vmatpush.msk.msrb.mxu0 %vm619_vm6, %v6651_v13  ;;  %vm491_vm6 = vcmp.eq.s32.totalorder %v6721_v14, %v9818_v45 }
 0x212   :  { %6513 = vmatpush.msk.msrb.mxu1 %vm1131_vm7, %v6651_v13  ;;  %6532 = vmatpush.msk.msrb.mxu2 %vm524_vm8, %v6651_v13  ;;  %vm1003_vm7 = vcmp.eq.s32.totalorder %v6724_v15, %v9818_v45  ;;  %vm396_vm8 = vcmp.eq.s32.totalorder %v6784_v20, %v9777_v38 }
 0x213   :  { %6548 = vmatpush.msk.msrb.mxu3 %vm1036_vm9, %v6651_v13  ;;  %6498 = vmatpush.msk.msrb.mxu0 %vm587_vm10, %v6651_v13  ;;  %vm908_vm9 = vcmp.eq.s32.totalorder %v6787_v21, %v9777_v38  ;;  %vm459_vm10 = vcmp.eq.s32.totalorder %v6740_v16, %v9818_v45 }
 0x214   :  { %6514 = vmatpush.msk.msrb.mxu1 %vm1099_vm11, %v6651_v13  ;;  %6533 = vmatpush.msk.msrb.mxu2 %vm492_vm12, %v6651_v13  ;;  %vm971_vm11 = vcmp.eq.s32.totalorder %v6751_v17, %v9818_v45  ;;  %vm364_vm12 = vcmp.eq.s32.totalorder %v6802_v22, %v9777_v38 }
 0x215   :  { %6549 = vmatpush.msk.msrb.mxu3 %vm1004_vm13, %v6651_v13  ;;  %6499 = vmatpush.msk.msrb.mxu0 %vm555_vm14, %v6651_v13  ;;  %vm876_vm13 = vcmp.eq.s32.totalorder %v6805_v23, %v9777_v38  ;;  %vm427_vm14 = vcmp.eq.s32.totalorder %v6766_v18, %v9818_v45 }
 0x216   :  { %6515 = vmatpush.msk.msrb.mxu1 %vm1067_vm15, %v6651_v13  ;;  %6534 = vmatpush.msk.msrb.mxu2 %vm460_vm0, %v6651_v13  ;;  %vm939_vm15 = vcmp.eq.s32.totalorder %v6769_v19, %v9818_v45  ;;  %vm332_vm0 = vcmp.eq.s32.totalorder %v6820_v24, %v9777_v38 }
 0x217   :  { %6550 = vmatpush.msk.msrb.mxu3 %vm972_vm1, %v6651_v13  ;;  %6500 = vmatpush.msk.msrb.mxu0 %vm523_vm2, %v6651_v13  ;;  %vm844_vm1 = vcmp.eq.s32.totalorder %v6823_v25, %v9777_v38  ;;  %vm395_vm2 = vcmp.eq.s32.totalorder %v6784_v20, %v9818_v45 }
 0x218   :  { %6516 = vmatpush.msk.msrb.mxu1 %vm1035_vm3, %v6651_v13  ;;  %6535 = vmatpush.msk.msrb.mxu2 %vm428_vm4, %v6651_v13  ;;  %vm907_vm3 = vcmp.eq.s32.totalorder %v6787_v21, %v9818_v45  ;;  %vm300_vm4 = vcmp.eq.s32.totalorder %v6838_v26, %v9777_v38 }
 0x219   :  { %6551 = vmatpush.msk.msrb.mxu3 %vm940_vm5, %v6651_v13  ;;  %6501 = vmatpush.msk.msrb.mxu0 %vm491_vm6, %v6651_v13  ;;  %vm812_vm5 = vcmp.eq.s32.totalorder %v6841_v27, %v9777_v38  ;;  %vm363_vm6 = vcmp.eq.s32.totalorder %v6802_v22, %v9818_v45 }
 0x21a   :  { %6517 = vmatpush.msk.msrb.mxu1 %vm1003_vm7, %v6651_v13  ;;  %6536 = vmatpush.msk.msrb.mxu2 %vm396_vm8, %v6651_v13  ;;  %vm875_vm7 = vcmp.eq.s32.totalorder %v6805_v23, %v9818_v45  ;;  %vm268_vm8 = vcmp.eq.s32.totalorder %v6856_v28, %v9777_v38 }
 0x21b   :  { %6552 = vmatpush.msk.msrb.mxu3 %vm908_vm9, %v6651_v13  ;;  %6502 = vmatpush.msk.msrb.mxu0 %vm459_vm10, %v6651_v13  ;;  %vm780_vm9 = vcmp.eq.s32.totalorder %v6859_v29, %v9777_v38  ;;  %vm331_vm10 = vcmp.eq.s32.totalorder %v6820_v24, %v9818_v45 }
 0x21c   :  { %6518 = vmatpush.msk.msrb.mxu1 %vm971_vm11, %v6651_v13  ;;  %6537 = vmatpush.msk.msrb.mxu2 %vm364_vm12, %v6651_v13  ;;  %vm843_vm11 = vcmp.eq.s32.totalorder %v6823_v25, %v9818_v45  ;;  %vm236_vm12 = vcmp.eq.s32.totalorder %v6874_v30, %v9777_v38 }
 0x21d   :  { %6553 = vmatpush.msk.msrb.mxu3 %vm876_vm13, %v6651_v13  ;;  %6503 = vmatpush.msk.msrb.mxu0 %vm427_vm14, %v6651_v13  ;;  %vm748_vm13 = vcmp.eq.s32.totalorder %v6877_v31, %v9777_v38  ;;  %vm299_vm14 = vcmp.eq.s32.totalorder %v6838_v26, %v9818_v45 }
 0x21e   :  { %6519 = vmatpush.msk.msrb.mxu1 %vm939_vm15, %v6651_v13  ;;  %6538 = vmatpush.msk.msrb.mxu2 %vm332_vm0, %v6651_v13  ;;  %vm811_vm15 = vcmp.eq.s32.totalorder %v6841_v27, %v9818_v45  ;;  %vm204_vm0 = vcmp.eq.s32.totalorder %v6892_v32, %v9777_v38 }
 0x21f   :  { %6554 = vmatpush.msk.msrb.mxu3 %vm844_vm1, %v6651_v13  ;;  %6504 = vmatpush.msk.msrb.mxu0 %vm395_vm2, %v6651_v13  ;;  %vm716_vm1 = vcmp.eq.s32.totalorder %v6895_v33, %v9777_v38  ;;  %vm267_vm2 = vcmp.eq.s32.totalorder %v6856_v28, %v9818_v45 }
 0x220   :  { %6520 = vmatpush.msk.msrb.mxu1 %vm907_vm3, %v6651_v13  ;;  %6539 = vmatpush.msk.msrb.mxu2 %vm300_vm4, %v6651_v13  ;;  %vm779_vm3 = vcmp.eq.s32.totalorder %v6859_v29, %v9818_v45  ;;  %vm172_vm4 = vcmp.eq.s32.totalorder %v6910_v34, %v9777_v38 }
 0x221   :  { %6555 = vmatpush.msk.msrb.mxu3 %vm812_vm5, %v6651_v13  ;;  %6505 = vmatpush.msk.msrb.mxu0 %vm363_vm6, %v6651_v13  ;;  %vm684_vm5 = vcmp.eq.s32.totalorder %v6913_v35, %v9777_v38  ;;  %vm235_vm6 = vcmp.eq.s32.totalorder %v6874_v30, %v9818_v45 }
 0x222   :  { %6521 = vmatpush.msk.msrb.mxu1 %vm875_vm7, %v6651_v13  ;;  %6540 = vmatpush.msk.msrb.mxu2 %vm268_vm8, %v6651_v13  ;;  %vm747_vm7 = vcmp.eq.s32.totalorder %v6877_v31, %v9818_v45  ;;  %vm140_vm8 = vcmp.eq.s32.totalorder %v6674_v1, %v9777_v38 }
 0x223   :  { %6556 = vmatpush.msk.msrb.mxu3 %vm780_vm9, %v6651_v13  ;;  %4359 = vmatmul.f32.vlgmr.msra.gmra.mxu2 %v9600_v6  ;;  %vm652_vm9 = vcmp.eq.s32.totalorder %v6928_v36, %v9777_v38 }
 0x224   :  { %4379 = vmatmul.f32.vlgmr.msra.gmra.mxu3 %v9607_v7  ;;  %6506 = vmatpush.msk.msrb.mxu0 %vm331_vm10, %v6651_v13  ;;  %vm203_vm10 = vcmp.eq.s32.totalorder %v6892_v32, %v9818_v45 }
 0x225   :  { %6522 = vmatpush.msk.msrb.mxu1 %vm843_vm11, %v6651_v13  ;;  %6541 = vmatpush.msk.msrb.mxu2 %vm236_vm12, %v6651_v13  ;;  %vm715_vm11 = vcmp.eq.s32.totalorder %v6895_v33, %v9818_v45  ;;  %vm171_vm12 = vcmp.eq.s32.totalorder %v6910_v34, %v9818_v45 }
 0x226   :  { %6557 = vmatpush.msk.msrb.mxu3 %vm748_vm13, %v6651_v13  ;;  %6507 = vmatpush.msk.msrb.mxu0 %vm299_vm14, %v6651_v13  ;;  %v4040_v2 = vpop.f32.mrf.mxu2  ;;  %vm683_vm13 = vcmp.eq.s32.totalorder %v6913_v35, %v9818_v45  ;;  %vm139_vm14 = vcmp.eq.s32.totalorder %v6674_v1, %v9818_v45 }
 0x227   :  { %6523 = vmatpush.msk.msrb.mxu1 %vm811_vm15, %v6651_v13  ;;  %6542 = vmatpush.msk.msrb.mxu2 %vm204_vm0, %v6651_v13  ;;  %v4000_v3 = vpop.f32.mrf.mxu0  ;;  %v4060_v4 = vpop.f32.mrf.mxu3  ;;  %vm651_vm15 = vcmp.eq.s32.totalorder %v6928_v36, %v9818_v45 }
 0x228   :  { %6558 = vmatpush.msk.msrb.mxu3 %vm716_vm1, %v6651_v13  ;;  %6508 = vmatpush.msk.msrb.mxu0 %vm267_vm2, %v6651_v13  ;;  %v4020_v5 = vpop.f32.mrf.mxu1  ;;  %v4061_v8 = vadd.f32 %v4060_v4, %v4040_v2 }
 0x229   :  { %6524 = vmatpush.msk.msrb.mxu1 %vm779_vm3, %v6651_v13  ;;  %6543 = vmatpush.msk.msrb.mxu2 %vm172_vm4, %v6651_v13  ;;  %v4021_v9 = vadd.f32 %v4020_v5, %v4000_v3 }
 0x22a   :  { %6559 = vmatpush.msk.msrb.mxu3 %vm684_vm5, %v6651_v13  ;;  %4319 = vmatmul.f32.vlgmr.msra.gmra.mxu0 %v9600_v6  ;;  %4484 = vst [vmem:[#allocation7 + $0xa8] sm:$0xff] %v4061_v8 }
 0x22b   :  { %4339 = vmatmul.f32.vlgmr.msra.gmra.mxu1 %v9607_v7  ;;  %6509 = vmatpush.msk.msrb.mxu0 %vm235_vm6, %v6651_v13  ;;  %4483 = vst [vmem:[#allocation7 + $0xa0] sm:$0xff] %v4021_v9 }
 0x22c   :  { %6525 = vmatpush.msk.msrb.mxu1 %vm747_vm7, %v6651_v13  ;;  %6544 = vmatpush.msk.msrb.mxu2 %vm140_vm8, %v6651_v13 }
 0x22d   :  { %6560 = vmatpush.msk.msrb.mxu3 %vm652_vm9, %v6651_v13  ;;  %4439 = vmatmul.f32.vlgmr.msrb.gmra.mxu2 %v9600_v6 }
 0x22e   :  { %4459 = vmatmul.f32.vlgmr.msrb.gmra.mxu3 %v9607_v7  ;;  %6510 = vmatpush.msk.msrb.mxu0 %vm203_vm10, %v6651_v13 }
 0x22f   :  { %6526 = vmatpush.msk.msrb.mxu1 %vm715_vm11, %v6651_v13 }
 0x230   :  { %6511 = vmatpush.msk.msrb.mxu0 %vm171_vm12, %v6651_v13 }
 0x231   :  { %6527 = vmatpush.msk.msrb.mxu1 %vm683_vm13, %v6651_v13 }
 0x232   :  { %6512 = vmatpush.msk.msrb.mxu0 %vm139_vm14, %v6651_v13 }
 0x233   :  { %6528 = vmatpush.msk.msrb.mxu1 %vm651_vm15, %v6651_v13  ;;  %4399 = vmatmul.f32.vlgmr.msrb.gmra.mxu0 %v9600_v6 }
 0x234   :  { %4419 = vmatmul.f32.vlgmr.msrb.gmra.mxu1 %v9607_v7 }
 0x248   :  { %v4120_v11 = vpop.f32.mrf.mxu2 }
 0x249   :  { %v4080_v12 = vpop.f32.mrf.mxu0  ;;  %v4140_v14 = vpop.f32.mrf.mxu3 }
 0x24a   :  { %v4100_v15 = vpop.f32.mrf.mxu1  ;;  %v4141_v1 = vadd.f32 %v4140_v14, %v4120_v11 }
 0x24b   :  { %v4101_v16 = vadd.f32 %v4100_v15, %v4080_v12 }
 0x24c   :  { %4486 = vst [vmem:[#allocation7 + $0xb8] sm:$0xff] %v4141_v1 }
 0x24d   :  { %4485 = vst [vmem:[#allocation7 + $0xb0] sm:$0xff] %v4101_v16 }
 0x26a   :  { %v4200_v17 = vpop.f32.mrf.mxu2 }
 0x26b   :  { %v4160_v18 = vpop.f32.mrf.mxu0  ;;  %v4220_v19 = vpop.f32.mrf.mxu3 }
 0x26c   :  { %v4180_v20 = vpop.f32.mrf.mxu1  ;;  %v4221_v21 = vadd.f32 %v4220_v19, %v4200_v17 }
 0x26d   :  { %v4181_v22 = vadd.f32 %v4180_v20, %v4160_v18 }
 0x26e   :  { %4488 = vst [vmem:[#allocation7 + $0xc8] sm:$0xff] %v4221_v21 }
 0x26f   :  { %4487 = vst [vmem:[#allocation7 + $0xc0] sm:$0xff] %v4181_v22 }
 0x28c   :  { %v4280_v13 = vpop.f32.mrf.mxu2 }
 0x28d   :  { %v4240_v23 = vpop.f32.mrf.mxu0  ;;  %v4300_v24 = vpop.f32.mrf.mxu3 }
 0x28e   :  { %v4260_v25 = vpop.f32.mrf.mxu1  ;;  %v4301_v26 = vadd.f32 %v4300_v24, %v4280_v13 }
 0x28f   :  { %v4261_v27 = vadd.f32 %v4260_v25, %v4240_v23 }
 0x290   :  { %4490 = vst [vmem:[#allocation7 + $0xd8] sm:$0xff] %v4301_v26 }
 0x291   :  { %4489 = vst [vmem:[#allocation7 + $0xd0] sm:$0xff] %v4261_v27 }
 0x2a6   :  { %v4360_v28 = vpop.f32.mrf.mxu2 }
 0x2a7   :  { %v4320_v29 = vpop.f32.mrf.mxu0  ;;  %v4380_v30 = vpop.f32.mrf.mxu3 }
 0x2a8   :  { %v4340_v31 = vpop.f32.mrf.mxu1  ;;  %v4381_v32 = vadd.f32 %v4380_v30, %v4360_v28 }
 0x2a9   :  { %v4341_v33 = vadd.f32 %v4340_v31, %v4320_v29 }
 0x2aa   :  { %4492 = vst [vmem:[#allocation7 + $0xe8] sm:$0xff] %v4381_v32 }
 0x2ab   :  { %4491 = vst [vmem:[#allocation7 + $0xe0] sm:$0xff] %v4341_v33 }
 0x2b0   :  { %v4400_v34 = vpop.f32.mrf.mxu0  ;;  %v4440_v35 = vpop.f32.mrf.mxu2 }
 0x2b1   :  { %v4420_v36 = vpop.f32.mrf.mxu1  ;;  %v4460_v37 = vpop.f32.mrf.mxu3 }
 0x2b2   :  { %v4421_v46 = vadd.f32 %v4420_v36, %v4400_v34  ;;  %v4461_v47 = vadd.f32 %v4460_v37, %v4440_v35 }
 0x2b4   :  { %4493 = vst [vmem:[#allocation7 + $0xf0] sm:$0xff] %v4421_v46 }
 0x2b5   :  { %4494 = vst [vmem:[#allocation7 + $0xf8] sm:$0xff] %v4461_v47 }
 0x2b6   :  { %4505 = dma.vmem_to_hbm [thread:$0]  %s4501_s1, 4096, %s4503_s21, [#allocation4]  }
 0x2b7   :  { %6647 = dma.done.wait [#allocation4], 4096  }
 0x2b8   :  { %6648 = vsyncadd [#allocation4], 4294963200 }
 0x2b9   :  { %4510 = vsyncpa [#allocation3], 1 }
 0x2ba   :  { %4511 = vsyncpa [#allocation6], 1 }
 0x2bb   :  { %4512 = vsyncpa [#allocation4], 1 }

</bundles_post_ra>
